<compile_context>
chip_gen: v6e
topology: v6e:2x2x1
jax: 0.10.0
libtpu: 0.0.40
codegen_flags: <defaults>
</compile_context>

<pallas_src>
import math

import jax
import jax.numpy as jnp
from jax.experimental import pallas as pl
from jax.experimental.pallas import tpu as pltpu


def _weighted_l1_kernel(e_ref, x_ref, t_ref, w_ref, o_ref):
    """Blocks: x/t/o (1, TA, W); w (1, TA, L); e (L, W) with e[l, w] = |cw[w % C]| * (w//C == l)."""
    x = x_ref[...]
    t = t_ref[...]
    t = jnp.where(jnp.isnan(t), x, t)            # NaN targets contribute zero loss
    absdiff = jnp.abs(x - t)                     # |x - t|; |code_weights| is folded into e_mat
    # Expand per-anchor weights to per-(anchor, code) lanes with a selection matmul:
    # (TA, L) @ (L, W) -> (TA, W), entries weights[a] * |cw[c]|.  The MXU is idle in this
    # memory-bound kernel; HIGHEST precision keeps arbitrary f32 weights exact (no bf16
    # truncation) and costs nothing on the critical path.
    w_exp = jnp.dot(w_ref[0].astype(jnp.float32), e_ref[...],
                    preferred_element_type=jnp.float32,
                    precision=jax.lax.Precision.HIGHEST)
    o_ref[...] = (absdiff * w_exp[None]).astype(o_ref.dtype)


def _choose_anchor_group(A, C, target_lane_width):
    """Pick L (anchors per block row) so W = L*C is a multiple of 128.

    Preference order:
      1. L % 128 == 0 and L | A   -> lane-dense weight blocks, full MXU K, no padding.
      2. any W-aligned L with L | A -> no wrapper-side padding pass (padding ~doubles HBM traffic).
      3. lane-dense L with padding as a last resort.
    """
    base = 128 // math.gcd(C, 128)                       # minimal L with (L*C) % 128 == 0
    max_L = max(base, (target_lane_width // C) // base * base)
    lane_dense_max = (max_L // 128) * 128
    for L in range(lane_dense_max, 0, -128):             # best: lane-dense and divides A
        if A % L == 0:
            return L, False
    for L in range(max_L, 0, -base):                     # next: divides A (weight block may be <128 lanes)
        if A % L == 0:
            return L, False
    return (lane_dense_max if lane_dense_max else max_L), True


def weighted_l1_loss(inputs, targets, code_weights=None, weights=None, *,
                     target_block_bytes=4 << 20,   # ~4 MiB per data stream (review: 2-4 MiB)
                     target_lane_width=1024,       # lanes per block row (multiple of 128)
                     vmem_limit_bytes=None):
    """inputs/targets: (B, A, C); code_weights: (C,) or None; weights: (B, A), (A,) or None."""
    B, A, C = inputs.shape
    if code_weights is None:
        code_weights = jnp.ones((C,), jnp.float32)
    if weights is None:
        weights = jnp.ones((B, A), jnp.float32)
    elif weights.ndim == 1:                        # torch branch: weights.shape[0] == #anchors
        weights = jnp.broadcast_to(weights[None, :], (B, A))

    L, needs_pad = _choose_anchor_group(A, C, target_lane_width)
    W = L * C

    A_pad = A
    if needs_pad:
        # TODO(synk): a tiny second pallas_call over the ragged tail would avoid this extra HBM pass.
        A_pad = pl.cdiv(A, L) * L
        pad = A_pad - A
        inputs = jnp.pad(inputs, ((0, 0), (0, pad), (0, 0)))
        targets = jnp.pad(targets, ((0, 0), (0, pad), (0, 0)))
        weights = jnp.pad(weights, ((0, 0), (0, pad)))
    rows = A_pad // L

    itemsize = jnp.dtype(inputs.dtype).itemsize
    # Anchor-row tile: ~target_block_bytes per data stream, multiple of 8 sublanes.
    ta = max(8, (target_block_bytes // (W * itemsize)) // 8 * 8)
    if ta >= rows:
        ta = rows                                   # full-extent block (legal even if rows % 8 != 0)
    if B == 1 and pl.cdiv(rows, ta) < 2 and rows > 8:
        # Guarantee >= 2 parallel grid steps so both v7x TensorCores get work.
        ta = max(8, (pl.cdiv(rows, 2) + 7) // 8 * 8)
    grid = (B, pl.cdiv(rows, ta))

    # Free, contiguous reshapes (no HBM data movement): (B, A, C) -> (B, rows, L*C).
    x3 = inputs.reshape(B, rows, W)
    t3 = targets.reshape(B, rows, W)
    w3 = weights.reshape(B, rows, L)

    # Selection/expansion matrix with |code_weights| folded in:
    #   e[l, w] = |cw[w % C]|  if  w // C == l  else 0       (constant index_map -> fetched once)
    abs_cw = jnp.abs(jnp.asarray(code_weights, jnp.float32))
    lane = jnp.arange(W, dtype=jnp.int32)
    sel = (lane[None, :] // C) == jnp.arange(L, dtype=jnp.int32)[:, None]
    e_mat = jnp.where(sel, jnp.tile(abs_cw, L)[None, :], 0.0).astype(jnp.float32)

    # VMEM budget: 2x double-buffered (x, t, o) blocks + compact w block + e_mat, plus ~3
    # block-sized f32 elementwise/matmul temps.  Capped so defaults stay well inside v7x's
    # 64 MiB/TC (v5e/v6e have 128 MiB); shrink target_block_bytes rather than raising the cap on v7x.
    if vmem_limit_bytes is None:
        block_bytes = ta * W * itemsize
        est = 2 * (3 * block_bytes + ta * L * 4 + L * W * 4) + 3 * ta * W * 4
        vmem_limit_bytes = int(min(max(est * 5 // 4, 32 << 20), 56 << 20))

    out3 = pl.pallas_call(
        _weighted_l1_kernel,
        out_shape=jax.ShapeDtypeStruct((B, rows, W), inputs.dtype),
        grid_spec=pltpu.PrefetchScalarGridSpec(
            num_scalar_prefetch=0,
            grid=grid,
            in_specs=[
                pl.BlockSpec((L, W), lambda b, j: (0, 0)),          # expansion matrix (shared, no re-DMA)
                pl.BlockSpec((1, ta, W), lambda b, j: (b, j, 0)),   # inputs  (lane-dense)
                pl.BlockSpec((1, ta, W), lambda b, j: (b, j, 0)),   # targets (lane-dense)
                pl.BlockSpec((1, ta, L), lambda b, j: (b, j, 0)),   # anchor weights (compact, 1/C traffic)
            ],
            out_specs=pl.BlockSpec((1, ta, W), lambda b, j: (b, j, 0)),
        ),
        compiler_params=pltpu.CompilerParams(
            dimension_semantics=("parallel", "parallel"),   # fully elementwise per block
            vmem_limit_bytes=vmem_limit_bytes,
        ),
    )(e_mat, x3, t3, w3)

    out = out3.reshape(B, A_pad, C)
    if A_pad != A:
        out = out[:, :A, :]
    return out


if __name__ == "__main__":
    B, A, C = 2, 2048, 8   # (batch, #anchors, #codes): small, but enough for a multi-block grid

    key = jax.random.PRNGKey(0)
    k1, k2, k3 = jax.random.split(key, 3)
    inputs = jax.random.normal(k1, (B, A, C), dtype=jnp.float32)
    targets = jax.random.normal(k2, (B, A, C), dtype=jnp.float32)
    # Exercise the torch.where(isnan(target), input, target) path.
    targets = targets.at[0, 0, 0].set(jnp.nan)
    targets = targets.at[1, 137, 3].set(jnp.nan)
    # Arbitrary (non-bf16-exact) f32 weights: HIGHEST-precision expansion must handle these.
    weights = jax.random.uniform(k3, (B, A), dtype=jnp.float32)
    # Deterministic code-wise weights (module __init__ takes a float list of length C).
    code_weights = (jnp.arange(C, dtype=jnp.float32) + 1.0) / C

    out = weighted_l1_loss(inputs, targets, code_weights, weights,
                           target_block_bytes=32 * 1024)   # small blocks -> (2, 2) grid at demo size
    out = jax.block_until_ready(out)

    # Pure-JAX reference check.
    tgt_fixed = jnp.where(jnp.isnan(targets), inputs, targets)
    ref = jnp.abs((inputs - tgt_fixed) * code_weights[None, None, :]) * weights[:, :, None]
    assert out.shape == (B, A, C)
    assert bool(jnp.all(jnp.isfinite(out)))
    assert jnp.allclose(out, ref, atol=1e-6, rtol=1e-5), float(jnp.max(jnp.abs(out - ref)))

    print("KERNEL_OK")
</pallas_src>

<mosaic_0001>
module attributes {stable_mosaic.version = 11 : i64} {
  func.func @_weighted_l1_kernel(%arg0: i32, %arg1: i32, %arg2: memref<128x1024xf32, #tpu.memory_space<vmem>>, %arg3: memref<1x8x1024xf32, #tpu.memory_space<vmem>>, %arg4: memref<1x8x1024xf32, #tpu.memory_space<vmem>>, %arg5: memref<1x8x128xf32, #tpu.memory_space<vmem>>, %arg6: memref<1x8x1024xf32, #tpu.memory_space<vmem>>) attributes {dimension_semantics = [#tpu.dimension_semantics<parallel>, #tpu.dimension_semantics<parallel>], iteration_bounds = array<i64: 2, 2>, scalar_prefetch = 0 : i64, scratch_operands = 0 : i64, tpu.core_type = #tpu.core_type<tc>, window_params = [{pipeline_mode = #tpu.pipeline_mode<synchronous>, transform_indices = @transform_0, window_bounds = array<i64: 128, 1024>}, {transform_indices = @transform_1, window_bounds = array<i64: 1, 8, 1024>}, {transform_indices = @transform_2, window_bounds = array<i64: 1, 8, 1024>}, {transform_indices = @transform_3, window_bounds = array<i64: 1, 8, 128>}, {transform_indices = @transform_4, window_bounds = array<i64: 1, 8, 1024>}]} {
    %c0 = arith.constant 0 : index
    %c0_0 = arith.constant 0 : index
    %c0_1 = arith.constant 0 : index
    %0 = vector.load %arg3[%c0, %c0_0, %c0_1] : memref<1x8x1024xf32, #tpu.memory_space<vmem>>, vector<1x8x1024xf32>
    %c0_2 = arith.constant 0 : index
    %c0_3 = arith.constant 0 : index
    %c0_4 = arith.constant 0 : index
    %1 = vector.load %arg4[%c0_2, %c0_3, %c0_4] : memref<1x8x1024xf32, #tpu.memory_space<vmem>>, vector<1x8x1024xf32>
    %2 = arith.cmpf one, %1, %1 : vector<1x8x1024xf32>
    %3 = arith.select %2, %0, %1 : vector<1x8x1024xi1>, vector<1x8x1024xf32>
    %4 = arith.subf %0, %3 : vector<1x8x1024xf32>
    %5 = math.absf %4 : vector<1x8x1024xf32>
    %c0_5 = arith.constant 0 : index
    %c0_6 = arith.constant 0 : index
    %c0_7 = arith.constant 0 : index
    %6 = vector.load %arg5[%c0_5, %c0_6, %c0_7] : memref<1x8x128xf32, #tpu.memory_space<vmem>>, vector<1x8x128xf32>
    %7 = vector.shape_cast %6 : vector<1x8x128xf32> to vector<8x128xf32>
    %c0_8 = arith.constant 0 : index
    %c0_9 = arith.constant 0 : index
    %8 = vector.load %arg2[%c0_8, %c0_9] : memref<128x1024xf32, #tpu.memory_space<vmem>>, vector<128x1024xf32>
    %cst = arith.constant dense<0.000000e+00> : vector<8x1024xf32>
    %9 = tpu.matmul %7, %8, %cst {dimension_numbers = #tpu.dot_dimension_numbers<[1], [0], [0], [1], [0, 0, 1, 1], [], []>, precision = #tpu.contract_precision<fp32>} : vector<8x128xf32>, vector<128x1024xf32>, vector<8x1024xf32> -> vector<8x1024xf32>
    %10 = vector.shape_cast %9 : vector<8x1024xf32> to vector<1x8x1024xf32>
    %11 = arith.mulf %5, %10 : vector<1x8x1024xf32>
    %c0_10 = arith.constant 0 : index
    %c0_11 = arith.constant 0 : index
    %c0_12 = arith.constant 0 : index
    %12 = vector.load %arg6[%c0_10, %c0_11, %c0_12] : memref<1x8x1024xf32, #tpu.memory_space<vmem>>, vector<1x8x1024xf32>
    tpu.vector_store %arg6[%c0_10, %c0_11, %c0_12], %11 {strides = array<i32>} : memref<1x8x1024xf32, #tpu.memory_space<vmem>>, vector<1x8x1024xf32>,
    return
  }
  func.func @transform_0(%arg0: i32, %arg1: i32) -> (i32, i32) {
    %c0_i32 = arith.constant 0 : i32
    %c0_i32_0 = arith.constant 0 : i32
    %c0_i32_1 = arith.constant 0 : i32
    return %c0_i32, %c0_i32_0 : i32, i32
  }
  func.func @transform_1(%arg0: i32, %arg1: i32) -> (i32, i32, i32) {
    %c0_i32 = arith.constant 0 : i32
    %c0_i32_0 = arith.constant 0 : i32
    return %arg0, %arg1, %c0_i32 : i32, i32, i32
  }
  func.func @transform_2(%arg0: i32, %arg1: i32) -> (i32, i32, i32) {
    %c0_i32 = arith.constant 0 : i32
    %c0_i32_0 = arith.constant 0 : i32
    return %arg0, %arg1, %c0_i32 : i32, i32, i32
  }
  func.func @transform_3(%arg0: i32, %arg1: i32) -> (i32, i32, i32) {
    %c0_i32 = arith.constant 0 : i32
    %c0_i32_0 = arith.constant 0 : i32
    return %arg0, %arg1, %c0_i32 : i32, i32, i32
  }
  func.func @transform_4(%arg0: i32, %arg1: i32) -> (i32, i32, i32) {
    %c0_i32 = arith.constant 0 : i32
    %c0_i32_0 = arith.constant 0 : i32
    return %arg0, %arg1, %c0_i32 : i32, i32, i32
  }
}

</mosaic_0001>

<bundles_post_ra>
// kernel: tpu_custom_call.1
= control target key start
LH: loop header
LB: loop body
LE: loop exit
PB: predicated region body
PF: predicated region fallthrough
CT: control target
= control target key end

     0   :  { %s6989_s0 = inlined_call_operand.hbm [shape: f32[128,1024], index: 0, kind: input, shape index: {}]   ;;  %s6990_s1 = inlined_call_operand.hbm [shape: f32[2,16,1024], index: 1, kind: input, shape index: {}]   ;;  %s6991_s2 = inlined_call_operand.hbm [shape: f32[2,16,1024], index: 2, kind: input, shape index: {}]   ;;  %s6992_s3 = inlined_call_operand.hbm [shape: f32[2,16,128], index: 3, kind: input, shape index: {}]   ;;  %s6993_s4 = inlined_call_operand.hbm [shape: f32[2,16,1024], index: 4, kind: output, shape index: {}]  }
   0x1   :  { %7245 = sst [smem:[#allocation49_spill]] %s6990_s1 }
   0x2   :  { %7246 = sst [smem:[#allocation50_spill]] %s6991_s2 }
   0x3   :  { %9 = vsyncpa [#allocation3], 0 }
   0x4   :  { %10 = vsyncpa [#allocation6], 0 }
   0x5   :  { %12 = vsyncpa [#allocation6 + $0x1], 0 }
   0x6   :  { %13 = vsyncpa [#allocation9], 0 }
   0x7   :  { %15 = vsyncpa [#allocation9 + $0x1], 0 }
   0x8   :  { %16 = vsyncpa [#allocation4], 0 }
   0x9   :  { %18 = vsyncpa [#allocation4 + $0x1], 0  ;;  %s4483_s15 = smov 0   ;;  %s4485_s16 = smov 0  }
   0xa   :  { %s4487_s17 = smov 0   ;;  %s4489_s18 = smov 0  }
   0xb   :  { %s4491_s19 = smov 0   ;;  %s4493_s20 = smov 0  }
   0xc   :  { %s4495_s21 = smov 0   ;;  %s4497_s22 = smov 0  }
   0xd LB: > { %7247 = sst [smem:[#allocation15_spill]] %s4420_s15  ;;  %s33_s23 = sadd.s32 1, %s4440_s20  ;;  %s4448_s22 = sphi %s4497_s22, %s24_s22   ;;  %s4444_s21 = sphi %s4495_s21, %s7672_s21   ;;  %s4440_s20 = sphi %s4493_s20, %s7671_s20   ;;  %s4436_s19 = sphi %s4491_s19, %s7670_s19   ;;  %s4432_s18 = sphi %s4489_s18, %s7669_s18   ;;  %s4428_s17 = sphi %s4487_s17, %s7664_s17   ;;  %s4424_s16 = sphi %s4485_s16, %s7668_s16   ;;  %s4420_s15 = sphi %s4483_s15, %s7667_s15  }
   0xe   : > { %7248 = sst [smem:[#allocation16_spill]] %s4428_s17  ;;  %s36_s24 = sadd.s32 1, %s4444_s21 }
   0xf   : > { %7249 = sst [smem:[#allocation17_spill]] %s4448_s22  ;;  %p34_p0 = scmp.ge.s32.totalorder %s33_s23, 2 }
  0x10   : > { %s66_s25 = sadd.s32 1, %s4428_s17  ;;  %p73_p1 = scmp.ne.s32.totalorder %s4428_s17, %s4424_s16 }
  0x11   : > { %p74_p2 = scmp.eq.s32.totalorder %s4448_s22, 0  ;;  %s7674_s23 = smov (%p34_p0, %s33_s23), 0 }
  0x12   : > { %7250 = sst [smem:[#allocation18_spill]] %s7674_s23  ;;  %s7676_s24 = smov (!%p34_p0, %s36_s24), %s4444_s21 }
  0x13   : > { %s62_s26 = ssub.s32 %s4440_s20, %s7674_s23  ;;  %p4537_p3 = por %p74_p2, %p73_p1 }
  0x14   : > { %p38_p4 = scmp.ge.s32.totalorder %s7676_s24, 2  ;;  %p4163_p5 = scmp.lt.s32.totalorder %s4448_s22, 4 }
  0x15   : > { %s200_s28 = sand.u32 1, %s4448_s22   ;;  %s4546_s29 = sand.u32 1, %s4428_s17  }
  0x16   : > { %s7678_s24 = smov (%p38_p4, %s7676_s24), 0  ;;  %s4109_s5 = sshll.u32 %s4546_s29, 6 }
  0x17   : > { %7252 = sst [smem:[#allocation19_spill]] %s7678_s24  ;;  %s61_s30 = ssub.s32 %s4444_s21, %s7678_s24 }
  0x18   : > { %s63_s6 = sor.u32 %s62_s26, %s61_s30  ;;  %s4110_s7 = sshll.u32 %s4440_s20, 3 }
  0x19   : > { %p64_p6 = scmp.eq.s32.totalorder %s63_s6, 0  ;;  %s4111_s8 = sshll.u32 %s4444_s21, 4 }
  0x1a   : > { %s204_s9 = scalar_lea.vmem [#allocation5], %s4109_s5  ;;  %s210_s12 = sadd.s32 %s4111_s8, %s4110_s7 }
  0x1b   : > { %s214_s10 = sshll.u32 %s204_s9, 4  ;;  %s4112_s13 = sshll.u32 %s210_s12, 7  ;;  %s215_s10 = int_to_ptr.vmem [resolvable:$true] %s214_s10 }
  0x1c   : > { %s4556_s11 = scalar_select %p64_p6, %s4428_s17, %s66_s25  }
  0x1d   : > { %p4562_p7 = pnand %p4163_p5, %p4537_p3  ;;  %s7255_s1 = sld [smem:[#allocation49_spill]] }
  0x1e   : > { %7253 = sst [smem:[#allocation20_spill]] %s4556_s11  ;;  %s4574_s7 = scalar_lea.sflag [#allocation6], %s200_s28 }
  0x1f   : > { %s7256_s2 = sld [smem:[#allocation50_spill]]  ;;  %p6998_p8 = pneg %p4562_p7 }
  0x20   : > { %s4247_s27 = scalar_lea.vmem %s215_s10, 1024  ;;  %s4450_s8 = smov [#allocation5]  }
  0x21   : > { %p4248_p9 = scmp.ne.s32.totalorder %s215_s10, %s4247_s27  ;;  %s4252_s23 = sshll.u32 %s4450_s8, 4  ;;  %s4253_s23 = int_to_ptr.vmem [resolvable:$false] %s4252_s23 }
  0x22   : > { %s4254_s24 = scalar_lea.vmem %s4253_s23, 2048  ;;  %p4255_p12 = scmp.lt.s32.totalorder %s215_s10, %s4253_s23 }
  0x23   : > { %s212_s26 = scalar_lea.hbm %s7255_s1, %s4112_s13  ;;  %p4250_p10 = pnand %p4248_p9, %p6998_p8 }
  0x24   : > { %p4256_p13 = scmp.lt.s32.totalorder %s4254_s24, %s4247_s27 }
  0x25   : > { %s4572_s25 = scalar_lea.hbm %s7256_s2, %s4112_s13  ;;  %p4251_p11 = pneg %p4250_p10 }
  0x26   : > { %p4257_p0 = por %p4256_p13, %p4255_p12 }
  0x28   : > { %p4258_p2 = pnand %p4257_p0, %p4251_p11 }
  0x2a   : > { %4261 = shalt.err (!%p4258_p2)
}
  0x2b   : > { %4151 = dma.hbm_to_vmem [thread:$0]  (!%p4562_p7), %s212_s26, 1024, %s215_s10, %s4574_s7  }
  0x2c   : > { %s4585_s28 = sadd.s32 4294967295, %s4448_s22   ;;  %s4105_s9 = sadd.s32 4294967294, %s4448_s22  }
  0x2d   : > { %p79_p3 = scmp.ne.s32.totalorder %s4424_s16, %s4420_s15  ;;  %p6997_p4 = scmp.eq.s32.totalorder %s4585_s28, 0 }
  0x2e   : > { %p161_p5 = scmp.eq.s32.totalorder %s4585_s28, 3  ;;  %p167_p6 = scmp.eq.s32.totalorder %s4105_s9, 3 }
  0x2f   : > { %p4594_p9 = por %p6997_p4, %p79_p3  ;;  %p4106_p10 = scmp.ge.s32.totalorder %s4448_s22, 1 }
  0x30   : > { %p4602_p11 = por %p161_p5, %p73_p1  ;;  %p4606_p12 = por %p167_p6, %p79_p3 }
  0x31   : > { %p174_p13 = scmp.lt.s32.totalorder %s4448_s22, 5  ;;  %s4451_s30 = smov [#allocation2]  }
  0x32   : > { %s7258_s10 = scalar_select %p4602_p11, 1, 0 }
  0x33   : > { %s7259_s13 = scalar_select %p4606_p12, 1, 0 }
  0x34   : > { %p4611_p0 = pnand %p4106_p10, %p174_p13  ;;  %s186_s6 = sshll.u32 %s4451_s30, 4  ;;  %s4615_s6 = int_to_ptr.vmem [resolvable:$true] %s186_s6 }
  0x35   : > { %7260 = sst [smem:[#allocation21_spill]] %s7259_s13  ;;  %s225_s27 = scalar_lea.vmem [#allocation7], %s4109_s5 }
  0x36   : > { %p4144_p2 = pneg %p4611_p0  ;;  %s235_s8 = sshll.u32 %s225_s27, 4  ;;  %s236_s8 = int_to_ptr.vmem [resolvable:$true] %s235_s8 }
  0x37   : > { %s4117_s24 = sshll.u32 %s4546_s29, 3  ;;  %s4275_s9 = scalar_lea.vmem %s236_s8, 1024 }
  0x38   : > { %p4623_p1 = pnand %p4144_p2, %p6997_p4  ;;  %p4276_p3 = scmp.ne.s32.totalorder %s236_s8, %s4275_s9 }
  0x39   : > { %s4452_s30 = smov [#allocation7]  }
  0x3a   : > { %p4278_p5 = pnand %p4276_p3, %p6998_p8  ;;  %s4280_s1 = sshll.u32 %s4452_s30, 4  ;;  %s4281_s1 = int_to_ptr.vmem [resolvable:$false] %s4280_s1 }
  0x3b   : > { %s4282_s2 = scalar_lea.vmem %s4281_s1, 2048  ;;  %p4283_p10 = scmp.lt.s32.totalorder %s236_s8, %s4281_s1 }
  0x3c   : > { %p4279_p6 = pneg %p4278_p5  ;;  %p4284_p13 = scmp.lt.s32.totalorder %s4282_s2, %s4275_s9 }
  0x3e   : > { %p4285_p12 = por %p4284_p13, %p4283_p10 }
  0x40   : > { %p4286_p11 = pnand %p4285_p12, %p4279_p6 }
  0x42   : > { %4289 = shalt.err (!%p4286_p11)
}
  0x43   : > { %4154 = dma.hbm_to_vmem [thread:$0]  (!%p4562_p7), %s4572_s25, 1024, %s236_s8, %s4574_s7  }
  0x44   : > { %p4292_p2 = pneg %p4623_p1  ;;  %s4301_s5 = scalar_lea.vmem %s4615_s6, 16384 }
  0x45   : > { %p4302_p3 = scmp.ne.s32.totalorder %s4615_s6, %s4301_s5  ;;  %p4309_p8 = scmp.lt.s32.totalorder %s4615_s6, %s4615_s6 }
  0x46   : > { %p4310_p10 = scmp.lt.s32.totalorder %s4301_s5, %s4301_s5 }
  0x47   : > { %p4304_p5 = pnand %p4302_p3, %p4292_p2 }
  0x48   : > { %p4311_p12 = por %p4310_p10, %p4309_p8 }
  0x49   : > { %p4305_p4 = pneg %p4304_p5 }
  0x4b   : > { %p4312_p11 = pnand %p4311_p12, %p4305_p4 }
  0x4d   : > { %4315 = shalt.err (!%p4312_p11)
}
  0x4e   : > { %s4453_s1 = smov 1024   ;;  %s4454_s2 = smov 64  }
  0x4f   : > { %4147 = dma.hbm_to_vmem [thread:$0]  (!%p4623_p1), %s6989_s0, 16384, %s4615_s6, [#allocation3], %s4453_s1, %s4453_s1, %s4454_s2  }
  0x50   : > { %s4118_s27 = sshll.u32 %s4444_s21, 1  ;;  %s246_s8 = scalar_lea.vmem [#allocation8], %s4117_s24 }
  0x51   : > { %s255_s9 = sshll.u32 %s246_s8, 4  ;;  %s251_s30 = sadd.s32 %s4440_s20, %s4118_s27  ;;  %s256_s9 = int_to_ptr.vmem [resolvable:$true] %s255_s9 }
  0x52   : > { %s4119_s5 = sshll.u32 %s251_s30, 7  ;;  %s243_s15 = scalar_lea.sflag [#allocation9], %s4546_s29 }
  0x53   : > { %s253_s13 = scalar_lea.hbm %s6992_s3, %s4119_s5  ;;  %s4329_s22 = scalar_lea.vmem %s256_s9, 128 }
  0x54   : > { %p4330_p8 = scmp.ne.s32.totalorder %s256_s9, %s4329_s22  ;;  %p7263_p4 = pneg %p4562_p7 }
  0x55   : > { %s4455_s23 = smov [#allocation8]  }
  0x56   : > { %p4332_p6 = pnand %p4330_p8, %p7263_p4  ;;  %s4334_s6 = sshll.u32 %s4455_s23, 4  ;;  %s4335_s6 = int_to_ptr.vmem [resolvable:$false] %s4334_s6 }
  0x57   : > { %s4336_s1 = scalar_lea.vmem %s4335_s6, 256  ;;  %p4337_p1 = scmp.lt.s32.totalorder %s256_s9, %s4335_s6 }
  0x58   : > { %p4333_p13 = pneg %p4332_p6  ;;  %p4338_p2 = scmp.lt.s32.totalorder %s4336_s1, %s4329_s22 }
  0x5a   : > { %p4339_p3 = por %p4338_p2, %p4337_p1 }
  0x5c   : > { %p4340_p5 = pnand %p4339_p3, %p4333_p13 }
  0x5e   : > { %4343 = shalt.err (!%p4340_p5)
}
  0x5f   : > { %4157 = dma.hbm_to_vmem [thread:$0]  (!%p4562_p7), %s253_s13, 128, %s256_s9, %s243_s15  }
  0x60   : > { %264 = sbr.rel (%p4611_p0) target bundleno = 747 (0x2eb), region = 36 }
  0x65   : > { %p7264_p10 = scmp.eq.s32.totalorder %s4585_s28, 0 }
  0x67   : > { %4403 = dma.done.wait (%p7264_p10), [#allocation3], 16384   ;;  %p7265_p12 = pmov %p7264_p10 }
  0x68   : > { %s270_s17 = sand.u32 1, %s4585_s28   ;;  %s4668_s22 = sand.u32 1, %s4424_s16  }
  0x69   : > { %4405 = vsyncadd (%p7265_p12), [#allocation3], 4294950912  ;;  %s4671_s29 = sshll.u32 %s4668_s22, 6  ;;  %s271_s15 = scalar_lea.sflag [#allocation6], %s270_s17 }
  0x6a   : > { %s4674_s11 = scalar_lea.vmem [#allocation5], %s4671_s29 }
  0x6b   : > { %4407 = dma.done.wait (%p4594_p9), %s271_s15, 2048  }
  0x6c   : > { %4409 = vsyncadd (%p4594_p9), %s271_s15, 4294965248  ;;  %s4124_s14 = sshll.u32 %s4668_s22, 3  ;;  %s4682_s28 = scalar_lea.vmem [#allocation7], %s4671_s29 }
  0x6d   : > { %s289_s13 = scalar_lea.sflag [#allocation9], %s4668_s22  ;;  %s4685_s26 = scalar_lea.vmem [#allocation8], %s4124_s14 }
  0x6e   : > { %4411 = dma.done.wait (%p4594_p9), %s289_s13, 128  }
  0x6f   : > { %4413 = vsyncadd (%p4594_p9), %s289_s13, 4294967168  ;;  %v7018_v0 = vmov 0.0   ;;  %v497_v1 = vld [vmem:[#allocation2 + $0x3c8] sm:$0xff]  ;;  %v496_v2 = vld [vmem:[#allocation2 + $0x3c0] sm:$0xff]  ;;  %s6475_s12 = scalar_lea.vmem [#allocation10], %s4671_s29  ;;  %s4127_s24 = sshll.u32 %s4432_s18, 3 }
  0x70   : > { %600 = vmatprep.mubr.f32.mxu0 %v7018_v0  ;;  %836 = vmatprep.mubr.f32.mxu1 %v7018_v0  ;;  %v489_v3 = vld [vmem:[#allocation2 + $0x388] sm:$0xff]  ;;  %v4693_v4 = vand.u32 4294901760, %v497_v1  ;;  %v4695_v5 = vand.u32 4294901760, %v496_v2  ;;  %v488_v7 = vld [vmem:[#allocation2 + $0x380] sm:$0xff]  ;;  %s4128_s2 = sshll.u32 %s4436_s19, 4  ;;  %s3957_s7 = sshll.u32 %s6475_s12, 4  ;;  %s3958_s7 = int_to_ptr.vmem [resolvable:$true] %s3957_s7 }
  0x71   : > { %v4697_v6 = vand.u32 4294901760, %v489_v3  ;;  %v481_v8 = vld [vmem:[#allocation2 + $0x348] sm:$0xff]  ;;  %v480_v9 = vld [vmem:[#allocation2 + $0x340] sm:$0xff]  ;;  %v4699_v10 = vand.u32 4294901760, %v488_v7  ;;  %s3953_s25 = sadd.s32 %s4128_s2, %s4127_s24  ;;  %s3941_s9 = scalar_lea.sflag [#allocation4], %s4668_s22 }
  0x72   : > { %v4701_v11 = vand.u32 4294901760, %v481_v8  ;;  %v4703_v12 = vand.u32 4294901760, %v480_v9  ;;  %v473_v13 = vld [vmem:[#allocation2 + $0x308] sm:$0xff]  ;;  %v472_v14 = vld [vmem:[#allocation2 + $0x300] sm:$0xff]  ;;  %505 = vmatprep.subr.mxu0 %v4693_v4  ;;  %v4713_v19 = vsub.f32 %v497_v1, %v4693_v4  ;;  %v4726_v24 = vsub.f32 %v496_v2, %v4695_v5  ;;  %s4129_s18 = sshll.u32 %s3953_s25, 7  ;;  %s4344_s30 = scalar_lea.vmem %s3958_s7, 1024 }
  0x73   : > { %v465_v15 = vld [vmem:[#allocation2 + $0x2c8] sm:$0xff]  ;;  %v4706_v16 = vand.u32 4294901760, %v473_v13  ;;  %v4708_v17 = vand.u32 4294901760, %v472_v14  ;;  %v4715_v20 = vld [vmem:[#allocation2 + $0x2c0] sm:$0xff]  ;;  %507 = vmatpush1.msra.mxu0 %v4695_v5  ;;  %v4732_v26 = vsub.f32 %v489_v3, %v4697_v6  ;;  %v4746_v32 = vsub.f32 %v488_v7, %v4699_v10  ;;  %s3955_s8 = scalar_lea.hbm %s6993_s4, %s4129_s18  ;;  %p4345_p7 = scmp.ne.s32.totalorder %s3958_s7, %s4344_s30 }
  0x74   : > { %v4710_v18 = vand.u32 4294901760, %v465_v15  ;;  %v4717_v21 = vld [vmem:[#allocation2 + $0x288] sm:$0xff]  ;;  %v4719_v22 = vld [vmem:[#allocation2 + $0x280] sm:$0xff]  ;;  %v4723_v23 = vand.u32 4294901760, %v4715_v20  ;;  %509 = vmatprep.subr.mxu0 %v4697_v6  ;;  %v7016_v30 = vand.u32 4294901760, %v4713_v19  ;;  %v7015_v34 = vand.u32 4294901760, %v4726_v24 }
  0x75   : > { %v4729_v25 = vand.u32 4294901760, %v4717_v21  ;;  %v4734_v27 = vld [vmem:[#allocation2 + $0x248] sm:$0xff]  ;;  %v4736_v28 = vld [vmem:[#allocation2 + $0x240] sm:$0xff]  ;;  %v4743_v31 = vand.u32 4294901760, %v4719_v22  ;;  %511 = vmatpush1.msra.mxu0 %v4699_v10  ;;  %v7013_v35 = vand.u32 4294901760, %v4732_v26  ;;  %v4755_v36 = vsub.f32 %v481_v8, %v4701_v11  ;;  %p7658_p9 = scmp.ne.s32.totalorder %s7258_s10, 0 }
  0x76   : > { %v4738_v29 = vld [vmem:[#allocation2 + $0x208] sm:$0xff]  ;;  %v4749_v33 = vand.u32 4294901760, %v4734_v27  ;;  %v4758_v37 = vand.u32 4294901760, %v4736_v28  ;;  %v4760_v38 = vld [vmem:[#allocation2 + $0x200] sm:$0xff]  ;;  %513 = vmatprep.subr.mxu0 %v4701_v11  ;;  %v615_v39 = vsub.f32 %v4713_v19, %v7016_v30  ;;  %v7011_v40 = vand.u32 4294901760, %v4746_v32  ;;  %s4457_s5 = smov [#allocation10]  }
  0x77   : > { %7266 = vst [vmem:[#allocation22_spill] sm:$0xff] %v4743_v31  ;;  %v4768_v41 = vsub.f32 %v480_v9, %v4703_v12  ;;  %v4771_v42 = vand.u32 4294901760, %v4738_v29  ;;  %515 = vmatpush1.msra.mxu0 %v4703_v12  ;;  %v621_v43 = vsub.f32 %v4726_v24, %v7015_v34  ;;  %v627_v44 = vsub.f32 %v4732_v26, %v7013_v35  ;;  %v4784_v47 = vld [vmem:[#allocation2 + $0x1c8] sm:$0xff]  ;;  %v4794_v52 = vld [vmem:[#allocation2 + $0x1c0] sm:$0xff]  ;;  %p4346_p0 = pnand %p4345_p7, %p7658_p9  ;;  %s4348_s23 = sshll.u32 %s4457_s5, 4  ;;  %s4349_s23 = int_to_ptr.vmem [resolvable:$false] %s4348_s23 }
  0x78   : > { %7267 = vst [vmem:[#allocation23_spill] sm:$0xff] %v4749_v33  ;;  %7268 = vst [vmem:[#allocation24_spill] sm:$0xff] %v4758_v37  ;;  %v7010_v45 = vand.u32 4294901760, %v4755_v36  ;;  %v4782_v46 = vsub.f32 %v473_v13, %v4706_v16  ;;  %517 = vmatprep.subr.mxu0 %v4706_v16  ;;  %v616_v48 = vand.u32 4294901760, %v615_v39  ;;  %v633_v49 = vsub.f32 %v4746_v32, %v7011_v40  ;;  %v4801_v57 = vld [vmem:[#allocation2 + $0x188] sm:$0xff]  ;;  %v4813_v62 = vld [vmem:[#allocation2 + $0x180] sm:$0xff]  ;;  %p4351_p8 = scmp.lt.s32.totalorder %s3958_s7, %s4349_s23 }
  0x79   : > { %7269 = vst [vmem:[#allocation25_spill] sm:$0xff] %v4771_v42  ;;  %v7008_v50 = vand.u32 4294901760, %v4768_v41  ;;  %v4792_v51 = vand.u32 4294901760, %v4760_v38  ;;  %519 = vmatpush1.msra.mxu0 %v4708_v17  ;;  %v622_v53 = vand.u32 4294901760, %v621_v43  ;;  %v628_v54 = vand.u32 4294901760, %v627_v44  ;;  %v4825_v7 = vld [vmem:[#allocation2 + $0x148] sm:$0xff]  ;;  %p4347_p11 = pneg %p4346_p0 }
  0x7a   : > { %v639_v55 = vsub.f32 %v4755_v36, %v7010_v45  ;;  %v7006_v56 = vand.u32 4294901760, %v4782_v46  ;;  %521 = vmatprep.subr.mxu0 %v4710_v18  ;;  %617 = vmatprep.subr.mxu1 %v616_v48  ;;  %v634_v58 = vand.u32 4294901760, %v633_v49  ;;  %v4808_v60 = vsub.f32 %v472_v14, %v4708_v17  ;;  %v4903_v45 = vld [vmem:[#allocation2 + $0xc0] sm:$0xff]  ;;  %v4916_v35 = vld [vmem:[#allocation2 + $0x88] sm:$0xff]  ;;  %s4350_s6 = scalar_lea.vmem %s4349_s23, 2048 }
  0x7b   : > { %7270 = vst [vmem:[#allocation26_spill] sm:$0xff] %v4792_v51  ;;  %v645_v59 = vsub.f32 %v4768_v41, %v7008_v50  ;;  %v4811_v61 = vand.u32 4294901760, %v4784_v47  ;;  %523 = vmatpush1.msra.mxu0 %v4723_v23  ;;  %623 = vmatpush1.msra.mxu1 %v622_v53  ;;  %v4820_v2 = vsub.f32 %v465_v15, %v4710_v18  ;;  %v4823_v3 = vand.u32 4294901760, %v4794_v52  ;;  %v4836_v15 = vld [vmem:[#allocation2 + $0x140] sm:$0xff]  ;;  %p4352_p4 = scmp.lt.s32.totalorder %s4350_s6, %s4344_s30 }
  0x7c   : > { %v640_v63 = vand.u32 4294901760, %v639_v55  ;;  %v651_v1 = vsub.f32 %v4782_v46, %v7006_v56  ;;  %525 = vmatprep.subr.mxu0 %v4729_v25  ;;  %629 = vmatprep.subr.mxu1 %v628_v54  ;;  %v7005_v9 = vand.u32 4294901760, %v4808_v60  ;;  %v4831_v13 = vsub.f32 %v4715_v20, %v4723_v23  ;;  %v4926_v34 = vld [vmem:[#allocation2 + $0x80] sm:$0xff] }
  0x7d   : > { %7271 = vst [vmem:[#allocation27_spill] sm:$0xff] %v4811_v61  ;;  %7272 = vst [vmem:[#allocation28_spill] sm:$0xff] %v4823_v3  ;;  %v646_v8 = vand.u32 4294901760, %v645_v59  ;;  %v4834_v14 = vand.u32 4294901760, %v4801_v57  ;;  %527 = vmatpush1.msra.mxu0 %v4743_v31  ;;  %635 = vmatpush1.msra.mxu1 %v634_v58  ;;  %v7004_v43 = vand.u32 4294901760, %v4820_v2  ;;  %v4842_v44 = vsub.f32 %v4717_v21, %v4729_v25  ;;  %v4859_v21 = vld [vmem:[#allocation2 + $0x108] sm:$0xff]  ;;  %p4353_p6 = por %p4352_p4, %p4351_p8 }
  0x7e   : > { %v652_v39 = vand.u32 4294901760, %v651_v1  ;;  %v4845_v48 = vand.u32 4294901760, %v4813_v62  ;;  %529 = vmatprep.subr.mxu0 %v4749_v33  ;;  %641 = vmatprep.subr.mxu1 %v640_v63  ;;  %v657_v20 = vsub.f32 %v4808_v60, %v7005_v9  ;;  %v7007_v49 = vand.u32 4294901760, %v4831_v13  ;;  %v4882_v9 = vld [vmem:[#allocation2 + $0x100] sm:$0xff] }
  0x7f   : > { %7273 = vst [vmem:[#allocation29_spill] sm:$0xff] %v4834_v14  ;;  %v4854_v53 = vsub.f32 %v4719_v22, %v4743_v31  ;;  %v4857_v54 = vand.u32 4294901760, %v4825_v7  ;;  %531 = vmatpush1.msra.mxu0 %v4758_v37  ;;  %647 = vmatpush1.msra.mxu1 %v646_v8  ;;  %v663_v55 = vsub.f32 %v4820_v2, %v7004_v43  ;;  %v7009_v58 = vand.u32 4294901760, %v4842_v44  ;;  %p4354_p13 = pnand %p4353_p6, %p4347_p11 }
  0x80   : > { %7274 = vst [vmem:[#allocation30_spill] sm:$0xff] %v4845_v48  ;;  %v4868_v59 = vsub.f32 %v4734_v27, %v4749_v33  ;;  %v4871_v22 = vand.u32 4294901760, %v4836_v15  ;;  %533 = vmatprep.subr.mxu0 %v4771_v42  ;;  %653 = vmatprep.subr.mxu1 %v652_v39  ;;  %v658_v63 = vand.u32 4294901760, %v657_v20  ;;  %v669_v1 = vsub.f32 %v4831_v13, %v7007_v49  ;;  %v4892_v49 = vld [vmem:[#allocation2 + $0xc8] sm:$0xff] }
  0x81   : > { %7275 = vst [vmem:[#allocation31_spill] sm:$0xff] %v4857_v54  ;;  %v7012_v8 = vand.u32 4294901760, %v4854_v53  ;;  %v4880_v43 = vsub.f32 %v4736_v28, %v4758_v37  ;;  %535 = vmatpush1.msra.mxu0 %v4792_v51  ;;  %v664_v27 = vand.u32 4294901760, %v663_v55  ;;  %v675_v39 = vsub.f32 %v4842_v44, %v7009_v58  ;;  %v375_v33 = vld [vmem:[%s4685_s26] sm:$0xff] }
  0x82   : > { %7276 = vst [vmem:[#allocation32_spill] sm:$0xff] %v4871_v22  ;;  %v7014_v20 = vand.u32 4294901760, %v4868_v59  ;;  %v4890_v56 = vand.u32 4294901760, %v4859_v21  ;;  %659 = vmatpush1.msra.mxu1 %v658_v63  ;;  %537 = vmatprep.subr.mxu0 %v4811_v61  ;;  %v670_v28 = vand.u32 4294901760, %v669_v1  ;;  %v4901_v58 = vsub.f32 %v4738_v29, %v4771_v42 }
  0x83   : > { %v681_v50 = vsub.f32 %v4854_v53, %v7012_v8  ;;  %v7017_v55 = vand.u32 4294901760, %v4880_v43  ;;  %665 = vmatprep.subr.mxu1 %v664_v27  ;;  %539 = vmatpush1.msra.mxu0 %v4823_v3  ;;  %v676_v40 = vand.u32 4294901760, %v675_v39  ;;  %v4910_v1 = vand.u32 4294901760, %v4882_v9 }
  0x84   : > { %7277 = vst [vmem:[#allocation33_spill] sm:$0xff] %v4890_v56  ;;  %v687_v63 = vsub.f32 %v4868_v59, %v7014_v20  ;;  %v4914_v8 = vsub.f32 %v4760_v38, %v4792_v51  ;;  %671 = vmatpush1.msra.mxu1 %v670_v28  ;;  %541 = vmatprep.subr.mxu0 %v4834_v14  ;;  %v7022_v39 = vand.u32 4294901760, %v4901_v58  ;;  %v4924_v20 = vand.u32 4294901760, %v4892_v49 }
  0x85   : > { %7278 = vst [vmem:[#allocation34_spill] sm:$0xff] %v4910_v1  ;;  %v682_v29 = vand.u32 4294901760, %v681_v50  ;;  %v693_v27 = vsub.f32 %v4880_v43, %v7017_v55  ;;  %677 = vmatprep.subr.mxu1 %v676_v40  ;;  %543 = vmatpush1.msra.mxu0 %v4845_v48  ;;  %v4932_v50 = vsub.f32 %v4784_v47, %v4811_v61  ;;  %v4935_v30 = vand.u32 4294901760, %v4903_v45  ;;  %v4937_v55 = vld [vmem:[#allocation2 + $0x48] sm:$0xff] }
  0x86   : > { %7279 = vst [vmem:[#allocation35_spill] sm:$0xff] %v4924_v20  ;;  %v688_v38 = vand.u32 4294901760, %v687_v63  ;;  %v7025_v28 = vand.u32 4294901760, %v4914_v8  ;;  %545 = vmatprep.subr.mxu0 %v4857_v54  ;;  %v699_v40 = vsub.f32 %v4901_v58, %v7022_v39  ;;  %v4945_v63 = vsub.f32 %v4794_v52, %v4823_v3  ;;  %v4962_v52 = vld [vmem:[#allocation2 + $0x40] sm:$0xff] }
  0x87   : > { %7280 = vst [vmem:[#allocation36_spill] sm:$0xff] %v4935_v30  ;;  %683 = vmatpush1.msra.mxu1 %v682_v29  ;;  %v694_v0 = vand.u32 4294901760, %v693_v27  ;;  %v4948_v47 = vand.u32 4294901760, %v4916_v35  ;;  %547 = vmatpush1.msra.mxu0 %v4871_v22  ;;  %v4957_v61 = vsub.f32 %v4801_v57, %v4834_v14  ;;  %v4960_v39 = vand.u32 4294901760, %v4926_v34  ;;  %v4973_v57 = vld [vmem:[#allocation2 + $0x8] sm:$0xff] }
  0x88   : > { %689 = vmatprep.subr.mxu1 %v688_v38  ;;  %v705_v29 = vsub.f32 %v4914_v8, %v7025_v28  ;;  %549 = vmatprep.subr.mxu0 %v4890_v56  ;;  %v700_v38 = vand.u32 4294901760, %v699_v40  ;;  %v4968_v28 = vsub.f32 %v4813_v62, %v4845_v48  ;;  %v4971_v27 = vand.u32 4294901760, %v4937_v55  ;;  %v4996_v40 = vld [vmem:[#allocation2] sm:$0xff] }
  0x89   : > { %7281 = vst [vmem:[#allocation37_spill] sm:$0xff] %v4948_v47  ;;  %7282 = vst [vmem:[#allocation38_spill] sm:$0xff] %v4960_v39  ;;  %695 = vmatpush1.msra.mxu1 %v694_v0  ;;  %551 = vmatpush1.msra.mxu0 %v4910_v1  ;;  %v7284_v51 = vand.u32 4294901760, %v4932_v50  ;;  %v4982_v3 = vsub.f32 %v4825_v7, %v4857_v54  ;;  %v7285_v62 = vand.u32 4294901760, %v4945_v63  ;;  %v4990_v42 = vand.u32 4294901760, %v4962_v52 }
  0x8a   : > { %7283 = vst [vmem:[#allocation39_spill] sm:$0xff] %v4971_v27  ;;  %v706_v14 = vand.u32 4294901760, %v705_v29  ;;  %701 = vmatprep.subr.mxu1 %v700_v38  ;;  %553 = vmatprep.subr.mxu0 %v4924_v20  ;;  %v7286_v38 = vand.u32 4294901760, %v4957_v61  ;;  %v5004_v29 = vand.u32 4294901760, %v4973_v57  ;;  %v5021_v31 = vand.u32 4294901760, %v4996_v40 }
  0x8b   : > { %v711_v0 = vsub.f32 %v4932_v50, %v7284_v51  ;;  %v717_v48 = vsub.f32 %v4945_v63, %v7285_v62  ;;  %v4994_v51 = vsub.f32 %v4836_v15, %v4871_v22  ;;  %555 = vmatpush1.msra.mxu0 %v4935_v30  ;;  %v7044_v54 = vand.u32 4294901760, %v4982_v3 }
  0x8c   : > { %707 = vmatpush1.msra.mxu1 %v706_v14  ;;  %v723_v62 = vsub.f32 %v4957_v61, %v7286_v38  ;;  %557 = vmatprep.subr.mxu0 %v4948_v47  ;;  %v7287_v15 = vand.u32 4294901760, %v4968_v28 }
  0x8d   : > { %v712_v7 = vand.u32 4294901760, %v711_v0  ;;  %v718_v37 = vand.u32 4294901760, %v717_v48  ;;  %v5013_v0 = vsub.f32 %v4859_v21, %v4890_v56  ;;  %559 = vmatpush1.msra.mxu0 %v4960_v39  ;;  %v735_v48 = vsub.f32 %v4982_v3, %v7044_v54 }
  0x8e   : > { %v729_v22 = vsub.f32 %v4968_v28, %v7287_v15  ;;  %v724_v38 = vand.u32 4294901760, %v723_v62  ;;  %v5025_v15 = vsub.f32 %v4882_v9, %v4910_v1  ;;  %561 = vmatprep.subr.mxu0 %v4971_v27  ;;  %v7288_v21 = vand.u32 4294901760, %v4994_v51 }
  0x8f   : > { %713 = vmatprep.subr.mxu1 %v712_v7  ;;  %v7047_v62 = vand.u32 4294901760, %v5013_v0  ;;  %v5034_v54 = vsub.f32 %v4892_v49, %v4924_v20  ;;  %v736_v56 = vand.u32 4294901760, %v735_v48  ;;  %563 = vmatpush1.msra.mxu0 %v4990_v42  ;;  %v5051_v48 = vsub.f32 %v4916_v35, %v4948_v47 }
  0x90   : > { %719 = vmatpush1.msra.mxu1 %v718_v37  ;;  %v730_v14 = vand.u32 4294901760, %v729_v22  ;;  %v741_v7 = vsub.f32 %v4994_v51, %v7288_v21  ;;  %v7050_v9 = vand.u32 4294901760, %v5025_v15  ;;  %v5038_v37 = vand.u32 4294901760, %v375_v33  ;;  %565 = vmatprep.subr.mxu0 %v5004_v29 }
  0x91   : > { %725 = vmatprep.subr.mxu1 %v724_v38  ;;  %v5042_v22 = vsub.f32 %v4903_v45, %v4935_v30  ;;  %v747_v49 = vsub.f32 %v5013_v0, %v7047_v62  ;;  %567 = vmatpush1.msra.mxu0 %v5021_v31  ;;  %v5063_v62 = vsub.f32 %v4926_v34, %v4960_v39  ;;  %v7291_v35 = vand.u32 4294901760, %v5034_v54 }
  0x92   : > { %7289 = vst [vmem:[#allocation40_spill] sm:$0xff] %v5038_v37  ;;  %731 = vmatpush1.msra.mxu1 %v730_v14  ;;  %v742_v21 = vand.u32 4294901760, %v741_v7  ;;  %v753_v45 = vsub.f32 %v5025_v15, %v7050_v9  ;;  %v5058_v14 = vsub.f32 %v375_v33, %v5038_v37  ;;  %846 = vmatprep.subr.mxu0 %v4713_v19  ;;  %v7057_v47 = vand.u32 4294901760, %v5051_v48 }
  0x93   : > { %737 = vmatprep.subr.mxu1 %v736_v56  ;;  %v748_v38 = vand.u32 4294901760, %v747_v49  ;;  %v759_v56 = vsub.f32 %v5034_v54, %v7291_v35  ;;  %v5072_v33 = vsub.f32 %v4937_v55, %v4971_v27  ;;  %v7293_v34 = vand.u32 4294901760, %v5042_v22 }
  0x94   : > { %7290 = vst [vmem:[#allocation41_spill] sm:$0xff] %v5058_v14  ;;  %743 = vmatpush1.msra.mxu1 %v742_v21  ;;  %v754_v9 = vand.u32 4294901760, %v753_v45  ;;  %v5075_v7 = vand.u32 4294901760, %v5058_v14  ;;  %v7058_v49 = vand.u32 4294901760, %v5063_v62  ;;  %v771_v39 = vsub.f32 %v5051_v48, %v7057_v47 }
  0x95   : > { %v765_v21 = vsub.f32 %v5042_v22, %v7293_v34  ;;  %749 = vmatprep.subr.mxu1 %v748_v38  ;;  %v760_v35 = vand.u32 4294901760, %v759_v56  ;;  %v7064_v30 = vand.u32 4294901760, %v5072_v33  ;;  %v5087_v55 = vsub.f32 %v4962_v52, %v4990_v42 }
  0x96   : > { %7292 = vst [vmem:[#allocation42_spill] sm:$0xff] %v5075_v7  ;;  %755 = vmatpush1.msra.mxu1 %v754_v9  ;;  %v604_v45 = vsub.f32 %v5058_v14, %v5075_v7  ;;  %v777_v38 = vsub.f32 %v5063_v62, %v7058_v49  ;;  %v5096_v56 = vsub.f32 %v4973_v57, %v5004_v29  ;;  %v772_v34 = vand.u32 4294901760, %v771_v39 }
  0x97   : > { %7294 = vst [vmem:[#allocation43_spill] sm:$0xff] %v5087_v55  ;;  %v766_v27 = vand.u32 4294901760, %v765_v21  ;;  %761 = vmatprep.subr.mxu1 %v760_v35  ;;  %v783_v52 = vsub.f32 %v5072_v33, %v7064_v30  ;;  %v7063_v9 = vand.u32 4294901760, %v5087_v55  ;;  %v5104_v47 = vsub.f32 %v4996_v40, %v5021_v31  ;;  %v7309_v30 = vld [vmem:[#allocation33_spill] sm:$0xff] }
  0x98   : > { %v5106_v21 = vand.u32 4294901760, %v604_v45  ;;  %v778_v49 = vand.u32 4294901760, %v777_v38  ;;  %v7062_v7 = vand.u32 4294901760, %v5096_v56 }
  0x99   : > { %7295 = vst [vmem:[#allocation44_spill] sm:$0xff] %v5104_v47  ;;  %767 = vmatpush1.msra.mxu1 %v766_v27  ;;  %v784_v57 = vand.u32 4294901760, %v783_v52  ;;  %v789_v39 = vsub.f32 %v5087_v55, %v7063_v9  ;;  %v7061_v35 = vand.u32 4294901760, %v5104_v47  ;;  %v7298_v52 = vld [vmem:[#allocation22_spill] sm:$0xff]  ;;  %v7308_v9 = vld [vmem:[#allocation32_spill] sm:$0xff] }
  0x9a   : > { %7296 = vst [vmem:[#allocation45_spill] sm:$0xff] %v5106_v21  ;;  %773 = vmatprep.subr.mxu1 %v772_v34  ;;  %606 = vmatmul.mubr.f32.vlgmr.msra.gmra.mxu0 %v5106_v21  ;;  %v795_v40 = vsub.f32 %v5096_v56, %v7062_v7  ;;  %v7297_v34 = vmov 0.0   ;;  %v7307_v7 = vld [vmem:[#allocation31_spill] sm:$0xff]  ;;  %v7310_v21 = vand.u32 4294901760, %v4713_v19  ;;  %v7318_v19 = vand.u32 4294901760, %v4755_v36 }
  0x9b   : > { %779 = vmatpush1.msra.mxu1 %v778_v49  ;;  %849 = vmatpush1.msra.mxu0 %v4726_v24  ;;  %v790_v27 = vand.u32 4294901760, %v789_v39  ;;  %v801_v45 = vsub.f32 %v5104_v47, %v7061_v35  ;;  %v7300_v39 = vld [vmem:[#allocation24_spill] sm:$0xff]  ;;  %v7306_v35 = vld [vmem:[#allocation30_spill] sm:$0xff] }
  0x9c   : > { %785 = vmatprep.subr.mxu1 %v784_v57  ;;  %852 = vmatprep.subr.mxu0 %v4732_v26  ;;  %v796_v38 = vand.u32 4294901760, %v795_v40  ;;  %v7299_v57 = vld [vmem:[#allocation23_spill] sm:$0xff]  ;;  %v7301_v40 = vld [vmem:[#allocation25_spill] sm:$0xff] }
  0x9d   : > { %972 = vmatprep.mubr.f32.mxu0 %v7297_v34  ;;  %855 = vmatpush1.msra.mxu0 %v4746_v32  ;;  %v802_v49 = vand.u32 4294901760, %v801_v45  ;;  %v7303_v45 = vld [vmem:[#allocation27_spill] sm:$0xff] }
  0x9e   : > { %791 = vmatpush1.msra.mxu1 %v790_v27  ;;  %858 = vmatprep.subr.mxu0 %v4755_v36  ;;  %v7302_v27 = vld [vmem:[#allocation26_spill] sm:$0xff]  ;;  %v7323_v36 = vand.u32 4294901760, %v4820_v2 }
  0x9f   : > { %797 = vmatprep.subr.mxu1 %v796_v38  ;;  %861 = vmatpush1.msra.mxu0 %v4768_v41  ;;  %v7304_v38 = vld [vmem:[#allocation28_spill] sm:$0xff] }
  0xa0   : > { %803 = vmatpush1.msra.mxu1 %v802_v49  ;;  %864 = vmatprep.subr.mxu0 %v4782_v46  ;;  %v7305_v49 = vld [vmem:[#allocation29_spill] sm:$0xff] }
  0xa1   : > { %838 = vmatmul.mubr.f32.vlgmr.msra.gmra.mxu1 %v5038_v37  ;;  %867 = vmatpush1.msra.mxu0 %v4808_v60  ;;  %v7311_v37 = vld [vmem:[#allocation36_spill] sm:$0xff] }
  0xa2   : > { %982 = vmatprep.subr.mxu1 %v4693_v4  ;;  %870 = vmatprep.subr.mxu0 %v4820_v2  ;;  %v7327_v2 = vand.u32 4294901760, %v4868_v59 }
  0xa3   : > { %984 = vmatpush1.msra.mxu1 %v4695_v5  ;;  %873 = vmatpush1.msra.mxu0 %v4831_v13 }
  0xa4   : > { %986 = vmatprep.subr.mxu1 %v4697_v6  ;;  %876 = vmatprep.subr.mxu0 %v4842_v44 }
  0xa5   : > { %988 = vmatpush1.msra.mxu1 %v4699_v10  ;;  %879 = vmatpush1.msra.mxu0 %v4854_v53 }
  0xa6   : > { %990 = vmatprep.subr.mxu1 %v4701_v11  ;;  %882 = vmatprep.subr.mxu0 %v4868_v59  ;;  %v7334_v59 = vand.u32 4294901760, %v4968_v28 }
  0xa7   : > { %992 = vmatpush1.msra.mxu1 %v4703_v12  ;;  %885 = vmatpush1.msra.mxu0 %v4880_v43 }
  0xa8   : > { %994 = vmatprep.subr.mxu1 %v4706_v16  ;;  %888 = vmatprep.subr.mxu0 %v4901_v58 }
  0xa9   : > { %996 = vmatpush1.msra.mxu1 %v4708_v17  ;;  %891 = vmatpush1.msra.mxu0 %v4914_v8 }
  0xaa   : > { %998 = vmatprep.subr.mxu1 %v4710_v18  ;;  %894 = vmatprep.subr.mxu0 %v4932_v50 }
  0xab   : > { %1000 = vmatpush1.msra.mxu1 %v4723_v23  ;;  %897 = vmatpush1.msra.mxu0 %v4945_v63 }
  0xac   : > { %1002 = vmatprep.subr.mxu1 %v4729_v25  ;;  %900 = vmatprep.subr.mxu0 %v4957_v61 }
  0xad   : > { %1004 = vmatpush1.msra.mxu1 %v7298_v52  ;;  %903 = vmatpush1.msra.mxu0 %v4968_v28  ;;  %v474_v28 = vld [vmem:[#allocation2 + $0x310] sm:$0xff] }
  0xae   : > { %1006 = vmatprep.subr.mxu1 %v7299_v57  ;;  %906 = vmatprep.subr.mxu0 %v4982_v3 }
  0xaf   : > { %1008 = vmatpush1.msra.mxu1 %v7300_v39  ;;  %909 = vmatpush1.msra.mxu0 %v4994_v51 }
  0xb0   : > { %1010 = vmatprep.subr.mxu1 %v7301_v40  ;;  %912 = vmatprep.subr.mxu0 %v5013_v0 }
  0xb1   : > { %1012 = vmatpush1.msra.mxu1 %v7302_v27  ;;  %915 = vmatpush1.msra.mxu0 %v5025_v15 }
  0xb2   : > { %1014 = vmatprep.subr.mxu1 %v7303_v45  ;;  %918 = vmatprep.subr.mxu0 %v5034_v54 }
  0xb3   : > { %1016 = vmatpush1.msra.mxu1 %v7304_v38  ;;  %921 = vmatpush1.msra.mxu0 %v5042_v22 }
  0xb4   : > { %1018 = vmatprep.subr.mxu1 %v7305_v49  ;;  %924 = vmatprep.subr.mxu0 %v5051_v48 }
  0xb5   : > { %1020 = vmatpush1.msra.mxu1 %v7306_v35  ;;  %927 = vmatpush1.msra.mxu0 %v5063_v62 }
  0xb6   : > { %1022 = vmatprep.subr.mxu1 %v7307_v7  ;;  %930 = vmatprep.subr.mxu0 %v5072_v33 }
  0xb7   : > { %1024 = vmatpush1.msra.mxu1 %v7308_v9  ;;  %933 = vmatpush1.msra.mxu0 %v5087_v55  ;;  %v7312_v9 = vand.u32 4294901760, %v4726_v24  ;;  %v7313_v55 = vld [vmem:[#allocation37_spill] sm:$0xff]  ;;  %v7319_v24 = vand.u32 4294901760, %v4768_v41  ;;  %v7324_v41 = vand.u32 4294901760, %v4831_v13  ;;  %v498_v13 = vld [vmem:[#allocation2 + $0x3d0] sm:$0xff] }
  0xb8   : > { %1026 = vmatprep.subr.mxu1 %v7309_v30  ;;  %936 = vmatprep.subr.mxu0 %v5096_v56  ;;  %v7314_v30 = vand.u32 4294901760, %v4732_v26  ;;  %v7320_v26 = vand.u32 4294901760, %v4782_v46  ;;  %v7325_v46 = vand.u32 4294901760, %v4842_v44  ;;  %v7330_v44 = vand.u32 4294901760, %v4914_v8  ;;  %v482_v8 = vld [vmem:[#allocation2 + $0x350] sm:$0xff] }
  0xb9   : > { %1028 = vmatpush1.msra.mxu1 %v4910_v1  ;;  %939 = vmatpush1.msra.mxu0 %v5104_v47  ;;  %v7315_v1 = vld [vmem:[#allocation38_spill] sm:$0xff]  ;;  %v7316_v47 = vand.u32 4294901760, %v4746_v32 }
  0xba   : > { %1030 = vmatprep.subr.mxu1 %v4924_v20  ;;  %975 = vmatmul.mubr.f32.vlgmr.msra.gmra.mxu0 %v5058_v14  ;;  %v7317_v20 = vld [vmem:[#allocation39_spill] sm:$0xff]  ;;  %v7322_v32 = vld [vmem:[#allocation42_spill] sm:$0xff] }
  0xbb   : > { %1090 = vmatprep.subr.mxu0 %v7310_v21  ;;  %1032 = vmatpush1.msra.mxu1 %v7311_v37  ;;  %v5271_v21 = vand.u32 4294901760, %v482_v8 }
  0xbc   : > { %1094 = vmatpush1.msra.mxu0 %v7312_v9  ;;  %1034 = vmatprep.subr.mxu1 %v7313_v55  ;;  %v7338_v9 = vand.u32 4294901760, %v5025_v15  ;;  %v467_v15 = vld [vmem:[#allocation2 + $0x2d8] sm:$0xff] }
  0xbd   : > { %1098 = vmatprep.subr.mxu0 %v7314_v30  ;;  %1036 = vmatpush1.msra.mxu1 %v7315_v1  ;;  %v7321_v30 = vand.u32 4294901760, %v4808_v60  ;;  %v7326_v60 = vand.u32 4294901760, %v4854_v53  ;;  %v7333_v53 = vand.u32 4294901760, %v4957_v61  ;;  %v7336_v61 = vand.u32 4294901760, %v4994_v51  ;;  %7339 = vst [vmem:[#allocation22_spill] sm:$0xff] %v5271_v21 }
  0xbe   : > { %1102 = vmatpush1.msra.mxu0 %v7316_v47  ;;  %1038 = vmatprep.subr.mxu1 %v7317_v20 }
  0xbf   : > { %1106 = vmatprep.subr.mxu0 %v7318_v19  ;;  %1040 = vmatpush1.msra.mxu1 %v4990_v42 }
  0xc0   : > { %1110 = vmatpush1.msra.mxu0 %v7319_v24  ;;  %1042 = vmatprep.subr.mxu1 %v5004_v29 }
  0xc1   : > { %1114 = vmatprep.subr.mxu0 %v7320_v26  ;;  %1044 = vmatpush1.msra.mxu1 %v5021_v31  ;;  %v7343_v26 = vand.u32 4294901760, %v5051_v48 }
  0xc2   : > { %1077 = vmatprep.mubr.f32.mxu1 %v7297_v34  ;;  %1118 = vmatpush1.msra.mxu0 %v7321_v30 }
  0xc3   : > { %1081 = vmatmul.mubr.f32.vlgmr.msra.gmra.mxu1 %v7322_v32  ;;  %1122 = vmatprep.subr.mxu0 %v7323_v36  ;;  %v7345_v36 = vand.u32 4294901760, %v5063_v62  ;;  %v450_v62 = vld [vmem:[#allocation2 + $0x250] sm:$0xff] }
  0xc4   : > { %1256 = vmatprep.subr.mxu1 %v4693_v4  ;;  %1126 = vmatpush1.msra.mxu0 %v7324_v41  ;;  %v7328_v4 = vand.u32 4294901760, %v4880_v43  ;;  %v5299_v41 = vsub.f32 %v482_v8, %v5271_v21 }
  0xc5   : > { %1258 = vmatpush1.msra.mxu1 %v4695_v5  ;;  %1130 = vmatprep.subr.mxu0 %v7325_v46  ;;  %v7329_v5 = vand.u32 4294901760, %v4901_v58 }
  0xc6   : > { %1260 = vmatprep.subr.mxu1 %v4697_v6  ;;  %1134 = vmatpush1.msra.mxu0 %v7326_v60  ;;  %v499_v6 = vld [vmem:[#allocation2 + $0x3d8] sm:$0xff]  ;;  %v5309_v60 = vand.u32 4294901760, %v467_v15  ;;  %v7073_v8 = vand.u32 4294901760, %v5299_v41 }
  0xc7   : > { %1262 = vmatpush1.msra.mxu1 %v4699_v10  ;;  %1138 = vmatprep.subr.mxu0 %v7327_v2  ;;  %v490_v10 = vld [vmem:[#allocation2 + $0x390] sm:$0xff]  ;;  %v5234_v43 = vand.u32 4294901760, %v499_v6 }
  0xc8   : > { %1264 = vmatprep.subr.mxu1 %v4701_v11  ;;  %1142 = vmatpush1.msra.mxu0 %v7328_v4  ;;  %v7331_v11 = vand.u32 4294901760, %v4932_v50  ;;  %v5241_v58 = vand.u32 4294901760, %v490_v10  ;;  %7348 = vst [vmem:[#allocation26_spill] sm:$0xff] %v5309_v60  ;;  %v7350_v4 = vld [vmem:[#allocation43_spill] sm:$0xff] }
  0xc9   : > { %1266 = vmatpush1.msra.mxu1 %v4703_v12  ;;  %1146 = vmatprep.subr.mxu0 %v7329_v5  ;;  %v7332_v12 = vand.u32 4294901760, %v4945_v63  ;;  %v5258_v63 = vsub.f32 %v499_v6, %v5234_v43  ;;  %v7352_v5 = vld [vmem:[#allocation32_spill] sm:$0xff] }
  0xca   : > { %1268 = vmatprep.subr.mxu1 %v4706_v16  ;;  %1150 = vmatpush1.msra.mxu0 %v7330_v44  ;;  %v5236_v16 = vand.u32 4294901760, %v498_v13  ;;  %v5264_v47 = vsub.f32 %v490_v10, %v5241_v58  ;;  %v451_v44 = vld [vmem:[#allocation2 + $0x258] sm:$0xff]  ;;  %v7354_v10 = vand.u32 4294901760, %v5096_v56 }
  0xcb   : > { %1270 = vmatpush1.msra.mxu1 %v4708_v17  ;;  %1154 = vmatprep.subr.mxu0 %v7331_v11  ;;  %v491_v17 = vld [vmem:[#allocation2 + $0x398] sm:$0xff]  ;;  %v7079_v19 = vand.u32 4294901760, %v5258_v63  ;;  %v7355_v11 = vld [vmem:[#allocation33_spill] sm:$0xff] }
  0xcc   : > { %1272 = vmatprep.subr.mxu1 %v4710_v18  ;;  %1158 = vmatpush1.msra.mxu0 %v7332_v12  ;;  %v483_v18 = vld [vmem:[#allocation2 + $0x358] sm:$0xff]  ;;  %v5255_v50 = vand.u32 4294901760, %v491_v17  ;;  %v7075_v30 = vand.u32 4294901760, %v5264_v47 }
  0xcd   : > { %1274 = vmatpush1.msra.mxu1 %v4723_v23  ;;  %1162 = vmatprep.subr.mxu0 %v7333_v53  ;;  %v7335_v23 = vand.u32 4294901760, %v4982_v3  ;;  %v7337_v3 = vand.u32 4294901760, %v5013_v0  ;;  %v5266_v51 = vand.u32 4294901760, %v483_v18  ;;  %v5276_v0 = vand.u32 4294901760, %v474_v28 }
  0xce   : > { %1276 = vmatprep.subr.mxu1 %v4729_v25  ;;  %1166 = vmatpush1.msra.mxu0 %v7334_v59  ;;  %v5253_v25 = vsub.f32 %v498_v13, %v5236_v16  ;;  %v5284_v24 = vsub.f32 %v491_v17, %v5255_v50  ;;  %v5335_v12 = vsub.f32 %v5264_v47, %v7075_v30  ;;  %v7356_v59 = vld [vmem:[#allocation44_spill] sm:$0xff] }
  0xcf   : > { %1278 = vmatpush1.msra.mxu1 %v7298_v52  ;;  %1170 = vmatprep.subr.mxu0 %v7335_v23  ;;  %v475_v52 = vld [vmem:[#allocation2 + $0x318] sm:$0xff]  ;;  %7341 = vst [vmem:[#allocation23_spill] sm:$0xff] %v5276_v0  ;;  %v5307_v46 = vsub.f32 %v474_v28, %v5276_v0  ;;  %v5347_v23 = vand.u32 4294901760, %v450_v62  ;;  %v7359_v28 = vld [vmem:[#allocation34_spill] sm:$0xff] }
  0xd0   : > { %1280 = vmatprep.subr.mxu1 %v7299_v57  ;;  %1174 = vmatpush1.msra.mxu0 %v7336_v61  ;;  %v7340_v57 = vand.u32 4294901760, %v5034_v54  ;;  %v458_v54 = vld [vmem:[#allocation2 + $0x290] sm:$0xff]  ;;  %v7076_v13 = vand.u32 4294901760, %v5284_v24  ;;  %v443_v61 = vld [vmem:[#allocation2 + $0x218] sm:$0xff] }
  0xd1   : > { %1282 = vmatpush1.msra.mxu1 %v7300_v39  ;;  %1178 = vmatprep.subr.mxu0 %v7337_v3  ;;  %v466_v39 = vld [vmem:[#allocation2 + $0x2d0] sm:$0xff]  ;;  %v5311_v2 = vand.u32 4294901760, %v458_v54  ;;  %7358 = vst [vmem:[#allocation29_spill] sm:$0xff] %v5347_v23  ;;  %v7360_v3 = vld [vmem:[#allocation40_spill] sm:$0xff] }
  0xd2   : > { %1284 = vmatprep.subr.mxu1 %v7301_v40  ;;  %1182 = vmatpush1.msra.mxu0 %v7338_v9  ;;  %v7342_v40 = vand.u32 4294901760, %v5042_v22  ;;  %v459_v22 = vld [vmem:[#allocation2 + $0x298] sm:$0xff]  ;;  %v5301_v48 = vand.u32 4294901760, %v466_v39 }
  0xd3   : > { %1286 = vmatpush1.msra.mxu1 %v7302_v27  ;;  %1186 = vmatprep.subr.mxu0 %v7340_v57  ;;  %v7078_v27 = vand.u32 4294901760, %v5253_v25  ;;  %7349 = vst [vmem:[#allocation27_spill] sm:$0xff] %v5311_v2  ;;  %v5326_v6 = vand.u32 4294901760, %v459_v22  ;;  %v5353_v9 = vsub.f32 %v458_v54, %v5311_v2  ;;  %v442_v57 = vld [vmem:[#allocation2 + $0x210] sm:$0xff]  ;;  %v5368_v54 = vsub.f32 %v5284_v24, %v7076_v13 }
  0xd4   : > { %1288 = vmatprep.subr.mxu1 %v7303_v45  ;;  %1190 = vmatpush1.msra.mxu0 %v7342_v40  ;;  %v5289_v45 = vand.u32 4294901760, %v475_v52  ;;  %7346 = vst [vmem:[#allocation25_spill] sm:$0xff] %v5301_v48  ;;  %v5345_v56 = vsub.f32 %v466_v39, %v5301_v48  ;;  %v7077_v40 = vand.u32 4294901760, %v5307_v46  ;;  %v5359_v39 = vsub.f32 %v467_v15, %v5309_v60  ;;  %v419_v15 = vld [vmem:[#allocation2 + $0x158] sm:$0xff] }
  0xd5   : > { %1290 = vmatpush1.msra.mxu1 %v7304_v38  ;;  %1194 = vmatprep.subr.mxu0 %v7343_v26  ;;  %v5293_v38 = vsub.f32 %v483_v18, %v5266_v51  ;;  %7353 = vst [vmem:[#allocation28_spill] sm:$0xff] %v5326_v6  ;;  %v7357_v18 = vand.u32 4294901760, %v7356_v59  ;;  %v7362_v26 = vld [vmem:[#allocation35_spill] sm:$0xff]  ;;  %v5394_v59 = vand.u32 4294901760, %v442_v57  ;;  %v5473_v14 = vand.u32 4294901760, %v419_v15 }
  0xd6   : > { %1292 = vmatprep.subr.mxu1 %v7305_v49  ;;  %7344 = vst [vmem:[#allocation24_spill] sm:$0xff] %v5289_v45  ;;  %1198 = vmatpush1.msra.mxu0 %v7345_v36  ;;  %v7347_v49 = vand.u32 4294901760, %v5072_v33  ;;  %v5319_v33 = vsub.f32 %v5258_v63, %v7079_v19  ;;  %v5339_v17 = vsub.f32 %v475_v52, %v5289_v45  ;;  %v5355_v52 = vand.u32 4294901760, %v451_v44 }
  0xd7   : > { %1294 = vmatpush1.msra.mxu1 %v7306_v35  ;;  %v7351_v35 = vand.u32 4294901760, %v7350_v4  ;;  %v7074_v53 = vand.u32 4294901760, %v5293_v38  ;;  %1247 = vmatprep.mubr.f32.mxu0 %v7297_v34  ;;  %v434_v4 = vld [vmem:[#allocation2 + $0x1d0] sm:$0xff]  ;;  %7364 = vst [vmem:[#allocation36_spill] sm:$0xff] %v5394_v59  ;;  %v5434_v19 = vsub.f32 %v442_v57, %v5394_v59  ;;  %7371 = vst [vmem:[#allocation44_spill] sm:$0xff] %v5473_v14 }
  0xd8   : > { %1202 = vmatprep.subr.mxu0 %v7347_v49  ;;  %1296 = vmatprep.subr.mxu1 %v7307_v7  ;;  %v5324_v7 = vsub.f32 %v5253_v25, %v7078_v27  ;;  %7361 = vst [vmem:[#allocation30_spill] sm:$0xff] %v5355_v52  ;;  %v1471_v36 = vand.u32 4294901760, %v5319_v33  ;;  %v5381_v33 = vand.u32 4294901760, %v443_v61  ;;  %v410_v49 = vld [vmem:[#allocation2 + $0x110] sm:$0xff] }
  0xd9   : > { %1206 = vmatpush1.msra.mxu0 %v7351_v35  ;;  %1298 = vmatpush1.msra.mxu1 %v7352_v5  ;;  %v5371_v35 = vsub.f32 %v459_v22, %v5326_v6  ;;  %v5379_v5 = vsub.f32 %v5293_v38, %v7074_v53  ;;  %v5392_v22 = vsub.f32 %v5299_v41, %v7073_v8  ;;  %v427_v8 = vld [vmem:[#allocation2 + $0x198] sm:$0xff] }
  0xda   : > { %1210 = vmatprep.subr.mxu0 %v7354_v10  ;;  %1300 = vmatprep.subr.mxu1 %v7355_v11  ;;  %7363 = vst [vmem:[#allocation31_spill] sm:$0xff] %v5381_v33  ;;  %v7080_v10 = vand.u32 4294901760, %v5339_v17  ;;  %v426_v11 = vld [vmem:[#allocation2 + $0x190] sm:$0xff]  ;;  %v5408_v53 = vsub.f32 %v451_v44, %v5355_v52  ;;  %7369 = vst [vmem:[#allocation32_spill] sm:$0xff] %v5434_v19 }
  0xdb   : > { %1214 = vmatpush1.msra.mxu0 %v7357_v18  ;;  %1302 = vmatpush1.msra.mxu1 %v7359_v28  ;;  %v435_v18 = vld [vmem:[#allocation2 + $0x1d8] sm:$0xff]  ;;  %v7081_v28 = vand.u32 4294901760, %v5345_v56  ;;  %v7085_v30 = vand.u32 4294901760, %v5371_v35  ;;  %v5414_v13 = vand.u32 4294901760, %v426_v11  ;;  %v1495_v27 = vand.u32 4294901760, %v5379_v5 }
  0xdc   : > { %1249 = vmatmul.mubr.f32.vlgmr.msra.gmra.mxu0 %v7360_v3  ;;  %1304 = vmatprep.subr.mxu1 %v7362_v26  ;;  %v5405_v26 = vand.u32 4294901760, %v434_v4  ;;  %v5425_v44 = vand.u32 4294901760, %v435_v18 }
  0xdd   : > { %1360 = vmatprep.subr.mxu0 %v5234_v43  ;;  %1306 = vmatpush1.msra.mxu1 %v7311_v37  ;;  %v5387_v37 = vsub.f32 %v450_v62, %v5347_v23  ;;  %v7082_v62 = vand.u32 4294901760, %v5359_v39  ;;  %7366 = vst [vmem:[#allocation38_spill] sm:$0xff] %v5414_v13  ;;  %v5439_v5 = vsub.f32 %v5345_v56, %v7081_v28  ;;  %v418_v28 = vld [vmem:[#allocation2 + $0x150] sm:$0xff] }
  0xde   : > { %1362 = vmatpush1.msra.mxu0 %v5236_v16  ;;  %1308 = vmatprep.subr.mxu1 %v7313_v55  ;;  %v5402_v55 = vsub.f32 %v5307_v46, %v7077_v40  ;;  %7365 = vst [vmem:[#allocation37_spill] sm:$0xff] %v5405_v26  ;;  %v7088_v40 = vand.u32 4294901760, %v5353_v9  ;;  %7367 = vst [vmem:[#allocation39_spill] sm:$0xff] %v5425_v44  ;;  %v5452_v57 = vsub.f32 %v434_v4, %v5405_v26 }
  0xdf   : > { %1364 = vmatprep.subr.mxu0 %v5255_v50  ;;  %1310 = vmatpush1.msra.mxu1 %v7315_v1  ;;  %v1483_v1 = vand.u32 4294901760, %v5368_v54  ;;  %v5428_v54 = vsub.f32 %v443_v61, %v5381_v33  ;;  %v5449_v61 = vsub.f32 %v5359_v39, %v7082_v62  ;;  %v1525_v62 = vand.u32 4294901760, %v5439_v5 }
  0xe0   : > { %1366 = vmatpush1.msra.mxu0 %v5241_v58  ;;  %1312 = vmatprep.subr.mxu1 %v7317_v20  ;;  %v5423_v20 = vsub.f32 %v5339_v17, %v7080_v10  ;;  %v5441_v10 = vand.u32 4294901760, %v427_v8  ;;  %v5468_v4 = vsub.f32 %v5353_v9, %v7088_v40  ;;  %v7372_v40 = vand.u32 4294901760, %v5324_v7 }
  0xe1   : > { %1368 = vmatprep.subr.mxu0 %v5266_v51  ;;  %1314 = vmatpush1.msra.mxu1 %v4990_v42  ;;  %7368 = vst [vmem:[#allocation43_spill] sm:$0xff] %v5428_v54  ;;  %v1501_v42 = vand.u32 4294901760, %v5392_v22  ;;  %v411_v22 = vld [vmem:[#allocation2 + $0x118] sm:$0xff]  ;;  %v7376_v5 = vand.u32 4294901760, %v5335_v12 }
  0xe2   : > { %1370 = vmatpush1.msra.mxu0 %v5271_v21  ;;  %1316 = vmatprep.subr.mxu1 %v5004_v29  ;;  %7370 = vst [vmem:[#allocation33_spill] sm:$0xff] %v5441_v10  ;;  %v1513_v29 = vand.u32 4294901760, %v5402_v55  ;;  %v5463_v55 = vsub.f32 %v426_v11, %v5414_v13  ;;  %v1507_v32 = vand.u32 4294901760, %v5423_v20  ;;  %v5477_v11 = vsub.f32 %v435_v18, %v5425_v44  ;;  %v394_v21 = vld [vmem:[#allocation2 + $0x90] sm:$0xff] }
  0xe3   : > { %1372 = vmatprep.subr.mxu0 %v5289_v45  ;;  %1318 = vmatpush1.msra.mxu1 %v5021_v31  ;;  %v5460_v31 = vsub.f32 %v5371_v35, %v7085_v30  ;;  %v5483_v45 = vand.u32 4294901760, %v418_v28  ;;  %v1519_v18 = vand.u32 4294901760, %v5449_v61  ;;  %v7375_v30 = vand.u32 4294901760, %v5408_v53 }
  0xe4   : > { %1351 = vmatprep.mubr.f32.mxu1 %v7297_v34  ;;  %1374 = vmatpush1.msra.mxu0 %v5276_v0  ;;  %v402_v0 = vld [vmem:[#allocation2 + $0xd0] sm:$0xff]  ;;  %v5495_v7 = vand.u32 4294901760, %v411_v22  ;;  %v7377_v61 = vand.u32 4294901760, %v5387_v37 }
  0xe5   : > { %1353 = vmatmul.mubr.f32.vlgmr.msra.gmra.mxu1 %v7360_v3  ;;  %1376 = vmatprep.subr.mxu0 %v5309_v60  ;;  %7373 = vst [vmem:[#allocation34_spill] sm:$0xff] %v5483_v45  ;;  %v403_v60 = vld [vmem:[#allocation2 + $0xd8] sm:$0xff]  ;;  %v1531_v20 = vand.u32 4294901760, %v5460_v31 }
  0xe6   : > { %1472 = vmatprep.subr.mxu1 %v1471_v36  ;;  %1378 = vmatpush1.msra.mxu0 %v5301_v48  ;;  %v5485_v36 = vand.u32 4294901760, %v410_v49  ;;  %v5493_v48 = vsub.f32 %v5408_v53, %v7375_v30  ;;  %v5510_v30 = vand.u32 4294901760, %v402_v0 }
  0xe7   : > { %1478 = vmatpush1.msra.mxu1 %v7372_v40  ;;  %1380 = vmatprep.subr.mxu0 %v5326_v6  ;;  %v5498_v40 = vsub.f32 %v427_v8, %v5441_v10  ;;  %v5508_v6 = vsub.f32 %v5387_v37, %v7377_v61  ;;  %v7378_v8 = vand.u32 4294901760, %v5428_v54  ;;  %v5526_v61 = vsub.f32 %v418_v28, %v5483_v45  ;;  %v387_v28 = vld [vmem:[#allocation2 + $0x58] sm:$0xff] }
  0xe8   : > { %7374 = vst [vmem:[#allocation35_spill] sm:$0xff] %v5485_v36  ;;  %1484 = vmatprep.subr.mxu1 %v1483_v1  ;;  %1382 = vmatpush1.msra.mxu0 %v5311_v2  ;;  %v1537_v1 = vand.u32 4294901760, %v5468_v4  ;;  %v395_v4 = vld [vmem:[#allocation2 + $0x98] sm:$0xff]  ;;  %v5522_v2 = vsub.f32 %v419_v15, %v5473_v14  ;;  %v1543_v15 = vand.u32 4294901760, %v5493_v48  ;;  %v386_v48 = vld [vmem:[#allocation2 + $0x50] sm:$0xff] }
  0xe9   : > { %1490 = vmatpush1.msra.mxu1 %v7376_v5  ;;  %1384 = vmatprep.subr.mxu0 %v5355_v52  ;;  %v5516_v12 = vsub.f32 %v5428_v54, %v7378_v8  ;;  %v5518_v5 = vand.u32 4294901760, %v403_v60  ;;  %v7380_v8 = vand.u32 4294901760, %v5434_v19  ;;  %v5548_v54 = vand.u32 4294901760, %v395_v4 }
  0xea   : > { %1496 = vmatprep.subr.mxu1 %v1495_v27  ;;  %1386 = vmatpush1.msra.mxu0 %v5347_v23  ;;  %v5529_v27 = vsub.f32 %v410_v49, %v5485_v36  ;;  %v5541_v23 = vsub.f32 %v411_v22, %v5495_v7  ;;  %v1549_v49 = vand.u32 4294901760, %v5508_v6  ;;  %v7381_v22 = vand.u32 4294901760, %v5477_v11  ;;  %v379_v6 = vld [vmem:[#allocation2 + $0x18] sm:$0xff] }
  0xeb   : > { %1502 = vmatpush1.msra.mxu1 %v1501_v42  ;;  %v1560_v52 = vsub.f32 %v5434_v19, %v7380_v8  ;;  %1388 = vmatprep.subr.mxu0 %v5381_v33  ;;  %v5538_v42 = vand.u32 4294901760, %v394_v21  ;;  %v5546_v8 = vsub.f32 %v402_v0, %v5510_v30  ;;  %v1555_v31 = vand.u32 4294901760, %v5516_v12  ;;  %v378_v19 = vld [vmem:[#allocation2 + $0x10] sm:$0xff] }
  0xec   : > { %7379 = vst [vmem:[#allocation46_spill] sm:$0xff] %v5529_v27  ;;  %1508 = vmatprep.subr.mxu1 %v1507_v32  ;;  %1390 = vmatpush1.msra.mxu0 %v5394_v59  ;;  %v1566_v59 = vsub.f32 %v5477_v11, %v7381_v22  ;;  %v5558_v0 = vsub.f32 %v403_v60, %v5518_v5  ;;  %v7382_v33 = vand.u32 4294901760, %v5452_v57  ;;  %v7383_v22 = vand.u32 4294901760, %v5498_v40 }
  0xed   : > { %1514 = vmatpush1.msra.mxu1 %v1513_v29  ;;  %1392 = vmatprep.subr.mxu0 %v5425_v44  ;;  %v1561_v32 = vand.u32 4294901760, %v1560_v52  ;;  %v5564_v44 = vand.u32 4294901760, %v387_v28  ;;  %v5572_v29 = vsub.f32 %v394_v21, %v5538_v42  ;;  %v5574_v52 = vand.u32 4294901760, %v386_v48 }
  0xee   : > { %1520 = vmatprep.subr.mxu1 %v1519_v18  ;;  %1394 = vmatpush1.msra.mxu0 %v5405_v26  ;;  %v1572_v18 = vsub.f32 %v5452_v57, %v7382_v33  ;;  %v1578_v60 = vsub.f32 %v5498_v40, %v7383_v22  ;;  %v7385_v33 = vand.u32 4294901760, %v5463_v55  ;;  %v5585_v22 = vsub.f32 %v395_v4, %v5548_v54 }
  0xef   : > { %1526 = vmatpush1.msra.mxu1 %v1525_v62  ;;  %1396 = vmatprep.subr.mxu0 %v5441_v10  ;;  %7384 = vst [vmem:[#allocation47_spill] sm:$0xff] %v5572_v29  ;;  %v5581_v10 = vand.u32 4294901760, %v379_v6  ;;  %v1567_v21 = vand.u32 4294901760, %v1566_v59  ;;  %v7386_v62 = vand.u32 4294901760, %v5522_v2 }
  0xf0   : > { %1532 = vmatprep.subr.mxu1 %v1531_v20  ;;  %1398 = vmatpush1.msra.mxu0 %v5414_v13  ;;  %v1584_v12 = vsub.f32 %v5463_v55, %v7385_v33  ;;  %v1573_v33 = vand.u32 4294901760, %v1572_v18  ;;  %v7387_v20 = vand.u32 4294901760, %v5526_v61  ;;  %v1579_v59 = vand.u32 4294901760, %v1578_v60 }
  0xf1   : > { %1538 = vmatpush1.msra.mxu1 %v1537_v1  ;;  %1400 = vmatprep.subr.mxu0 %v5473_v14  ;;  %v1590_v13 = vsub.f32 %v5522_v2, %v7386_v62  ;;  %v5591_v1 = vand.u32 4294901760, %v378_v19  ;;  %v5599_v14 = vsub.f32 %v387_v28, %v5564_v44  ;;  %v7388_v62 = vand.u32 4294901760, %v5541_v23 }
  0xf2   : > { %1544 = vmatprep.subr.mxu1 %v1543_v15  ;;  %1402 = vmatpush1.msra.mxu0 %v5483_v45  ;;  %v1596_v4 = vsub.f32 %v5526_v61, %v7387_v20  ;;  %v5603_v15 = vsub.f32 %v386_v48, %v5574_v52  ;;  %v1585_v18 = vand.u32 4294901760, %v1584_v12  ;;  %v7389_v28 = vand.u32 4294901760, %v5529_v27 }
  0xf3   : > { %1550 = vmatpush1.msra.mxu1 %v1549_v49  ;;  %1404 = vmatprep.subr.mxu0 %v5495_v7  ;;  %v1602_v26 = vsub.f32 %v5541_v23, %v7388_v62  ;;  %v5615_v60 = vsub.f32 %v379_v6, %v5581_v10  ;;  %v1591_v48 = vand.u32 4294901760, %v1590_v13  ;;  %v5619_v62 = vsub.f32 %v378_v19, %v5591_v1 }
  0xf4   : > { %1556 = vmatprep.subr.mxu1 %v1555_v31  ;;  %1406 = vmatpush1.msra.mxu0 %v5485_v36  ;;  %v1608_v20 = vsub.f32 %v5529_v27, %v7389_v28  ;;  %v7391_v49 = vand.u32 4294901760, %v5558_v0  ;;  %v1597_v28 = vand.u32 4294901760, %v1596_v4  ;;  %v7125_v6 = vand.u32 4294901760, %v5599_v14 }
  0xf5   : > { %1562 = vmatpush1.msra.mxu1 %v1561_v32  ;;  %1408 = vmatprep.subr.mxu0 %v5518_v5  ;;  %7390 = vst [vmem:[#allocation48_spill] sm:$0xff] %v5619_v62  ;;  %v7392_v13 = vand.u32 4294901760, %v5546_v8  ;;  %v7393_v12 = vand.u32 4294901760, %v5585_v22  ;;  %v7124_v4 = vand.u32 4294901760, %v5615_v60  ;;  %v7123_v31 = vand.u32 4294901760, %v5619_v62 }
  0xf6   : > { %1568 = vmatprep.subr.mxu1 %v1567_v21  ;;  %v1614_v32 = vsub.f32 %v5558_v0, %v7391_v49  ;;  %1410 = vmatpush1.msra.mxu0 %v5510_v30  ;;  %v1603_v21 = vand.u32 4294901760, %v1602_v26  ;;  %v1609_v49 = vand.u32 4294901760, %v1608_v20 }
  0xf7   : > { %1574 = vmatpush1.msra.mxu1 %v1573_v33  ;;  %1412 = vmatprep.subr.mxu0 %v5548_v54  ;;  %v1620_v19 = vsub.f32 %v5546_v8, %v7392_v13  ;;  %v1626_v33 = vsub.f32 %v5585_v22, %v7393_v12 }
  0xf8   : > { %1580 = vmatprep.subr.mxu1 %v1579_v59  ;;  %1414 = vmatpush1.msra.mxu0 %v5538_v42  ;;  %v1615_v26 = vand.u32 4294901760, %v1614_v32  ;;  %v7394_v59 = vand.u32 4294901760, %v5572_v29 }
  0xf9   : > { %1586 = vmatpush1.msra.mxu1 %v1585_v18  ;;  %1416 = vmatprep.subr.mxu0 %v5564_v44  ;;  %v1638_v18 = vsub.f32 %v5599_v14, %v7125_v6  ;;  %v1621_v20 = vand.u32 4294901760, %v1620_v19  ;;  %v1627_v12 = vand.u32 4294901760, %v1626_v33  ;;  %v7396_v19 = vld [vmem:[#allocation45_spill] sm:$0xff] }
  0xfa   : > { %1592 = vmatprep.subr.mxu1 %v1591_v48  ;;  %v1632_v13 = vsub.f32 %v5572_v29, %v7394_v59  ;;  %1418 = vmatpush1.msra.mxu0 %v5574_v52  ;;  %v7395_v48 = vand.u32 4294901760, %v5603_v15  ;;  %v7411_v6 = vld [vmem:[#allocation37_spill] sm:$0xff] }
  0xfb   : > { %1598 = vmatpush1.msra.mxu1 %v1597_v28  ;;  %1420 = vmatprep.subr.mxu0 %v5581_v10  ;;  %v1650_v28 = vsub.f32 %v5615_v60, %v7124_v4  ;;  %v7410_v4 = vld [vmem:[#allocation39_spill] sm:$0xff] }
  0xfc   : > { %1604 = vmatprep.subr.mxu1 %v1603_v21  ;;  %v1644_v32 = vsub.f32 %v5603_v15, %v7395_v48  ;;  %1422 = vmatpush1.msra.mxu0 %v5591_v1  ;;  %v1633_v59 = vand.u32 4294901760, %v1632_v13  ;;  %v1656_v21 = vsub.f32 %v5619_v62, %v7123_v31  ;;  %v1639_v48 = vand.u32 4294901760, %v1638_v18  ;;  %v7397_v13 = vld [vmem:[#allocation22_spill] sm:$0xff]  ;;  %v7398_v18 = vld [vmem:[#allocation43_spill] sm:$0xff]  ;;  %v7409_v31 = vld [vmem:[#allocation36_spill] sm:$0xff] }
  0xfd   : > { %1610 = vmatpush1.msra.mxu1 %v1609_v49  ;;  %1455 = vmatprep.mubr.f32.mxu0 %v7297_v34  ;;  %v1651_v33 = vand.u32 4294901760, %v1650_v28  ;;  %v7402_v28 = vld [vmem:[#allocation26_spill] sm:$0xff] }
  0xfe   : > { %1616 = vmatprep.subr.mxu1 %v1615_v26  ;;  %1701 = vmatprep.subr.mxu0 %v5258_v63  ;;  %v1645_v49 = vand.u32 4294901760, %v1644_v32  ;;  %v1657_v26 = vand.u32 4294901760, %v1656_v21  ;;  %v7400_v32 = vld [vmem:[#allocation32_spill] sm:$0xff] }
  0xff   : > { %1461 = vmatmul.mubr.f32.vlgmr.msra.gmra.mxu0 %v7396_v19  ;;  %1622 = vmatpush1.msra.mxu1 %v1621_v20  ;;  %v7399_v20 = vld [vmem:[#allocation24_spill] sm:$0xff]  ;;  %v7412_v19 = vld [vmem:[#allocation33_spill] sm:$0xff] }
 0x100   : > { %1704 = vmatpush1.msra.mxu0 %v5253_v25  ;;  %1628 = vmatprep.subr.mxu1 %v1627_v12  ;;  %v7401_v12 = vld [vmem:[#allocation23_spill] sm:$0xff]  ;;  %v7404_v21 = vld [vmem:[#allocation28_spill] sm:$0xff] }
 0x101   : > { %1707 = vmatprep.subr.mxu0 %v5284_v24  ;;  %1634 = vmatpush1.msra.mxu1 %v1633_v59  ;;  %v7403_v59 = vld [vmem:[#allocation25_spill] sm:$0xff] }
 0x102   : > { %1710 = vmatpush1.msra.mxu0 %v5264_v47  ;;  %1640 = vmatprep.subr.mxu1 %v1639_v48  ;;  %v7405_v48 = vld [vmem:[#allocation27_spill] sm:$0xff] }
 0x103   : > { %1713 = vmatprep.subr.mxu0 %v5293_v38  ;;  %1646 = vmatpush1.msra.mxu1 %v1645_v49  ;;  %v7406_v49 = vld [vmem:[#allocation30_spill] sm:$0xff] }
 0x104   : > { %1716 = vmatpush1.msra.mxu0 %v5299_v41  ;;  %1652 = vmatprep.subr.mxu1 %v1651_v33  ;;  %v7407_v33 = vld [vmem:[#allocation29_spill] sm:$0xff] }
 0x105   : > { %1719 = vmatprep.subr.mxu0 %v5339_v17  ;;  %1658 = vmatpush1.msra.mxu1 %v1657_v26  ;;  %v7408_v26 = vld [vmem:[#allocation31_spill] sm:$0xff] }
 0x106   : > { %1691 = vmatprep.mubr.f32.mxu1 %v7297_v34  ;;  %1722 = vmatpush1.msra.mxu0 %v5307_v46 }
 0x107   : > { %1693 = vmatmul.mubr.f32.vlgmr.msra.gmra.mxu1 %v7360_v3  ;;  %1725 = vmatprep.subr.mxu0 %v5359_v39  ;;  %v7413_v3 = vld [vmem:[#allocation38_spill] sm:$0xff] }
 0x108   : > { %1837 = vmatprep.subr.mxu1 %v5234_v43  ;;  %1728 = vmatpush1.msra.mxu0 %v5345_v56 }
 0x109   : > { %1839 = vmatpush1.msra.mxu1 %v5236_v16  ;;  %1731 = vmatprep.subr.mxu0 %v5371_v35 }
 0x10a   : > { %1841 = vmatprep.subr.mxu1 %v5255_v50  ;;  %1734 = vmatpush1.msra.mxu0 %v5353_v9 }
 0x10b   : > { %1843 = vmatpush1.msra.mxu1 %v5241_v58  ;;  %1737 = vmatprep.subr.mxu0 %v5408_v53 }
 0x10c   : > { %1845 = vmatprep.subr.mxu1 %v5266_v51  ;;  %1740 = vmatpush1.msra.mxu0 %v5387_v37 }
 0x10d   : > { %1847 = vmatpush1.msra.mxu1 %v7397_v13  ;;  %1743 = vmatprep.subr.mxu0 %v7398_v18 }
 0x10e   : > { %1849 = vmatprep.subr.mxu1 %v7399_v20  ;;  %1746 = vmatpush1.msra.mxu0 %v7400_v32 }
 0x10f   : > { %1851 = vmatpush1.msra.mxu1 %v7401_v12  ;;  %1749 = vmatprep.subr.mxu0 %v5477_v11 }
 0x110   : > { %1853 = vmatprep.subr.mxu1 %v7402_v28  ;;  %1752 = vmatpush1.msra.mxu0 %v5452_v57 }
 0x111   : > { %1855 = vmatpush1.msra.mxu1 %v7403_v59  ;;  %1755 = vmatprep.subr.mxu0 %v5498_v40 }
 0x112   : > { %1857 = vmatprep.subr.mxu1 %v7404_v21  ;;  %1758 = vmatpush1.msra.mxu0 %v5463_v55 }
 0x113   : > { %1859 = vmatpush1.msra.mxu1 %v7405_v48  ;;  %1761 = vmatprep.subr.mxu0 %v5522_v2 }
 0x114   : > { %1861 = vmatprep.subr.mxu1 %v7406_v49  ;;  %1764 = vmatpush1.msra.mxu0 %v5526_v61 }
 0x115   : > { %1863 = vmatpush1.msra.mxu1 %v7407_v33  ;;  %1767 = vmatprep.subr.mxu0 %v5541_v23 }
 0x116   : > { %1865 = vmatprep.subr.mxu1 %v7408_v26  ;;  %1770 = vmatpush1.msra.mxu0 %v5529_v27  ;;  %v7414_v27 = vld [vmem:[#allocation44_spill] sm:$0xff] }
 0x117   : > { %1867 = vmatpush1.msra.mxu1 %v7409_v31  ;;  %1773 = vmatprep.subr.mxu0 %v5558_v0 }
 0x118   : > { %1869 = vmatprep.subr.mxu1 %v7410_v4  ;;  %1776 = vmatpush1.msra.mxu0 %v5546_v8 }
 0x119   : > { %1871 = vmatpush1.msra.mxu1 %v7411_v6  ;;  %1779 = vmatprep.subr.mxu0 %v5585_v22 }
 0x11a   : > { %1873 = vmatprep.subr.mxu1 %v7412_v19  ;;  %1782 = vmatpush1.msra.mxu0 %v5572_v29  ;;  %v7415_v29 = vld [vmem:[#allocation41_spill] sm:$0xff] }
 0x11b   : > { %1875 = vmatpush1.msra.mxu1 %v7413_v3  ;;  %1785 = vmatprep.subr.mxu0 %v5599_v14 }
 0x11c   : > { %1877 = vmatprep.subr.mxu1 %v7414_v27  ;;  %1788 = vmatpush1.msra.mxu0 %v5603_v15  ;;  %v7416_v27 = vand.u32 4294901760, %v5258_v63  ;;  %v7420_v63 = vand.u32 4294901760, %v5293_v38  ;;  %v7425_v38 = vand.u32 4294901760, %v5359_v39  ;;  %v7429_v39 = vand.u32 4294901760, %v5408_v53  ;;  %v500_v53 = vld [vmem:[#allocation2 + $0x3e0] sm:$0xff] }
 0x11d   : > { %1879 = vmatpush1.msra.mxu1 %v5483_v45  ;;  %1791 = vmatprep.subr.mxu0 %v5615_v60  ;;  %v7417_v45 = vand.u32 4294901760, %v5253_v25  ;;  %v7421_v25 = vand.u32 4294901760, %v5299_v41  ;;  %v7426_v41 = vand.u32 4294901760, %v5345_v56  ;;  %v7433_v56 = vand.u32 4294901760, %v5477_v11 }
 0x11e   : > { %1881 = vmatprep.subr.mxu1 %v5495_v7  ;;  %1794 = vmatpush1.msra.mxu0 %v5619_v62  ;;  %v7418_v62 = vand.u32 4294901760, %v5284_v24  ;;  %v7422_v24 = vand.u32 4294901760, %v5339_v17  ;;  %v7427_v17 = vand.u32 4294901760, %v5371_v35  ;;  %v492_v35 = vld [vmem:[#allocation2 + $0x3a0] sm:$0xff]  ;;  %v7436_v11 = vand.u32 4294901760, %v5463_v55  ;;  %v477_v55 = vld [vmem:[#allocation2 + $0x328] sm:$0xff] }
 0x11f   : > { %1827 = vmatprep.mubr.f32.mxu0 %v7297_v34  ;;  %1883 = vmatpush1.msra.mxu1 %v5485_v36  ;;  %v7419_v36 = vand.u32 4294901760, %v5264_v47  ;;  %v7423_v47 = vand.u32 4294901760, %v5307_v46  ;;  %v7428_v46 = vand.u32 4294901760, %v5353_v9  ;;  %v493_v9 = vld [vmem:[#allocation2 + $0x3a8] sm:$0xff] }
 0x120   : > { %1830 = vmatmul.mubr.f32.vlgmr.msra.gmra.mxu0 %v7415_v29  ;;  %1885 = vmatprep.subr.mxu1 %v5518_v5 }
 0x121   : > { %1945 = vmatprep.subr.mxu0 %v7416_v27  ;;  %1887 = vmatpush1.msra.mxu1 %v5510_v30  ;;  %v5780_v27 = vand.u32 4294901760, %v500_v53 }
 0x122   : > { %1949 = vmatpush1.msra.mxu0 %v7417_v45  ;;  %1889 = vmatprep.subr.mxu1 %v5548_v54  ;;  %v7424_v45 = vld [vmem:[#allocation42_spill] sm:$0xff] }
 0x123   : > { %1953 = vmatprep.subr.mxu0 %v7418_v62  ;;  %1891 = vmatpush1.msra.mxu1 %v5538_v42  ;;  %v7437_v62 = vand.u32 4294901760, %v5522_v2  ;;  %v5799_v2 = vsub.f32 %v500_v53, %v5780_v27 }
 0x124   : > { %1957 = vmatpush1.msra.mxu0 %v7419_v36  ;;  %1893 = vmatprep.subr.mxu1 %v5564_v44 }
 0x125   : > { %1961 = vmatprep.subr.mxu0 %v7420_v63  ;;  %1895 = vmatpush1.msra.mxu1 %v5574_v52  ;;  %v469_v63 = vld [vmem:[#allocation2 + $0x2e8] sm:$0xff] }
 0x126   : > { %1965 = vmatpush1.msra.mxu0 %v7421_v25  ;;  %1897 = vmatprep.subr.mxu1 %v5581_v10 }
 0x127   : > { %1969 = vmatprep.subr.mxu0 %v7422_v24  ;;  %1899 = vmatpush1.msra.mxu1 %v5591_v1  ;;  %v7445_v24 = vand.u32 4294901760, %v5546_v8 }
 0x128   : > { %1932 = vmatprep.mubr.f32.mxu1 %v7297_v34  ;;  %1973 = vmatpush1.msra.mxu0 %v7423_v47 }
 0x129   : > { %1936 = vmatmul.mubr.f32.vlgmr.msra.gmra.mxu1 %v7424_v45  ;;  %1977 = vmatprep.subr.mxu0 %v7425_v38  ;;  %v7139_v38 = vand.u32 4294901760, %v5799_v2 }
 0x12a   : > { %2111 = vmatprep.subr.mxu1 %v5234_v43  ;;  %1981 = vmatpush1.msra.mxu0 %v7426_v41  ;;  %v7430_v43 = vand.u32 4294901760, %v5387_v37  ;;  %v7435_v37 = vand.u32 4294901760, %v5498_v40  ;;  %v5790_v40 = vand.u32 4294901760, %v492_v35  ;;  %v461_v41 = vld [vmem:[#allocation2 + $0x2a8] sm:$0xff] }
 0x12b   : > { %2113 = vmatpush1.msra.mxu1 %v5236_v16  ;;  %1985 = vmatprep.subr.mxu0 %v7427_v17  ;;  %v7431_v16 = vand.u32 4294901760, %v7398_v18  ;;  %v484_v18 = vld [vmem:[#allocation2 + $0x360] sm:$0xff] }
 0x12c   : > { %2115 = vmatprep.subr.mxu1 %v5255_v50  ;;  %1989 = vmatpush1.msra.mxu0 %v7428_v46  ;;  %v7432_v50 = vand.u32 4294901760, %v7400_v32  ;;  %v7439_v32 = vand.u32 4294901760, %v5541_v23  ;;  %v468_v23 = vld [vmem:[#allocation2 + $0x2e0] sm:$0xff]  ;;  %v7449_v46 = vld [vmem:[#allocation47_spill] sm:$0xff] }
 0x12d   : > { %2117 = vmatpush1.msra.mxu1 %v5241_v58  ;;  %1993 = vmatprep.subr.mxu0 %v7429_v39  ;;  %v501_v58 = vld [vmem:[#allocation2 + $0x3e8] sm:$0xff]  ;;  %v5831_v47 = vand.u32 4294901760, %v468_v23  ;;  %v460_v17 = vld [vmem:[#allocation2 + $0x2a0] sm:$0xff]  ;;  %v7452_v39 = vand.u32 4294901760, %v5599_v14  ;;  %v5859_v14 = vand.u32 4294901760, %v461_v41 }
 0x12e   : > { %2119 = vmatprep.subr.mxu1 %v5266_v51  ;;  %1997 = vmatpush1.msra.mxu0 %v7430_v43  ;;  %v7434_v51 = vand.u32 4294901760, %v5452_v57  ;;  %v5778_v36 = vand.u32 4294901760, %v501_v58  ;;  %v485_v57 = vld [vmem:[#allocation2 + $0x368] sm:$0xff]  ;;  %v7453_v43 = vld [vmem:[#allocation44_spill] sm:$0xff] }
 0x12f   : > { %2121 = vmatpush1.msra.mxu1 %v7397_v13  ;;  %2001 = vmatprep.subr.mxu0 %v7431_v16  ;;  %v5788_v13 = vand.u32 4294901760, %v493_v9  ;;  %7448 = vst [vmem:[#allocation32_spill] sm:$0xff] %v5831_v47  ;;  %7456 = vst [vmem:[#allocation26_spill] sm:$0xff] %v5859_v14 }
 0x130   : > { %2123 = vmatprep.subr.mxu1 %v7399_v20  ;;  %2005 = vmatpush1.msra.mxu0 %v7432_v50  ;;  %v7438_v20 = vand.u32 4294901760, %v5526_v61 }
 0x131   : > { %2125 = vmatpush1.msra.mxu1 %v7401_v12  ;;  %2009 = vmatprep.subr.mxu0 %v7433_v56  ;;  %v5801_v12 = vand.u32 4294901760, %v485_v57  ;;  %v5820_v25 = vsub.f32 %v493_v9, %v5788_v13  ;;  %v7455_v56 = vld [vmem:[#allocation34_spill] sm:$0xff]  ;;  %v5861_v9 = vand.u32 4294901760, %v460_v17 }
 0x132   : > { %2127 = vmatprep.subr.mxu1 %v7402_v28  ;;  %2013 = vmatpush1.msra.mxu0 %v7434_v51  ;;  %v476_v28 = vld [vmem:[#allocation2 + $0x320] sm:$0xff] }
 0x133   : > { %2129 = vmatpush1.msra.mxu1 %v7403_v59  ;;  %2017 = vmatprep.subr.mxu0 %v7435_v37  ;;  %v5804_v59 = vsub.f32 %v501_v58, %v5778_v36  ;;  %v5835_v8 = vsub.f32 %v485_v57, %v5801_v12  ;;  %v7137_v16 = vand.u32 4294901760, %v5820_v25  ;;  %v452_v58 = vld [vmem:[#allocation2 + $0x260] sm:$0xff]  ;;  %7457 = vst [vmem:[#allocation25_spill] sm:$0xff] %v5861_v9  ;;  %v7458_v37 = vand.u32 4294901760, %v5615_v60 }
 0x134   : > { %2131 = vmatprep.subr.mxu1 %v7404_v21  ;;  %2021 = vmatpush1.msra.mxu0 %v7436_v11  ;;  %v7440_v21 = vld [vmem:[#allocation46_spill] sm:$0xff]  ;;  %v5872_v11 = vsub.f32 %v468_v23, %v5831_v47  ;;  %v5877_v57 = vsub.f32 %v5799_v2, %v7139_v38  ;;  %v7459_v60 = vld [vmem:[#allocation48_spill] sm:$0xff] }
 0x135   : > { %2133 = vmatpush1.msra.mxu1 %v7405_v48  ;;  %2025 = vmatprep.subr.mxu0 %v7437_v62  ;;  %v7441_v61 = vand.u32 4294901760, %v7440_v21  ;;  %v5809_v48 = vand.u32 4294901760, %v484_v18  ;;  %v7135_v62 = vand.u32 4294901760, %v5835_v8  ;;  %v7463_v21 = vld [vmem:[#allocation40_spill] sm:$0xff] }
 0x136   : > { %2135 = vmatprep.subr.mxu1 %v7406_v49  ;;  %2029 = vmatpush1.msra.mxu0 %v7438_v20  ;;  %v7443_v49 = vand.u32 4294901760, %v5558_v0  ;;  %v7447_v0 = vand.u32 4294901760, %v5585_v22  ;;  %v7460_v20 = vand.u32 4294901760, %v7459_v60 }
 0x137   : > { %2137 = vmatpush1.msra.mxu1 %v7407_v33  ;;  %2033 = vmatprep.subr.mxu0 %v7439_v32  ;;  %7442 = vst [vmem:[#allocation22_spill] sm:$0xff] %v5809_v48  ;;  %v5815_v33 = vsub.f32 %v492_v35, %v5790_v40  ;;  %v5841_v22 = vsub.f32 %v484_v18, %v5809_v48  ;;  %v453_v35 = vld [vmem:[#allocation2 + $0x268] sm:$0xff]  ;;  %v444_v18 = vld [vmem:[#allocation2 + $0x220] sm:$0xff] }
 0x138   : > { %2139 = vmatprep.subr.mxu1 %v7408_v26  ;;  %2037 = vmatpush1.msra.mxu0 %v7441_v61  ;;  %v5817_v26 = vand.u32 4294901760, %v477_v55  ;;  %v5894_v61 = vsub.f32 %v5820_v25, %v7137_v16 }
 0x139   : > { %2141 = vmatpush1.msra.mxu1 %v7409_v31  ;;  %2041 = vmatprep.subr.mxu0 %v7443_v49  ;;  %v5825_v31 = vand.u32 4294901760, %v476_v28  ;;  %v7136_v50 = vand.u32 4294901760, %v5815_v33  ;;  %v5901_v49 = vand.u32 4294901760, %v453_v35 }
 0x13a   : > { %2143 = vmatprep.subr.mxu1 %v7410_v4  ;;  %7444 = vst [vmem:[#allocation43_spill] sm:$0xff] %v5817_v26  ;;  %2045 = vmatpush1.msra.mxu0 %v7445_v24  ;;  %v7141_v4 = vand.u32 4294901760, %v5804_v59  ;;  %v5851_v53 = vsub.f32 %v477_v55, %v5817_v26  ;;  %v7133_v55 = vand.u32 4294901760, %v5841_v22  ;;  %v445_v24 = vld [vmem:[#allocation2 + $0x228] sm:$0xff] }
 0x13b   : > { %2145 = vmatpush1.msra.mxu1 %v7411_v6  ;;  %7446 = vst [vmem:[#allocation24_spill] sm:$0xff] %v5825_v31  ;;  %2049 = vmatprep.subr.mxu0 %v7447_v0  ;;  %v7450_v6 = vand.u32 4294901760, %v7449_v46  ;;  %v5857_v51 = vsub.f32 %v476_v28, %v5825_v31  ;;  %v7462_v28 = vld [vmem:[#allocation35_spill] sm:$0xff]  ;;  %v5899_v23 = vsub.f32 %v5815_v33, %v7136_v50  ;;  %7464 = vst [vmem:[#allocation27_spill] sm:$0xff] %v5901_v49 }
 0x13c   : > { %2147 = vmatprep.subr.mxu1 %v7412_v19  ;;  %v5843_v19 = vand.u32 4294901760, %v469_v63  ;;  %2102 = vmatprep.mubr.f32.mxu0 %v7297_v34  ;;  %v5907_v0 = vsub.f32 %v460_v17, %v5861_v9  ;;  %v5909_v46 = vand.u32 4294901760, %v444_v18  ;;  %v5922_v17 = vsub.f32 %v5835_v8, %v7135_v62 }
 0x13d   : > { %2053 = vmatpush1.msra.mxu0 %v7450_v6  ;;  %2149 = vmatpush1.msra.mxu1 %v7413_v3  ;;  %v7454_v3 = vand.u32 4294901760, %v5603_v15  ;;  %v5869_v15 = vsub.f32 %v5804_v59, %v7141_v4  ;;  %v7134_v6 = vand.u32 4294901760, %v5857_v51  ;;  %v413_v4 = vld [vmem:[#allocation2 + $0x128] sm:$0xff] }
 0x13e   : > { %7451 = vst [vmem:[#allocation23_spill] sm:$0xff] %v5843_v19  ;;  %2057 = vmatprep.subr.mxu0 %v7452_v39  ;;  %2151 = vmatprep.subr.mxu1 %v7453_v43  ;;  %v5887_v32 = vsub.f32 %v469_v63, %v5843_v19  ;;  %v7132_v63 = vand.u32 4294901760, %v5851_v53  ;;  %7465 = vst [vmem:[#allocation30_spill] sm:$0xff] %v5909_v46  ;;  %v5913_v39 = vsub.f32 %v461_v41, %v5859_v14 }
 0x13f   : > { %2061 = vmatpush1.msra.mxu0 %v7454_v3  ;;  %2153 = vmatpush1.msra.mxu1 %v7455_v56  ;;  %v2326_v43 = vand.u32 4294901760, %v5869_v15  ;;  %v7138_v3 = vand.u32 4294901760, %v5872_v11  ;;  %v5935_v56 = vand.u32 4294901760, %v445_v24 }
 0x140   : > { %2065 = vmatprep.subr.mxu0 %v7458_v37  ;;  %2155 = vmatprep.subr.mxu1 %v5495_v7  ;;  %v5883_v7 = vand.u32 4294901760, %v452_v58  ;;  %v437_v37 = vld [vmem:[#allocation2 + $0x1e8] sm:$0xff]  ;;  %v7140_v15 = vand.u32 4294901760, %v5887_v32  ;;  %v5945_v60 = vsub.f32 %v5851_v53, %v7132_v63  ;;  %v428_v63 = vld [vmem:[#allocation2 + $0x1a0] sm:$0xff] }
 0x141   : > { %2069 = vmatpush1.msra.mxu0 %v7460_v20  ;;  %2157 = vmatpush1.msra.mxu1 %v7462_v28  ;;  %7466 = vst [vmem:[#allocation29_spill] sm:$0xff] %v5935_v56  ;;  %v5948_v20 = vsub.f32 %v453_v35, %v5901_v49  ;;  %v5958_v28 = vsub.f32 %v5857_v51, %v7134_v6  ;;  %v5965_v35 = vand.u32 4294901760, %v437_v37 }
 0x142   : > { %7461 = vst [vmem:[#allocation28_spill] sm:$0xff] %v5883_v7  ;;  %2104 = vmatmul.mubr.f32.vlgmr.msra.gmra.mxu0 %v7463_v21  ;;  %2159 = vmatprep.subr.mxu1 %v5518_v5  ;;  %v2332_v5 = vand.u32 4294901760, %v5877_v57  ;;  %v5928_v41 = vsub.f32 %v452_v58, %v5883_v7  ;;  %v436_v57 = vld [vmem:[#allocation2 + $0x1e0] sm:$0xff]  ;;  %v2344_v58 = vand.u32 4294901760, %v5899_v23  ;;  %v7142_v23 = vand.u32 4294901760, %v5913_v39 }
 0x143   : > { %2215 = vmatprep.subr.mxu0 %v5778_v36  ;;  %2161 = vmatpush1.msra.mxu1 %v5510_v30  ;;  %v5933_v30 = vsub.f32 %v5841_v22, %v7133_v55  ;;  %v7143_v55 = vand.u32 4294901760, %v5907_v0  ;;  %7468 = vst [vmem:[#allocation36_spill] sm:$0xff] %v5965_v35  ;;  %v5972_v6 = vsub.f32 %v5872_v11, %v7138_v3 }
 0x144   : > { %2217 = vmatpush1.msra.mxu0 %v5780_v27  ;;  %2163 = vmatprep.subr.mxu1 %v5548_v54  ;;  %v2338_v54 = vand.u32 4294901760, %v5894_v61  ;;  %v429_v61 = vld [vmem:[#allocation2 + $0x1a8] sm:$0xff]  ;;  %v5984_v16 = vsub.f32 %v445_v24, %v5935_v56  ;;  %v2368_v24 = vand.u32 4294901760, %v5958_v28  ;;  %v6016_v29 = vsub.f32 %v437_v37, %v5965_v35 }
 0x145   : > { %2219 = vmatprep.subr.mxu0 %v5788_v13  ;;  %2165 = vmatpush1.msra.mxu1 %v5538_v42  ;;  %v5953_v42 = vsub.f32 %v444_v18, %v5909_v46  ;;  %v5967_v18 = vand.u32 4294901760, %v436_v57  ;;  %v2356_v62 = vand.u32 4294901760, %v5933_v30  ;;  %v5989_v3 = vand.u32 4294901760, %v429_v61 }
 0x146   : > { %2221 = vmatpush1.msra.mxu0 %v5790_v40  ;;  %2167 = vmatprep.subr.mxu1 %v5564_v44  ;;  %v2350_v44 = vand.u32 4294901760, %v5922_v17  ;;  %v421_v17 = vld [vmem:[#allocation2 + $0x168] sm:$0xff]  ;;  %v5991_v30 = vand.u32 4294901760, %v428_v63  ;;  %v2380_v28 = vand.u32 4294901760, %v5972_v6 }
 0x147   : > { %2223 = vmatprep.subr.mxu0 %v5801_v12  ;;  %7467 = vst [vmem:[#allocation31_spill] sm:$0xff] %v5953_v42  ;;  %2169 = vmatpush1.msra.mxu1 %v5574_v52  ;;  %7469 = vst [vmem:[#allocation39_spill] sm:$0xff] %v5967_v18  ;;  %v5980_v52 = vsub.f32 %v5887_v32, %v7140_v15  ;;  %v420_v15 = vld [vmem:[#allocation2 + $0x160] sm:$0xff]  ;;  %v6010_v50 = vsub.f32 %v436_v57, %v5967_v18  ;;  %v6013_v45 = vand.u32 4294901760, %v421_v17 }
 0x148   : > { %2225 = vmatpush1.msra.mxu0 %v5809_v48  ;;  %2171 = vmatprep.subr.mxu1 %v5581_v10  ;;  %v2362_v10 = vand.u32 4294901760, %v5945_v60  ;;  %7470 = vst [vmem:[#allocation37_spill] sm:$0xff] %v5989_v3  ;;  %7471 = vst [vmem:[#allocation33_spill] sm:$0xff] %v5991_v30  ;;  %v6005_v60 = vsub.f32 %v5907_v0, %v7143_v55  ;;  %v6020_v38 = vand.u32 4294901760, %v420_v15  ;;  %v7481_v48 = vand.u32 4294901760, %v6016_v29 }
 0x149   : > { %2227 = vmatprep.subr.mxu0 %v5817_v26  ;;  %2173 = vmatpush1.msra.mxu1 %v5591_v1  ;;  %v6000_v1 = vsub.f32 %v5913_v39, %v7142_v23  ;;  %7472 = vst [vmem:[#allocation38_spill] sm:$0xff] %v6013_v45  ;;  %v412_v23 = vld [vmem:[#allocation2 + $0x120] sm:$0xff]  ;;  %v2374_v55 = vand.u32 4294901760, %v5980_v52  ;;  %v6030_v37 = vsub.f32 %v428_v63, %v5991_v30  ;;  %v7478_v63 = vand.u32 4294901760, %v5953_v42 }
 0x14a   : > { %2206 = vmatprep.mubr.f32.mxu1 %v7297_v34  ;;  %2229 = vmatpush1.msra.mxu0 %v5825_v31  ;;  %7473 = vst [vmem:[#allocation46_spill] sm:$0xff] %v6020_v38  ;;  %v404_v31 = vld [vmem:[#allocation2 + $0xe0] sm:$0xff] }
 0x14b   : > { %2208 = vmatmul.mubr.f32.vlgmr.msra.gmra.mxu1 %v7463_v21  ;;  %2231 = vmatprep.subr.mxu0 %v5843_v19  ;;  %v405_v19 = vld [vmem:[#allocation2 + $0xe8] sm:$0xff]  ;;  %v2386_v6 = vand.u32 4294901760, %v6000_v1  ;;  %v6050_v26 = vsub.f32 %v5953_v42, %v7478_v63  ;;  %v6063_v63 = vsub.f32 %v420_v15, %v6020_v38 }
 0x14c   : > { %2327 = vmatprep.subr.mxu1 %v2326_v43  ;;  %2233 = vmatpush1.msra.mxu0 %v5831_v47  ;;  %v7474_v43 = vand.u32 4294901760, %v5928_v41  ;;  %v6037_v47 = vand.u32 4294901760, %v413_v4  ;;  %v397_v1 = vld [vmem:[#allocation2 + $0xa8] sm:$0xff] }
 0x14d   : > { %2333 = vmatpush1.msra.mxu1 %v2332_v5  ;;  %2235 = vmatprep.subr.mxu0 %v5859_v14  ;;  %v7475_v5 = vand.u32 4294901760, %v5948_v20  ;;  %v6045_v14 = vand.u32 4294901760, %v412_v23 }
 0x14e   : > { %v6025_v57 = vsub.f32 %v5928_v41, %v7474_v43  ;;  %2339 = vmatprep.subr.mxu1 %v2338_v54  ;;  %v6040_v43 = vsub.f32 %v429_v61, %v5989_v3  ;;  %2237 = vmatpush1.msra.mxu0 %v5861_v9  ;;  %v2392_v54 = vand.u32 4294901760, %v6005_v60  ;;  %v6053_v61 = vand.u32 4294901760, %v405_v19 }
 0x14f   : > { %v6035_v52 = vsub.f32 %v5948_v20, %v7475_v5  ;;  %2345 = vmatpush1.msra.mxu1 %v2344_v58  ;;  %7477 = vst [vmem:[#allocation44_spill] sm:$0xff] %v6045_v14  ;;  %v396_v5 = vld [vmem:[#allocation2 + $0xa0] sm:$0xff]  ;;  %2239 = vmatprep.subr.mxu0 %v5901_v49  ;;  %v6056_v58 = vand.u32 4294901760, %v404_v31  ;;  %v6059_v60 = vsub.f32 %v421_v17, %v6013_v45  ;;  %v6083_v9 = vand.u32 4294901760, %v397_v1 }
 0x150   : > { %7476 = vst [vmem:[#allocation47_spill] sm:$0xff] %v6040_v43  ;;  %2351 = vmatprep.subr.mxu1 %v2350_v44  ;;  %2241 = vmatpush1.msra.mxu0 %v5883_v7  ;;  %v2404_v42 = vand.u32 4294901760, %v6025_v57  ;;  %v7479_v44 = vand.u32 4294901760, %v5984_v16  ;;  %v6073_v7 = vand.u32 4294901760, %v396_v5  ;;  %v6076_v15 = vsub.f32 %v413_v4, %v6037_v47 }
 0x151   : > { %2357 = vmatpush1.msra.mxu1 %v2356_v62  ;;  %2243 = vmatprep.subr.mxu0 %v5935_v56  ;;  %v2398_v17 = vand.u32 4294901760, %v6035_v52  ;;  %v389_v62 = vld [vmem:[#allocation2 + $0x68] sm:$0xff]  ;;  %v6080_v57 = vsub.f32 %v412_v23, %v6045_v14  ;;  %v388_v52 = vld [vmem:[#allocation2 + $0x60] sm:$0xff]  ;;  %v2421_v4 = vsub.f32 %v6016_v29, %v7481_v48  ;;  %v7483_v23 = vand.u32 4294901760, %v6040_v43 }
 0x152   : > { %v2409_v49 = vsub.f32 %v5984_v16, %v7479_v44  ;;  %2363 = vmatprep.subr.mxu1 %v2362_v10  ;;  %2245 = vmatpush1.msra.mxu0 %v5909_v46  ;;  %v2416_v44 = vand.u32 4294901760, %v6050_v26  ;;  %v6091_v46 = vsub.f32 %v404_v31, %v6056_v58  ;;  %v6095_v26 = vsub.f32 %v405_v19, %v6053_v61  ;;  %v380_v31 = vld [vmem:[#allocation2 + $0x20] sm:$0xff] }
 0x153   : > { %2369 = vmatpush1.msra.mxu1 %v2368_v24  ;;  %7480 = vst [vmem:[#allocation34_spill] sm:$0xff] %v6080_v57  ;;  %2247 = vmatprep.subr.mxu0 %v5965_v35  ;;  %v381_v24 = vld [vmem:[#allocation2 + $0x28] sm:$0xff]  ;;  %v7482_v35 = vand.u32 4294901760, %v6010_v50  ;;  %v6101_v56 = vand.u32 4294901760, %v389_v62  ;;  %v2433_v19 = vsub.f32 %v6040_v43, %v7483_v23  ;;  %v6122_v23 = vsub.f32 %v397_v1, %v6083_v9 }
 0x154   : > { %2375 = vmatprep.subr.mxu1 %v2374_v55  ;;  %2249 = vmatpush1.msra.mxu0 %v5967_v18  ;;  %v2410_v10 = vand.u32 4294901760, %v2409_v49  ;;  %v6109_v18 = vsub.f32 %v396_v5, %v6073_v7  ;;  %v6111_v49 = vand.u32 4294901760, %v388_v52  ;;  %v2422_v5 = vand.u32 4294901760, %v2421_v4 }
 0x155   : > { %2381 = vmatpush1.msra.mxu1 %v2380_v28  ;;  %v2427_v55 = vsub.f32 %v6010_v50, %v7482_v35  ;;  %2251 = vmatprep.subr.mxu0 %v5989_v3  ;;  %v7485_v35 = vand.u32 4294901760, %v6030_v37  ;;  %v6118_v3 = vand.u32 4294901760, %v381_v24  ;;  %v7486_v28 = vand.u32 4294901760, %v6059_v60 }
 0x156   : > { %2387 = vmatprep.subr.mxu1 %v2386_v6  ;;  %7484 = vst [vmem:[#allocation48_spill] sm:$0xff] %v6109_v18  ;;  %2253 = vmatpush1.msra.mxu0 %v5991_v30  ;;  %v7487_v6 = vand.u32 4294901760, %v6063_v63  ;;  %v6140_v4 = vsub.f32 %v388_v52, %v6111_v49 }
 0x157   : > { %2393 = vmatpush1.msra.mxu1 %v2392_v54  ;;  %v2439_v48 = vsub.f32 %v6030_v37, %v7485_v35  ;;  %2255 = vmatprep.subr.mxu0 %v6013_v45  ;;  %v2445_v30 = vsub.f32 %v6059_v60, %v7486_v28  ;;  %v6128_v54 = vand.u32 4294901760, %v380_v31  ;;  %v2428_v35 = vand.u32 4294901760, %v2427_v55 }
 0x158   : > { %2399 = vmatprep.subr.mxu1 %v2398_v17  ;;  %2257 = vmatpush1.msra.mxu0 %v6020_v38  ;;  %v2451_v1 = vsub.f32 %v6063_v63, %v7487_v6  ;;  %v6136_v45 = vsub.f32 %v389_v62, %v6101_v56  ;;  %v2434_v17 = vand.u32 4294901760, %v2433_v19  ;;  %v7488_v28 = vand.u32 4294901760, %v6076_v15 }
 0x159   : > { %2405 = vmatpush1.msra.mxu1 %v2404_v42  ;;  %2259 = vmatprep.subr.mxu0 %v6037_v47  ;;  %v2440_v55 = vand.u32 4294901760, %v2439_v48  ;;  %v7489_v62 = vand.u32 4294901760, %v6080_v57  ;;  %v6152_v19 = vsub.f32 %v381_v24, %v6118_v3  ;;  %v2446_v52 = vand.u32 4294901760, %v2445_v30 }
 0x15a   : > { %2411 = vmatprep.subr.mxu1 %v2410_v10  ;;  %v2457_v43 = vsub.f32 %v6076_v15, %v7488_v28  ;;  %2261 = vmatpush1.msra.mxu0 %v6045_v14  ;;  %v6156_v28 = vsub.f32 %v380_v31, %v6128_v54  ;;  %v7491_v42 = vand.u32 4294901760, %v6095_v26  ;;  %v7182_v24 = vand.u32 4294901760, %v6136_v45 }
 0x15b   : > { %2417 = vmatpush1.msra.mxu1 %v2416_v44  ;;  %v2463_v6 = vsub.f32 %v6080_v57, %v7489_v62  ;;  %2263 = vmatprep.subr.mxu0 %v6053_v61  ;;  %v2452_v62 = vand.u32 4294901760, %v2451_v1  ;;  %v7492_v30 = vand.u32 4294901760, %v6091_v46  ;;  %v7493_v48 = vand.u32 4294901760, %v6122_v23 }
 0x15c   : > { %2423 = vmatprep.subr.mxu1 %v2422_v5  ;;  %7490 = vst [vmem:[#allocation35_spill] sm:$0xff] %v6156_v28  ;;  %v2469_v44 = vsub.f32 %v6095_v26, %v7491_v42  ;;  %2265 = vmatpush1.msra.mxu0 %v6056_v58  ;;  %v2458_v5 = vand.u32 4294901760, %v2457_v43  ;;  %v7181_v1 = vand.u32 4294901760, %v6152_v19  ;;  %v7180_v10 = vand.u32 4294901760, %v6156_v28 }
 0x15d   : > { %2429 = vmatpush1.msra.mxu1 %v2428_v35  ;;  %2267 = vmatprep.subr.mxu0 %v6083_v9  ;;  %v2475_v31 = vsub.f32 %v6091_v46, %v7492_v30  ;;  %v2464_v42 = vand.u32 4294901760, %v2463_v6  ;;  %v2481_v35 = vsub.f32 %v6122_v23, %v7493_v48 }
 0x15e   : > { %2435 = vmatprep.subr.mxu1 %v2434_v17  ;;  %2269 = vmatpush1.msra.mxu0 %v6073_v7  ;;  %v2470_v43 = vand.u32 4294901760, %v2469_v44  ;;  %v7494_v17 = vand.u32 4294901760, %v6109_v18 }
 0x15f   : > { %2441 = vmatpush1.msra.mxu1 %v2440_v55  ;;  %2271 = vmatprep.subr.mxu0 %v6101_v56  ;;  %v2493_v55 = vsub.f32 %v6136_v45, %v7182_v24  ;;  %v2476_v6 = vand.u32 4294901760, %v2475_v31  ;;  %v2482_v48 = vand.u32 4294901760, %v2481_v35  ;;  %v7496_v31 = vld [vmem:[#allocation45_spill] sm:$0xff]  ;;  %v7511_v24 = vld [vmem:[#allocation39_spill] sm:$0xff] }
 0x160   : > { %2447 = vmatprep.subr.mxu1 %v2446_v52  ;;  %v2487_v30 = vsub.f32 %v6109_v18, %v7494_v17  ;;  %2273 = vmatpush1.msra.mxu0 %v6111_v49  ;;  %v7495_v52 = vand.u32 4294901760, %v6140_v4 }
 0x161   : > { %2453 = vmatpush1.msra.mxu1 %v2452_v62  ;;  %2275 = vmatprep.subr.mxu0 %v6118_v3  ;;  %v2505_v62 = vsub.f32 %v6152_v19, %v7181_v1  ;;  %v7510_v1 = vld [vmem:[#allocation36_spill] sm:$0xff] }
 0x162   : > { %2459 = vmatprep.subr.mxu1 %v2458_v5  ;;  %v2499_v44 = vsub.f32 %v6140_v4, %v7495_v52  ;;  %2277 = vmatpush1.msra.mxu0 %v6128_v54  ;;  %v2488_v17 = vand.u32 4294901760, %v2487_v30  ;;  %v2511_v5 = vsub.f32 %v6156_v28, %v7180_v10  ;;  %v2494_v52 = vand.u32 4294901760, %v2493_v55  ;;  %v7497_v30 = vld [vmem:[#allocation22_spill] sm:$0xff]  ;;  %v7498_v55 = vld [vmem:[#allocation43_spill] sm:$0xff] }
 0x163   : > { %2465 = vmatpush1.msra.mxu1 %v2464_v42  ;;  %2310 = vmatprep.mubr.f32.mxu0 %v7297_v34  ;;  %v2506_v35 = vand.u32 4294901760, %v2505_v62  ;;  %v7502_v62 = vld [vmem:[#allocation32_spill] sm:$0xff]  ;;  %v7509_v10 = vld [vmem:[#allocation30_spill] sm:$0xff] }
 0x164   : > { %2471 = vmatprep.subr.mxu1 %v2470_v43  ;;  %2556 = vmatprep.subr.mxu0 %v5804_v59  ;;  %v2500_v42 = vand.u32 4294901760, %v2499_v44  ;;  %v2512_v43 = vand.u32 4294901760, %v2511_v5  ;;  %v7500_v44 = vld [vmem:[#allocation24_spill] sm:$0xff]  ;;  %v7504_v5 = vld [vmem:[#allocation26_spill] sm:$0xff] }
 0x165   : > { %2316 = vmatmul.mubr.f32.vlgmr.msra.gmra.mxu0 %v7496_v31  ;;  %2477 = vmatpush1.msra.mxu1 %v2476_v6  ;;  %v7499_v6 = vld [vmem:[#allocation31_spill] sm:$0xff]  ;;  %v7512_v31 = vld [vmem:[#allocation37_spill] sm:$0xff] }
 0x166   : > { %2559 = vmatpush1.msra.mxu0 %v5799_v2  ;;  %2483 = vmatprep.subr.mxu1 %v2482_v48  ;;  %v7501_v48 = vld [vmem:[#allocation23_spill] sm:$0xff] }
 0x167   : > { %2562 = vmatprep.subr.mxu0 %v5820_v25  ;;  %2489 = vmatpush1.msra.mxu1 %v2488_v17  ;;  %v7503_v17 = vld [vmem:[#allocation47_spill] sm:$0xff] }
 0x168   : > { %2565 = vmatpush1.msra.mxu0 %v5815_v33  ;;  %2495 = vmatprep.subr.mxu1 %v2494_v52  ;;  %v7505_v52 = vld [vmem:[#allocation25_spill] sm:$0xff] }
 0x169   : > { %2568 = vmatprep.subr.mxu0 %v5835_v8  ;;  %2501 = vmatpush1.msra.mxu1 %v2500_v42  ;;  %v7506_v42 = vld [vmem:[#allocation27_spill] sm:$0xff] }
 0x16a   : > { %2571 = vmatpush1.msra.mxu0 %v5841_v22  ;;  %2507 = vmatprep.subr.mxu1 %v2506_v35  ;;  %v7507_v35 = vld [vmem:[#allocation28_spill] sm:$0xff] }
 0x16b   : > { %2574 = vmatprep.subr.mxu0 %v5851_v53  ;;  %2513 = vmatpush1.msra.mxu1 %v2512_v43  ;;  %v7508_v43 = vld [vmem:[#allocation29_spill] sm:$0xff] }
 0x16c   : > { %2546 = vmatprep.mubr.f32.mxu1 %v7297_v34  ;;  %2577 = vmatpush1.msra.mxu0 %v5857_v51 }
 0x16d   : > { %2548 = vmatmul.mubr.f32.vlgmr.msra.gmra.mxu1 %v7463_v21  ;;  %2580 = vmatprep.subr.mxu0 %v5887_v32  ;;  %v7513_v21 = vld [vmem:[#allocation33_spill] sm:$0xff] }
 0x16e   : > { %2692 = vmatprep.subr.mxu1 %v5778_v36  ;;  %2583 = vmatpush1.msra.mxu0 %v5872_v11 }
 0x16f   : > { %2694 = vmatpush1.msra.mxu1 %v5780_v27  ;;  %2586 = vmatprep.subr.mxu0 %v5913_v39 }
 0x170   : > { %2696 = vmatprep.subr.mxu1 %v5788_v13  ;;  %2589 = vmatpush1.msra.mxu0 %v5907_v0 }
 0x171   : > { %2698 = vmatpush1.msra.mxu1 %v5790_v40  ;;  %2592 = vmatprep.subr.mxu0 %v5948_v20 }
 0x172   : > { %2700 = vmatprep.subr.mxu1 %v5801_v12  ;;  %2595 = vmatpush1.msra.mxu0 %v5928_v41 }
 0x173   : > { %2702 = vmatpush1.msra.mxu1 %v7497_v30  ;;  %2598 = vmatprep.subr.mxu0 %v5984_v16 }
 0x174   : > { %2704 = vmatprep.subr.mxu1 %v7498_v55  ;;  %2601 = vmatpush1.msra.mxu0 %v7499_v6 }
 0x175   : > { %2706 = vmatpush1.msra.mxu1 %v7500_v44  ;;  %2604 = vmatprep.subr.mxu0 %v6016_v29 }
 0x176   : > { %2708 = vmatprep.subr.mxu1 %v7501_v48  ;;  %2607 = vmatpush1.msra.mxu0 %v6010_v50 }
 0x177   : > { %2710 = vmatpush1.msra.mxu1 %v7502_v62  ;;  %2610 = vmatprep.subr.mxu0 %v7503_v17 }
 0x178   : > { %2712 = vmatprep.subr.mxu1 %v7504_v5  ;;  %2613 = vmatpush1.msra.mxu0 %v6030_v37 }
 0x179   : > { %2714 = vmatpush1.msra.mxu1 %v7505_v52  ;;  %2616 = vmatprep.subr.mxu0 %v6059_v60 }
 0x17a   : > { %2716 = vmatprep.subr.mxu1 %v7506_v42  ;;  %2619 = vmatpush1.msra.mxu0 %v6063_v63 }
 0x17b   : > { %2718 = vmatpush1.msra.mxu1 %v7507_v35  ;;  %2622 = vmatprep.subr.mxu0 %v6076_v15 }
 0x17c   : > { %2720 = vmatprep.subr.mxu1 %v7508_v43  ;;  %2625 = vmatpush1.msra.mxu0 %v6080_v57  ;;  %v7514_v57 = vld [vmem:[#allocation38_spill] sm:$0xff] }
 0x17d   : > { %2722 = vmatpush1.msra.mxu1 %v7509_v10  ;;  %2628 = vmatprep.subr.mxu0 %v6095_v26 }
 0x17e   : > { %2724 = vmatprep.subr.mxu1 %v7510_v1  ;;  %2631 = vmatpush1.msra.mxu0 %v6091_v46 }
 0x17f   : > { %2726 = vmatpush1.msra.mxu1 %v7511_v24  ;;  %2634 = vmatprep.subr.mxu0 %v6122_v23 }
 0x180   : > { %2728 = vmatprep.subr.mxu1 %v7512_v31  ;;  %2637 = vmatpush1.msra.mxu0 %v6109_v18  ;;  %v7515_v18 = vld [vmem:[#allocation41_spill] sm:$0xff] }
 0x181   : > { %2730 = vmatpush1.msra.mxu1 %v7513_v21  ;;  %2640 = vmatprep.subr.mxu0 %v6136_v45 }
 0x182   : > { %2732 = vmatprep.subr.mxu1 %v7514_v57  ;;  %2643 = vmatpush1.msra.mxu0 %v6140_v4  ;;  %v7516_v57 = vand.u32 4294901760, %v5804_v59  ;;  %v7520_v59 = vand.u32 4294901760, %v5835_v8  ;;  %v7525_v8 = vand.u32 4294901760, %v5887_v32  ;;  %v7531_v32 = vand.u32 4294901760, %v5984_v16 }
 0x183   : > { %2734 = vmatpush1.msra.mxu1 %v6020_v38  ;;  %2646 = vmatprep.subr.mxu0 %v6152_v19  ;;  %v7517_v38 = vand.u32 4294901760, %v5799_v2  ;;  %v7521_v2 = vand.u32 4294901760, %v5841_v22  ;;  %v503_v22 = vld [vmem:[#allocation2 + $0x3f8] sm:$0xff]  ;;  %v7533_v16 = vand.u32 4294901760, %v6016_v29 }
 0x184   : > { %2736 = vmatprep.subr.mxu1 %v6037_v47  ;;  %2649 = vmatpush1.msra.mxu0 %v6156_v28  ;;  %v7518_v28 = vand.u32 4294901760, %v5820_v25  ;;  %v7522_v25 = vand.u32 4294901760, %v5851_v53  ;;  %v7527_v53 = vand.u32 4294901760, %v5913_v39  ;;  %v839_v39 = vpop.f32.mrf.mxu1 }
 0x185   : > { %2682 = vmatprep.mubr.f32.mxu0 %v7297_v34  ;;  %2738 = vmatpush1.msra.mxu1 %v6045_v14  ;;  %v7519_v14 = vand.u32 4294901760, %v5815_v33  ;;  %v7523_v33 = vand.u32 4294901760, %v5857_v51  ;;  %v502_v51 = vld [vmem:[#allocation2 + $0x3f0] sm:$0xff] }
 0x186   : > { %2685 = vmatmul.mubr.f32.vlgmr.msra.gmra.mxu0 %v7515_v18  ;;  %2740 = vmatprep.subr.mxu1 %v6053_v61 }
 0x187   : > { %2800 = vmatprep.subr.mxu0 %v7516_v57  ;;  %2742 = vmatpush1.msra.mxu1 %v6056_v58  ;;  %v607_v57 = vpop.f32.mrf.mxu0 }
 0x188   : > { %2804 = vmatpush1.msra.mxu0 %v7517_v38  ;;  %2744 = vmatprep.subr.mxu1 %v6083_v9  ;;  %v7524_v38 = vld [vmem:[#allocation42_spill] sm:$0xff] }
 0x189   : > { %2808 = vmatprep.subr.mxu0 %v7518_v28  ;;  %2746 = vmatpush1.msra.mxu1 %v6073_v7  ;;  %v7528_v28 = vand.u32 4294901760, %v5907_v0  ;;  %v609_v0 = vpop.f32.mrf.mxu0 }
 0x18a   : > { %2812 = vmatpush1.msra.mxu0 %v7519_v14  ;;  %2748 = vmatprep.subr.mxu1 %v6101_v56  ;;  %v7526_v14 = vand.u32 4294901760, %v5872_v11  ;;  %v7529_v11 = vand.u32 4294901760, %v5948_v20  ;;  %v7532_v20 = vand.u32 4294901760, %v7499_v6 }
 0x18b   : > { %2816 = vmatprep.subr.mxu0 %v7520_v59  ;;  %2750 = vmatpush1.msra.mxu1 %v6111_v49  ;;  %v7534_v59 = vand.u32 4294901760, %v6010_v50  ;;  %v6332_v50 = vld [vmem:[%s4674_s11] sm:$0xff] }
 0x18c   : > { %2820 = vmatpush1.msra.mxu0 %v7521_v2  ;;  %2752 = vmatprep.subr.mxu1 %v6118_v3  ;;  %v487_v2 = vld [vmem:[#allocation2 + $0x378] sm:$0xff] }
 0x18d   : > { %2824 = vmatprep.subr.mxu0 %v7522_v25  ;;  %2754 = vmatpush1.msra.mxu1 %v6128_v54  ;;  %v336_v25 = vld [vmem:[%s4682_s28 + $0x8] sm:$0xff] }
 0x18e   : > { %2787 = vmatprep.mubr.f32.mxu1 %v7297_v34  ;;  %2828 = vmatpush1.msra.mxu0 %v7523_v33  ;;  %v7535_v33 = vand.u32 4294901760, %v7503_v17  ;;  %v6341_v17 = vand.u32 4294901760, %v487_v2  ;;  %vm344_vm1 = vcmp.ne.f32.partialorder %v336_v25, %v336_v25 }
 0x18f   : > { %2791 = vmatmul.mubr.f32.vlgmr.msra.gmra.mxu1 %v7524_v38  ;;  %2832 = vmatprep.subr.mxu0 %v7525_v8  ;;  %v7536_v8 = vand.u32 4294901760, %v6030_v37  ;;  %v7538_v37 = vand.u32 4294901760, %v6063_v63 }
 0x190   : > { %2966 = vmatprep.subr.mxu1 %v5778_v36  ;;  %2836 = vmatpush1.msra.mxu0 %v7526_v14  ;;  %v6294_v36 = vand.u32 4294901760, %v503_v22  ;;  %v7537_v14 = vand.u32 4294901760, %v6059_v60 }
 0x191   : > { %2968 = vmatpush1.msra.mxu1 %v5780_v27  ;;  %2840 = vmatprep.subr.mxu0 %v7527_v53  ;;  %v7530_v27 = vand.u32 4294901760, %v5928_v41  ;;  %v335_v41 = vld [vmem:[%s4682_s28] sm:$0xff]  ;;  %v6344_v53 = vld [vmem:[%s4674_s11 + $0x8] sm:$0xff] }
 0x192   : > { %2970 = vmatprep.subr.mxu1 %v5788_v13  ;;  %2844 = vmatpush1.msra.mxu0 %v7528_v28  ;;  %v6302_v13 = vand.u32 4294901760, %v502_v51  ;;  %vm343_vm0 = vcmp.ne.f32.partialorder %v335_v41, %v335_v41 }
 0x193   : > { %2972 = vmatpush1.msra.mxu1 %v5790_v40  ;;  %2848 = vmatprep.subr.mxu0 %v7529_v11  ;;  %v495_v40 = vld [vmem:[#allocation2 + $0x3b8] sm:$0xff]  ;;  %v351_v60 = vsel %vm343_vm0, %v6332_v50, %v335_v41 }
 0x194   : > { %2974 = vmatprep.subr.mxu1 %v5801_v12  ;;  %2852 = vmatpush1.msra.mxu0 %v7530_v27  ;;  %v494_v12 = vld [vmem:[#allocation2 + $0x3b0] sm:$0xff]  ;;  %v6321_v6 = vsub.f32 %v502_v51, %v6302_v13  ;;  %v479_v11 = vld [vmem:[#allocation2 + $0x338] sm:$0xff] }
 0x195   : > { %2976 = vmatpush1.msra.mxu1 %v7497_v30  ;;  %2856 = vmatprep.subr.mxu0 %v7531_v32  ;;  %v6312_v30 = vsub.f32 %v503_v22, %v6294_v36  ;;  %v6329_v29 = vand.u32 4294901760, %v494_v12  ;;  %v840_v32 = vadd.f32 %v839_v39, %v607_v57  ;;  %v7544_v39 = vand.u32 4294901760, %v6095_v26 }
 0x196   : > { %2978 = vmatprep.subr.mxu1 %v7498_v55  ;;  %2860 = vmatpush1.msra.mxu0 %v7532_v20  ;;  %v976_v55 = vpop.f32.mrf.mxu0  ;;  %v7540_v20 = vand.u32 4294901760, %v6076_v15  ;;  %v352_v15 = vsel %vm344_vm1, %v6344_v53, %v336_v25 }
 0x197   : > { %2980 = vmatpush1.msra.mxu1 %v7500_v44  ;;  %2864 = vmatprep.subr.mxu0 %v7533_v16  ;;  %v6323_v44 = vand.u32 4294901760, %v495_v40  ;;  %v7196_v22 = vand.u32 4294901760, %v6312_v30  ;;  %v6361_v63 = vsub.f32 %v494_v12, %v6329_v29  ;;  %v6378_v12 = vand.u32 4294901760, %v479_v11 }
 0x198   : > { %2982 = vmatprep.subr.mxu1 %v7501_v48  ;;  %2868 = vmatpush1.msra.mxu0 %v7534_v59  ;;  %v486_v48 = vld [vmem:[#allocation2 + $0x370] sm:$0xff]  ;;  %v978_v51 = vpop.f32.mrf.mxu0 }
 0x199   : > { %2984 = vmatpush1.msra.mxu1 %v7502_v62  ;;  %2872 = vmatprep.subr.mxu0 %v7535_v33  ;;  %v841_v62 = vpop.f32.mrf.mxu1  ;;  %v6355_v27 = vsub.f32 %v495_v40, %v6323_v44  ;;  %v6371_v57 = vsub.f32 %v6312_v30, %v7196_v22  ;;  %v977_v40 = vadd.f32 %v976_v55, %v840_v32  ;;  %v471_v33 = vld [vmem:[#allocation2 + $0x2f8] sm:$0xff]  ;;  %v7548_v32 = vld [vmem:[#allocation48_spill] sm:$0xff] }
 0x19a   : > { %2986 = vmatprep.subr.mxu1 %v7504_v5  ;;  %2876 = vmatpush1.msra.mxu0 %v7536_v8  ;;  %v478_v5 = vld [vmem:[#allocation2 + $0x330] sm:$0xff]  ;;  %7545 = vst [vmem:[#allocation31_spill] sm:$0xff] %v6378_v12  ;;  %v6394_v55 = vsub.f32 %v487_v2, %v6341_v17 }
 0x19b   : > { %2988 = vmatpush1.msra.mxu1 %v7505_v52  ;;  %2880 = vmatprep.subr.mxu0 %v7537_v14  ;;  %v1082_v28 = vpop.f32.mrf.mxu1  ;;  %v6349_v52 = vand.u32 4294901760, %v486_v48  ;;  %v6366_v59 = vand.u32 4294901760, %v478_v5  ;;  %v470_v8 = vld [vmem:[#allocation2 + $0x2f0] sm:$0xff] }
 0x19c   : > { %2990 = vmatprep.subr.mxu1 %v7506_v42  ;;  %2884 = vmatpush1.msra.mxu0 %v7538_v37  ;;  %v7195_v42 = vand.u32 4294901760, %v6321_v6  ;;  %v1250_v41 = vpop.f32.mrf.mxu0  ;;  %v7546_v37 = vand.u32 4294901760, %v6091_v46  ;;  %v7547_v46 = vand.u32 4294901760, %v6122_v23  ;;  %v6409_v23 = vand.u32 4294901760, %v471_v33 }
 0x19d   : > { %2992 = vmatpush1.msra.mxu1 %v7507_v35  ;;  %7539 = vst [vmem:[#allocation22_spill] sm:$0xff] %v6349_v52  ;;  %2888 = vmatprep.subr.mxu0 %v7540_v20  ;;  %v7541_v35 = vld [vmem:[#allocation34_spill] sm:$0xff]  ;;  %7543 = vst [vmem:[#allocation43_spill] sm:$0xff] %v6366_v59  ;;  %v1084_v14 = vpop.f32.mrf.mxu1  ;;  %v7549_v20 = vand.u32 4294901760, %v7548_v32 }
 0x19e   : > { %2994 = vmatprep.subr.mxu1 %v7508_v43  ;;  %v7542_v16 = vand.u32 4294901760, %v7541_v35  ;;  %v842_v43 = vadd.f32 %v841_v62, %v609_v0  ;;  %v6385_v0 = vsub.f32 %v486_v48, %v6349_v52  ;;  %v6390_v26 = vsub.f32 %v6321_v6, %v7195_v42  ;;  %v6400_v48 = vld [vmem:[#allocation2 + $0x2b8] sm:$0xff]  ;;  %v462_v62 = vld [vmem:[#allocation2 + $0x2b0] sm:$0xff]  ;;  %v1252_v2 = vpop.f32.mrf.mxu0  ;;  %7550 = vst [vmem:[#allocation24_spill] sm:$0xff] %v6409_v23 }
 0x19f   : > { %2996 = vmatpush1.msra.mxu1 %v7509_v10  ;;  %v359_v10 = vsub.f32 %v6332_v50, %v351_v60  ;;  %v1083_v50 = vadd.f32 %v1082_v28, %v977_v40  ;;  %v7192_v60 = vand.u32 4294901760, %v6361_v63  ;;  %v6412_v28 = vand.u32 4294901760, %v470_v8  ;;  %v454_v40 = vld [vmem:[#allocation2 + $0x270] sm:$0xff]  ;;  %2957 = vmatprep.mubr.f32.mxu0 %v7297_v34  ;;  %v423_v42 = vld [vmem:[#allocation2 + $0x178] sm:$0xff] }
 0x1a0   : > { %2892 = vmatpush1.msra.mxu0 %v7542_v16  ;;  %2998 = vmatprep.subr.mxu1 %v7510_v1  ;;  %v7194_v1 = vand.u32 4294901760, %v6355_v27  ;;  %v979_v25 = vadd.f32 %v978_v51, %v842_v43  ;;  %v6407_v51 = vsub.f32 %v478_v5, %v6366_v59  ;;  %v7552_v35 = vand.u32 4294901760, %v6136_v45  ;;  %v7553_v16 = vld [vmem:[#allocation38_spill] sm:$0xff] }
 0x1a1   : > { %2896 = vmatprep.subr.mxu0 %v7544_v39  ;;  %3000 = vmatpush1.msra.mxu1 %v7511_v24  ;;  %v360_v24 = vsub.f32 %v6344_v53, %v352_v15  ;;  %7551 = vst [vmem:[#allocation23_spill] sm:$0xff] %v6412_v28  ;;  %v1251_v15 = vadd.f32 %v1250_v41, %v1083_v50  ;;  %v367_v43 = vand.u32 2147483647, %v359_v10  ;;  %v7554_v5 = vand.u32 4294901760, %v6140_v4  ;;  %v7555_v39 = vld [vmem:[#allocation46_spill] sm:$0xff]  ;;  %v455_v50 = vld [vmem:[#allocation2 + $0x278] sm:$0xff] }
 0x1a2   : > { %2900 = vmatpush1.msra.mxu0 %v7546_v37  ;;  %3002 = vmatprep.subr.mxu1 %v7512_v31  ;;  %v3181_v31 = vand.u32 4294901760, %v6371_v57  ;;  %v1085_v53 = vadd.f32 %v1084_v14, %v979_v25  ;;  %v6429_v45 = vsub.f32 %v6355_v27, %v7194_v1  ;;  %v6431_v41 = vand.u32 4294901760, %v462_v62 }
 0x1a3   : > { %2904 = vmatprep.subr.mxu0 %v7547_v46  ;;  %3004 = vmatpush1.msra.mxu1 %v7513_v21  ;;  %v6418_v21 = vsub.f32 %v479_v11, %v6378_v12  ;;  %v6424_v46 = vand.u32 4294901760, %v6400_v48  ;;  %v7189_v10 = vand.u32 4294901760, %v6394_v55  ;;  %v7558_v11 = vand.u32 4294901760, %v6152_v19 }
 0x1a4   : > { %2908 = vmatpush1.msra.mxu0 %v7549_v20  ;;  %3006 = vmatprep.subr.mxu1 %v7553_v16  ;;  %7557 = vst [vmem:[#allocation47_spill] sm:$0xff] %v6431_v41  ;;  %v1253_v4 = vadd.f32 %v1252_v2, %v1085_v53  ;;  %v368_v25 = vand.u32 2147483647, %v360_v24  ;;  %v7190_v32 = vand.u32 4294901760, %v6385_v0  ;;  %v446_v20 = vld [vmem:[#allocation2 + $0x230] sm:$0xff]  ;;  %v6449_v19 = vand.u32 4294901760, %v454_v40 }
 0x1a5   : > { %2912 = vmatprep.subr.mxu0 %v7552_v35  ;;  %3008 = vmatpush1.msra.mxu1 %v7555_v39  ;;  %v1354_v37 = vpop.f32.mrf.mxu1  ;;  %7556 = vst [vmem:[#allocation32_spill] sm:$0xff] %v6424_v46  ;;  %v7559_v35 = vld [vmem:[#allocation35_spill] sm:$0xff]  ;;  %v6452_v24 = vsub.f32 %v471_v33, %v6409_v23  ;;  %v7562_v2 = vld [vmem:[#allocation44_spill] sm:$0xff]  ;;  %v6463_v33 = vand.u32 4294901760, %v455_v50 }
 0x1a6   : > { %2916 = vmatpush1.msra.mxu0 %v7554_v5  ;;  %3010 = vmatprep.subr.mxu1 %v6037_v47  ;;  %v1355_v14 = vadd.f32 %v1354_v37, %v1251_v15  ;;  %v7560_v16 = vand.u32 4294901760, %v7559_v35  ;;  %v6442_v5 = vsub.f32 %v470_v8, %v6412_v28  ;;  %v6447_v47 = vsub.f32 %v6361_v63, %v7192_v60  ;;  %v7563_v53 = vld [vmem:[#allocation40_spill] sm:$0xff]  ;;  %v447_v8 = vld [vmem:[#allocation2 + $0x238] sm:$0xff] }
 0x1a7   : > { %2920 = vmatprep.subr.mxu0 %v7558_v11  ;;  %v1356_v39 = vpop.f32.mrf.mxu1  ;;  %7561 = vst [vmem:[#allocation26_spill] sm:$0xff] %v6449_v19  ;;  %3012 = vmatpush1.msra.mxu1 %v7562_v2  ;;  %v7191_v11 = vand.u32 4294901760, %v6418_v21  ;;  %v7193_v35 = vand.u32 4294901760, %v6407_v51  ;;  %7564 = vst [vmem:[#allocation25_spill] sm:$0xff] %v6463_v33  ;;  %v6468_v2 = vsub.f32 %v6394_v55, %v7189_v10  ;;  %v430_v10 = vld [vmem:[#allocation2 + $0x1b0] sm:$0xff] }
 0x1a8   : > { %2924 = vmatpush1.msra.mxu0 %v7560_v16  ;;  %v3924_v15 = vmul.f32 %v1355_v14, %v367_v43  ;;  %v1357_v37 = vadd.f32 %v1356_v39, %v1253_v4  ;;  %3014 = vmatprep.subr.mxu1 %v6053_v61  ;;  %v6461_v16 = vsub.f32 %v462_v62, %v6431_v41  ;;  %v6470_v43 = vand.u32 4294901760, %v446_v20 }
 0x1a9   : > { %2959 = vmatmul.mubr.f32.vlgmr.msra.gmra.mxu0 %v7563_v53  ;;  %3070 = vmatprep.subr.mxu0 %v6294_v36  ;;  %v3187_v61 = vand.u32 4294901760, %v6390_v26  ;;  %v6483_v14 = vsub.f32 %v6385_v0, %v7190_v32  ;;  %v6490_v39 = vand.u32 4294901760, %v447_v8  ;;  %v7197_v26 = vand.u32 4294901760, %v6452_v24 }
 0x1aa   : > { %7565 = vst [vmem:[#allocation27_spill] sm:$0xff] %v6470_v43  ;;  %3016 = vmatpush1.msra.mxu1 %v6056_v58  ;;  %3072 = vmatpush1.msra.mxu0 %v6302_v13  ;;  %3932 = vst [vmem:[%s6475_s12] sm:$0xff] %v3924_v15  ;;  %v3925_v62 = vmul.f32 %v1357_v37, %v368_v25  ;;  %v6488_v58 = vsub.f32 %v454_v40, %v6449_v19  ;;  %v439_v15 = vld [vmem:[#allocation2 + $0x1f8] sm:$0xff]  ;;  %v438_v25 = vld [vmem:[#allocation2 + $0x1f0] sm:$0xff] }
 0x1ab   : > { %3018 = vmatprep.subr.mxu1 %v6083_v9  ;;  %3074 = vmatprep.subr.mxu0 %v6323_v44  ;;  %7567 = vst [vmem:[#allocation29_spill] sm:$0xff] %v6490_v39  ;;  %v6495_v37 = vsub.f32 %v6400_v48, %v6424_v46  ;;  %v3199_v9 = vand.u32 4294901760, %v6447_v47  ;;  %v6504_v40 = vsub.f32 %v6418_v21, %v7191_v11  ;;  %v7198_v48 = vand.u32 4294901760, %v6442_v5 }
 0x1ac   : > { %7566 = vst [vmem:[#allocation28_spill] sm:$0xff] %v6488_v58  ;;  %3020 = vmatpush1.msra.mxu1 %v6073_v7  ;;  %3076 = vmatpush1.msra.mxu0 %v6329_v29  ;;  %3933 = vst [vmem:[%s6475_s12 + $0x8] sm:$0xff] %v3925_v62  ;;  %v6509_v32 = vsub.f32 %v6407_v51, %v7193_v35  ;;  %v3205_v7 = vand.u32 4294901760, %v6468_v2  ;;  %v6516_v47 = vsub.f32 %v446_v20, %v6470_v43  ;;  %v431_v62 = vld [vmem:[#allocation2 + $0x1b8] sm:$0xff]  ;;  %v422_v20 = vld [vmem:[#allocation2 + $0x170] sm:$0xff] }
 0x1ad   : > { %3022 = vmatprep.subr.mxu1 %v6101_v56  ;;  %3078 = vmatprep.subr.mxu0 %v6341_v17  ;;  %v7199_v11 = vand.u32 4294901760, %v6461_v16  ;;  %v6520_v60 = vsub.f32 %v455_v50, %v6463_v33  ;;  %v3211_v35 = vand.u32 4294901760, %v6483_v14  ;;  %v6525_v56 = vand.u32 4294901760, %v439_v15  ;;  %v414_v14 = vld [vmem:[#allocation2 + $0x130] sm:$0xff] }
 0x1ae   : > { %7568 = vst [vmem:[#allocation30_spill] sm:$0xff] %v6516_v47  ;;  %3024 = vmatpush1.msra.mxu1 %v6111_v49  ;;  %3080 = vmatpush1.msra.mxu0 %v6349_v52  ;;  %v6527_v1 = vand.u32 4294901760, %v438_v25  ;;  %v6529_v2 = vand.u32 4294901760, %v430_v10  ;;  %v6536_v50 = vsub.f32 %v6452_v24, %v7197_v26  ;;  %v6541_v22 = vsub.f32 %v447_v8, %v6490_v39  ;;  %v398_v52 = vld [vmem:[#allocation2 + $0xb0] sm:$0xff] }
 0x1af   : > { %7569 = vst [vmem:[#allocation36_spill] sm:$0xff] %v6525_v56  ;;  %3026 = vmatprep.subr.mxu1 %v6118_v3  ;;  %3082 = vmatprep.subr.mxu0 %v6378_v12  ;;  %v3217_v3 = vand.u32 4294901760, %v6504_v40  ;;  %v3223_v4 = vand.u32 4294901760, %v6509_v32  ;;  %v6550_v26 = vsub.f32 %v6442_v5, %v7198_v48  ;;  %v6552_v49 = vand.u32 4294901760, %v431_v62  ;;  %v415_v32 = vld [vmem:[#allocation2 + $0x138] sm:$0xff]  ;;  %v406_v12 = vld [vmem:[#allocation2 + $0xf0] sm:$0xff] }
 0x1b0   : > { %7570 = vst [vmem:[#allocation39_spill] sm:$0xff] %v6527_v1  ;;  %7571 = vst [vmem:[#allocation37_spill] sm:$0xff] %v6529_v2  ;;  %3028 = vmatpush1.msra.mxu1 %v6128_v54  ;;  %3061 = vmatprep.mubr.f32.mxu1 %v7297_v34  ;;  %v6559_v54 = vsub.f32 %v6461_v16, %v7199_v11  ;;  %v6562_v40 = vand.u32 4294901760, %v422_v20  ;;  %v6569_v38 = vsub.f32 %v438_v25, %v6527_v1 }
 0x1b1   : > { %7572 = vst [vmem:[#allocation33_spill] sm:$0xff] %v6552_v49  ;;  %3084 = vmatpush1.msra.mxu0 %v6366_v59  ;;  %3063 = vmatmul.mubr.f32.vlgmr.msra.gmra.mxu1 %v7563_v53  ;;  %v6572_v18 = vsub.f32 %v430_v10, %v6529_v2  ;;  %v6574_v11 = vand.u32 4294901760, %v423_v42  ;;  %v6577_v8 = vsub.f32 %v439_v15, %v6525_v56  ;;  %v3229_v48 = vand.u32 4294901760, %v6536_v50  ;;  %v407_v59 = vld [vmem:[#allocation2 + $0xf8] sm:$0xff] }
 0x1b2   : > { %7573 = vst [vmem:[#allocation34_spill] sm:$0xff] %v6562_v40  ;;  %3086 = vmatprep.subr.mxu0 %v6409_v23  ;;  %3182 = vmatprep.subr.mxu1 %v3181_v31  ;;  %v7575_v23 = vand.u32 4294901760, %v6495_v37  ;;  %v7576_v31 = vand.u32 4294901760, %v6488_v58  ;;  %v7577_v15 = vand.u32 4294901760, %v6429_v45  ;;  %v6594_v50 = vand.u32 4294901760, %v415_v32 }
 0x1b3   : > { %7574 = vst [vmem:[#allocation48_spill] sm:$0xff] %v6574_v11  ;;  %3088 = vmatpush1.msra.mxu0 %v6412_v28  ;;  %3188 = vmatpush1.msra.mxu1 %v3187_v61  ;;  %v3235_v61 = vand.u32 4294901760, %v6550_v26  ;;  %v6596_v28 = vand.u32 4294901760, %v414_v14  ;;  %v7579_v10 = vand.u32 4294901760, %v6520_v60  ;;  %v6607_v45 = vsub.f32 %v422_v20, %v6562_v40 }
 0x1b4   : > { %v3240_v57 = vsub.f32 %v6495_v37, %v7575_v23  ;;  %v6587_v25 = vsub.f32 %v6488_v58, %v7576_v31  ;;  %3090 = vmatprep.subr.mxu0 %v6424_v46  ;;  %3194 = vmatprep.subr.mxu1 %v7577_v15  ;;  %v6599_v23 = vsub.f32 %v431_v62, %v6552_v49  ;;  %v3247_v31 = vand.u32 4294901760, %v6559_v54 }
 0x1b5   : > { %7578 = vst [vmem:[#allocation38_spill] sm:$0xff] %v6596_v28  ;;  %3092 = vmatpush1.msra.mxu0 %v6431_v41  ;;  %3200 = vmatpush1.msra.mxu1 %v3199_v9  ;;  %v3252_v46 = vsub.f32 %v6520_v60, %v7579_v10  ;;  %v7580_v26 = vand.u32 4294901760, %v6516_v47  ;;  %v6615_v62 = vand.u32 4294901760, %v407_v59  ;;  %v6618_v54 = vand.u32 4294901760, %v406_v12  ;;  %v399_v41 = vld [vmem:[#allocation2 + $0xb8] sm:$0xff] }
 0x1b6   : > { %3094 = vmatprep.subr.mxu0 %v6463_v33  ;;  %3206 = vmatprep.subr.mxu1 %v3205_v7  ;;  %v6621_v10 = vsub.f32 %v423_v42, %v6574_v11  ;;  %v3241_v20 = vand.u32 4294901760, %v3240_v57  ;;  %v6631_v9 = vsub.f32 %v414_v14, %v6596_v28  ;;  %v6634_v58 = vand.u32 4294901760, %v398_v52  ;;  %v390_v14 = vld [vmem:[#allocation2 + $0x70] sm:$0xff] }
 0x1b7   : > { %v6612_v15 = vsub.f32 %v6516_v47, %v7580_v26  ;;  %3096 = vmatpush1.msra.mxu0 %v6449_v19  ;;  %3212 = vmatpush1.msra.mxu1 %v3211_v35  ;;  %v3259_v26 = vand.u32 4294901760, %v6587_v25  ;;  %v7581_v47 = vand.u32 4294901760, %v6541_v22  ;;  %v391_v35 = vld [vmem:[#allocation2 + $0x78] sm:$0xff]  ;;  %v6637_v57 = vsub.f32 %v415_v32, %v6594_v50 }
 0x1b8   : > { %3098 = vmatprep.subr.mxu0 %v6490_v39  ;;  %3218 = vmatprep.subr.mxu1 %v3217_v3  ;;  %7582 = vst [vmem:[#allocation46_spill] sm:$0xff] %v6631_v9  ;;  %v6641_v33 = vand.u32 4294901760, %v399_v41  ;;  %v7583_v42 = vand.u32 4294901760, %v6577_v8  ;;  %v6649_v32 = vsub.f32 %v406_v12, %v6618_v54  ;;  %v382_v12 = vld [vmem:[#allocation2 + $0x30] sm:$0xff] }
 0x1b9   : > { %v3264_v7 = vsub.f32 %v6541_v22, %v7581_v47  ;;  %3100 = vmatpush1.msra.mxu0 %v6470_v43  ;;  %3224 = vmatpush1.msra.mxu1 %v3223_v4  ;;  %v3253_v47 = vand.u32 4294901760, %v3252_v46  ;;  %v3271_v25 = vand.u32 4294901760, %v6612_v15  ;;  %v383_v46 = vld [vmem:[#allocation2 + $0x38] sm:$0xff]  ;;  %v6653_v15 = vsub.f32 %v407_v59, %v6615_v62 }
 0x1ba   : > { %3102 = vmatprep.subr.mxu0 %v6525_v56  ;;  %3230 = vmatprep.subr.mxu1 %v3229_v48  ;;  %v3276_v39 = vsub.f32 %v6577_v8, %v7583_v42  ;;  %v7584_v56 = vand.u32 4294901760, %v6569_v38  ;;  %v6659_v43 = vand.u32 4294901760, %v391_v35  ;;  %v7585_v4 = vand.u32 4294901760, %v6599_v23 }
 0x1bb   : > { %3104 = vmatpush1.msra.mxu0 %v6527_v1  ;;  %3236 = vmatpush1.msra.mxu1 %v3235_v61  ;;  %v3265_v3 = vand.u32 4294901760, %v3264_v7  ;;  %v6667_v1 = vsub.f32 %v398_v52, %v6634_v58  ;;  %v6669_v61 = vand.u32 4294901760, %v390_v14  ;;  %v7588_v7 = vand.u32 4294901760, %v6621_v10 }
 0x1bc   : > { %v3282_v48 = vsub.f32 %v6569_v38, %v7584_v56  ;;  %3106 = vmatprep.subr.mxu0 %v6552_v49  ;;  %3242 = vmatprep.subr.mxu1 %v3241_v20  ;;  %v3288_v59 = vsub.f32 %v6599_v23, %v7585_v4  ;;  %v7587_v56 = vand.u32 4294901760, %v6572_v18  ;;  %v6676_v49 = vand.u32 4294901760, %v383_v46 }
 0x1bd   : > { %7586 = vst [vmem:[#allocation35_spill] sm:$0xff] %v6667_v1  ;;  %3108 = vmatpush1.msra.mxu0 %v6529_v2  ;;  %3248 = vmatpush1.msra.mxu1 %v3247_v31  ;;  %v6680_v4 = vsub.f32 %v399_v41, %v6641_v33  ;;  %v3277_v52 = vand.u32 4294901760, %v3276_v39  ;;  %v3300_v2 = vsub.f32 %v6621_v10, %v7588_v7  ;;  %v6686_v31 = vand.u32 4294901760, %v382_v12 }
 0x1be   : > { %v3294_v42 = vsub.f32 %v6572_v18, %v7587_v56  ;;  %3110 = vmatprep.subr.mxu0 %v6574_v11  ;;  %3254 = vmatprep.subr.mxu1 %v3253_v47  ;;  %v3283_v56 = vand.u32 4294901760, %v3282_v48  ;;  %v7589_v20 = vand.u32 4294901760, %v6607_v45  ;;  %v6694_v11 = vsub.f32 %v391_v35, %v6659_v43 }
 0x1bf   : > { %3112 = vmatpush1.msra.mxu0 %v6562_v40  ;;  %3260 = vmatpush1.msra.mxu1 %v3259_v26  ;;  %v3289_v39 = vand.u32 4294901760, %v3288_v59  ;;  %v6698_v47 = vsub.f32 %v390_v14, %v6669_v61  ;;  %v7590_v7 = vand.u32 4294901760, %v6637_v57  ;;  %v7591_v35 = vand.u32 4294901760, %v6631_v9 }
 0x1c0   : > { %v3306_v41 = vsub.f32 %v6607_v45, %v7589_v20  ;;  %3114 = vmatprep.subr.mxu0 %v6594_v50  ;;  %3266 = vmatprep.subr.mxu1 %v3265_v3  ;;  %v3295_v48 = vand.u32 4294901760, %v3294_v42  ;;  %v6710_v59 = vsub.f32 %v383_v46, %v6676_v49  ;;  %v3301_v14 = vand.u32 4294901760, %v3300_v2 }
 0x1c1   : > { %v3312_v19 = vsub.f32 %v6637_v57, %v7590_v7  ;;  %3116 = vmatpush1.msra.mxu0 %v6596_v28  ;;  %3272 = vmatpush1.msra.mxu1 %v3271_v25  ;;  %v3318_v20 = vsub.f32 %v6631_v9, %v7591_v35  ;;  %v6714_v7 = vsub.f32 %v382_v12, %v6686_v31  ;;  %v7593_v26 = vand.u32 4294901760, %v6653_v15 }
 0x1c2   : > { %3118 = vmatprep.subr.mxu0 %v6615_v62  ;;  %3278 = vmatprep.subr.mxu1 %v3277_v52  ;;  %v3307_v35 = vand.u32 4294901760, %v3306_v41  ;;  %v7238_v46 = vand.u32 4294901760, %v6694_v11  ;;  %v7594_v2 = vand.u32 4294901760, %v6649_v32  ;;  %v7595_v42 = vand.u32 4294901760, %v6680_v4 }
 0x1c3   : > { %7592 = vst [vmem:[#allocation44_spill] sm:$0xff] %v6714_v7  ;;  %v3324_v25 = vsub.f32 %v6653_v15, %v7593_v26  ;;  %3120 = vmatpush1.msra.mxu0 %v6618_v54  ;;  %3284 = vmatpush1.msra.mxu1 %v3283_v56  ;;  %v3313_v52 = vand.u32 4294901760, %v3312_v19  ;;  %v3319_v26 = vand.u32 4294901760, %v3318_v20  ;;  %v7237_v41 = vand.u32 4294901760, %v6710_v59 }
 0x1c4   : > { %3122 = vmatprep.subr.mxu0 %v6641_v33  ;;  %3290 = vmatprep.subr.mxu1 %v3289_v39  ;;  %v3330_v12 = vsub.f32 %v6649_v32, %v7594_v2  ;;  %v3336_v56 = vsub.f32 %v6680_v4, %v7595_v42  ;;  %v7596_v39 = vand.u32 4294901760, %v6667_v1  ;;  %v7236_v3 = vand.u32 4294901760, %v6714_v7 }
 0x1c5   : > { %3124 = vmatpush1.msra.mxu0 %v6634_v58  ;;  %3296 = vmatpush1.msra.mxu1 %v3295_v48  ;;  %v3325_v19 = vand.u32 4294901760, %v3324_v25  ;;  %v3348_v48 = vsub.f32 %v6694_v11, %v7238_v46  ;;  %v7614_v46 = vld [vmem:[#allocation33_spill] sm:$0xff] }
 0x1c6   : > { %3126 = vmatprep.subr.mxu0 %v6659_v43  ;;  %3302 = vmatprep.subr.mxu1 %v3301_v14  ;;  %v3342_v2 = vsub.f32 %v6667_v1, %v7596_v39  ;;  %v3331_v20 = vand.u32 4294901760, %v3330_v12  ;;  %v7597_v14 = vand.u32 4294901760, %v6698_v47  ;;  %v3337_v42 = vand.u32 4294901760, %v3336_v56  ;;  %v7598_v12 = vld [vmem:[#allocation45_spill] sm:$0xff] }
 0x1c7   : > { %3128 = vmatpush1.msra.mxu0 %v6669_v61  ;;  %3308 = vmatpush1.msra.mxu1 %v3307_v35  ;;  %v3360_v35 = vsub.f32 %v6710_v59, %v7237_v41  ;;  %v7613_v41 = vld [vmem:[#allocation39_spill] sm:$0xff] }
 0x1c8   : > { %3130 = vmatprep.subr.mxu0 %v6676_v49  ;;  %3314 = vmatprep.subr.mxu1 %v3313_v52  ;;  %v3354_v25 = vsub.f32 %v6698_v47, %v7597_v14  ;;  %v3343_v39 = vand.u32 4294901760, %v3342_v2  ;;  %v3366_v52 = vsub.f32 %v6714_v7, %v7236_v3  ;;  %v3349_v14 = vand.u32 4294901760, %v3348_v48  ;;  %v7599_v2 = vld [vmem:[#allocation28_spill] sm:$0xff]  ;;  %v7600_v48 = vld [vmem:[#allocation22_spill] sm:$0xff] }
 0x1c9   : > { %3132 = vmatpush1.msra.mxu0 %v6686_v31  ;;  %3320 = vmatpush1.msra.mxu1 %v3319_v26  ;;  %v3361_v56 = vand.u32 4294901760, %v3360_v35  ;;  %v7604_v35 = vld [vmem:[#allocation24_spill] sm:$0xff] }
 0x1ca   : > { %3165 = vmatprep.mubr.f32.mxu0 %v7297_v34  ;;  %3326 = vmatprep.subr.mxu1 %v3325_v19  ;;  %v3355_v26 = vand.u32 4294901760, %v3354_v25  ;;  %v3367_v19 = vand.u32 4294901760, %v3366_v52  ;;  %v7602_v25 = vld [vmem:[#allocation30_spill] sm:$0xff]  ;;  %v7606_v52 = vld [vmem:[#allocation32_spill] sm:$0xff] }
 0x1cb   : > { %3411 = vmatprep.subr.mxu0 %v6312_v30  ;;  %3171 = vmatmul.mubr.f32.vlgmr.msra.gmra.mxu0 %v7598_v12  ;;  %v7607_v12 = vld [vmem:[#allocation47_spill] sm:$0xff]  ;;  %v7612_v3 = vld [vmem:[#allocation36_spill] sm:$0xff] }
 0x1cc   : > { %3332 = vmatpush1.msra.mxu1 %v3331_v20  ;;  %3414 = vmatpush1.msra.mxu0 %v6321_v6  ;;  %v7601_v20 = vld [vmem:[#allocation31_spill] sm:$0xff] }
 0x1cd   : > { %3338 = vmatprep.subr.mxu1 %v3337_v42  ;;  %3417 = vmatprep.subr.mxu0 %v6355_v27  ;;  %v7603_v42 = vld [vmem:[#allocation43_spill] sm:$0xff] }
 0x1ce   : > { %3344 = vmatpush1.msra.mxu1 %v3343_v39  ;;  %3420 = vmatpush1.msra.mxu0 %v6361_v63  ;;  %v7605_v39 = vld [vmem:[#allocation23_spill] sm:$0xff] }
 0x1cf   : > { %3350 = vmatprep.subr.mxu1 %v3349_v14  ;;  %3423 = vmatprep.subr.mxu0 %v6394_v55  ;;  %v7608_v14 = vld [vmem:[#allocation25_spill] sm:$0xff] }
 0x1d0   : > { %3356 = vmatpush1.msra.mxu1 %v3355_v26  ;;  %3426 = vmatpush1.msra.mxu0 %v6385_v0  ;;  %v7609_v26 = vld [vmem:[#allocation26_spill] sm:$0xff] }
 0x1d1   : > { %3362 = vmatprep.subr.mxu1 %v3361_v56  ;;  %3429 = vmatprep.subr.mxu0 %v6418_v21  ;;  %v7610_v56 = vld [vmem:[#allocation29_spill] sm:$0xff] }
 0x1d2   : > { %3368 = vmatpush1.msra.mxu1 %v3367_v19  ;;  %3401 = vmatprep.mubr.f32.mxu1 %v7297_v34  ;;  %v7611_v19 = vld [vmem:[#allocation27_spill] sm:$0xff] }
 0x1d3   : > { %3432 = vmatpush1.msra.mxu0 %v6407_v51  ;;  %3403 = vmatmul.mubr.f32.vlgmr.msra.gmra.mxu1 %v7563_v53  ;;  %v7615_v53 = vld [vmem:[#allocation37_spill] sm:$0xff] }
 0x1d4   : > { %3435 = vmatprep.subr.mxu0 %v6452_v24  ;;  %3547 = vmatprep.subr.mxu1 %v6294_v36 }
 0x1d5   : > { %3438 = vmatpush1.msra.mxu0 %v6442_v5  ;;  %3549 = vmatpush1.msra.mxu1 %v6302_v13 }
 0x1d6   : > { %3441 = vmatprep.subr.mxu0 %v6495_v37  ;;  %3551 = vmatprep.subr.mxu1 %v6323_v44 }
 0x1d7   : > { %3444 = vmatpush1.msra.mxu0 %v6461_v16  ;;  %3553 = vmatpush1.msra.mxu1 %v6329_v29 }
 0x1d8   : > { %3447 = vmatprep.subr.mxu0 %v6520_v60  ;;  %3555 = vmatprep.subr.mxu1 %v6341_v17 }
 0x1d9   : > { %3450 = vmatpush1.msra.mxu0 %v7599_v2  ;;  %3557 = vmatpush1.msra.mxu1 %v7600_v48 }
 0x1da   : > { %3453 = vmatprep.subr.mxu0 %v6541_v22  ;;  %3559 = vmatprep.subr.mxu1 %v7601_v20 }
 0x1db   : > { %3456 = vmatpush1.msra.mxu0 %v7602_v25  ;;  %3561 = vmatpush1.msra.mxu1 %v7603_v42 }
 0x1dc   : > { %3459 = vmatprep.subr.mxu0 %v6577_v8  ;;  %3563 = vmatprep.subr.mxu1 %v7604_v35 }
 0x1dd   : > { %3462 = vmatpush1.msra.mxu0 %v6569_v38  ;;  %3565 = vmatpush1.msra.mxu1 %v7605_v39 }
 0x1de   : > { %3465 = vmatprep.subr.mxu0 %v6599_v23  ;;  %3567 = vmatprep.subr.mxu1 %v7606_v52 }
 0x1df   : > { %3468 = vmatpush1.msra.mxu0 %v6572_v18  ;;  %3569 = vmatpush1.msra.mxu1 %v7607_v12 }
 0x1e0   : > { %3471 = vmatprep.subr.mxu0 %v6621_v10  ;;  %3571 = vmatprep.subr.mxu1 %v7608_v14 }
 0x1e1   : > { %3474 = vmatpush1.msra.mxu0 %v6607_v45  ;;  %3573 = vmatpush1.msra.mxu1 %v7609_v26 }
 0x1e2   : > { %3477 = vmatprep.subr.mxu0 %v6637_v57  ;;  %3575 = vmatprep.subr.mxu1 %v7610_v56 }
 0x1e3   : > { %3480 = vmatpush1.msra.mxu0 %v6631_v9  ;;  %3577 = vmatpush1.msra.mxu1 %v7611_v19  ;;  %v7616_v9 = vld [vmem:[#allocation48_spill] sm:$0xff] }
 0x1e4   : > { %3483 = vmatprep.subr.mxu0 %v6653_v15  ;;  %3579 = vmatprep.subr.mxu1 %v7612_v3 }
 0x1e5   : > { %3486 = vmatpush1.msra.mxu0 %v6649_v32  ;;  %3581 = vmatpush1.msra.mxu1 %v7613_v41 }
 0x1e6   : > { %3489 = vmatprep.subr.mxu0 %v6680_v4  ;;  %3583 = vmatprep.subr.mxu1 %v7614_v46 }
 0x1e7   : > { %3492 = vmatpush1.msra.mxu0 %v6667_v1  ;;  %3585 = vmatpush1.msra.mxu1 %v7615_v53  ;;  %v7617_v1 = vld [vmem:[#allocation41_spill] sm:$0xff] }
 0x1e8   : > { %3495 = vmatprep.subr.mxu0 %v6694_v11  ;;  %3587 = vmatprep.subr.mxu1 %v7616_v9  ;;  %v7618_v9 = vand.u32 4294901760, %v6312_v30  ;;  %v7622_v30 = vand.u32 4294901760, %v6394_v55  ;;  %v7627_v55 = vand.u32 4294901760, %v6452_v24  ;;  %v7631_v24 = vand.u32 4294901760, %v6520_v60  ;;  %v337_v60 = vld [vmem:[%s4682_s28 + $0x10] sm:$0xff] }
 0x1e9   : > { %3498 = vmatpush1.msra.mxu0 %v6698_v47  ;;  %3589 = vmatpush1.msra.mxu1 %v6562_v40  ;;  %v7619_v40 = vand.u32 4294901760, %v6321_v6  ;;  %v7623_v6 = vand.u32 4294901760, %v6385_v0  ;;  %v7628_v0 = vand.u32 4294901760, %v6442_v5  ;;  %v1694_v5 = vpop.f32.mrf.mxu1  ;;  %vm345_vm2 = vcmp.ne.f32.partialorder %v337_v60, %v337_v60 }
 0x1ea   : > { %3501 = vmatprep.subr.mxu0 %v6710_v59  ;;  %3591 = vmatprep.subr.mxu1 %v6594_v50 }
 0x1eb   : > { %3504 = vmatpush1.msra.mxu0 %v6714_v7  ;;  %3537 = vmatprep.mubr.f32.mxu0 %v7297_v34  ;;  %v7620_v7 = vand.u32 4294901760, %v6355_v27  ;;  %v7624_v27 = vand.u32 4294901760, %v6418_v21  ;;  %v7630_v21 = vand.u32 4294901760, %v6461_v16 }
 0x1ec   : > { %3593 = vmatpush1.msra.mxu1 %v6596_v28  ;;  %3540 = vmatmul.mubr.f32.vlgmr.msra.gmra.mxu0 %v7617_v1  ;;  %v7621_v28 = vand.u32 4294901760, %v6361_v63  ;;  %v7625_v63 = vand.u32 4294901760, %v6407_v51  ;;  %v7626_v1 = vld [vmem:[#allocation42_spill] sm:$0xff]  ;;  %v1462_v51 = vpop.f32.mrf.mxu0 }
 0x1ed   : > { %3595 = vmatprep.subr.mxu1 %v6615_v62  ;;  %3655 = vmatprep.subr.mxu0 %v7618_v9  ;;  %v329_v9 = vld [vmem:[%s4674_s11 + $0x10] sm:$0xff] }
 0x1ee   : > { %3597 = vmatpush1.msra.mxu1 %v6618_v54  ;;  %3659 = vmatpush1.msra.mxu0 %v7619_v40  ;;  %v7637_v40 = vand.u32 4294901760, %v6599_v23 }
 0x1ef   : > { %3599 = vmatprep.subr.mxu1 %v6641_v33  ;;  %3663 = vmatprep.subr.mxu0 %v7620_v7  ;;  %v1696_v7 = vpop.f32.mrf.mxu1 }
 0x1f0   : > { %3601 = vmatpush1.msra.mxu1 %v6634_v58  ;;  %3667 = vmatpush1.msra.mxu0 %v7621_v28  ;;  %v7629_v28 = vand.u32 4294901760, %v6495_v37  ;;  %v338_v37 = vld [vmem:[%s4682_s28 + $0x18] sm:$0xff] }
 0x1f1   : > { %3603 = vmatprep.subr.mxu1 %v6659_v43  ;;  %3671 = vmatprep.subr.mxu0 %v7622_v30  ;;  %vm346_vm3 = vcmp.ne.f32.partialorder %v338_v37, %v338_v37  ;;  %v1937_v23 = vpop.f32.mrf.mxu1 }
 0x1f2   : > { %3605 = vmatpush1.msra.mxu1 %v6669_v61  ;;  %3675 = vmatpush1.msra.mxu0 %v7623_v6 }
 0x1f3   : > { %3607 = vmatprep.subr.mxu1 %v6676_v49  ;;  %3679 = vmatprep.subr.mxu0 %v7624_v27  ;;  %v1939_v30 = vpop.f32.mrf.mxu1 }
 0x1f4   : > { %3609 = vmatpush1.msra.mxu1 %v6686_v31  ;;  %3642 = vmatprep.mubr.f32.mxu1 %v7297_v34 }
 0x1f5   : > { %3683 = vmatpush1.msra.mxu0 %v7625_v63  ;;  %3646 = vmatmul.mubr.f32.vlgmr.msra.gmra.mxu1 %v7626_v1  ;;  %v7647_v63 = vld [vmem:[#allocation35_spill] sm:$0xff] }
 0x1f6   : > { %3687 = vmatprep.subr.mxu0 %v7627_v55  ;;  %3821 = vmatprep.subr.mxu1 %v6294_v36  ;;  %v7632_v36 = vand.u32 4294901760, %v7599_v2  ;;  %v7639_v2 = vand.u32 4294901760, %v6621_v10  ;;  %v7642_v10 = vld [vmem:[#allocation46_spill] sm:$0xff]  ;;  %v7650_v55 = vld [vmem:[#allocation48_spill] sm:$0xff] }
 0x1f7   : > { %3691 = vmatpush1.msra.mxu0 %v7628_v0  ;;  %3823 = vmatpush1.msra.mxu1 %v6302_v13  ;;  %v7633_v13 = vand.u32 4294901760, %v6541_v22  ;;  %v7636_v22 = vand.u32 4294901760, %v6569_v38  ;;  %v330_v38 = vld [vmem:[%s4674_s11 + $0x18] sm:$0xff] }
 0x1f8   : > { %3695 = vmatprep.subr.mxu0 %v7629_v28  ;;  %3825 = vmatprep.subr.mxu1 %v6323_v44  ;;  %v1464_v44 = vpop.f32.mrf.mxu0  ;;  %v7652_v28 = vld [vmem:[#allocation34_spill] sm:$0xff] }
 0x1f9   : > { %3699 = vmatpush1.msra.mxu0 %v7630_v21  ;;  %3827 = vmatpush1.msra.mxu1 %v6329_v29  ;;  %v7634_v29 = vand.u32 4294901760, %v7602_v25  ;;  %v353_v25 = vsel %vm345_vm2, %v329_v9, %v337_v60 }
 0x1fa   : > { %3703 = vmatprep.subr.mxu0 %v7631_v24  ;;  %3829 = vmatprep.subr.mxu1 %v6341_v17  ;;  %v7635_v17 = vand.u32 4294901760, %v6577_v8  ;;  %v1831_v16 = vpop.f32.mrf.mxu0  ;;  %v7638_v8 = vand.u32 4294901760, %v6572_v18  ;;  %v7641_v18 = vand.u32 4294901760, %v6637_v57  ;;  %v7645_v57 = vand.u32 4294901760, %v6649_v32  ;;  %v7654_v24 = vld [vmem:[#allocation44_spill] sm:$0xff] }
 0x1fb   : > { %3707 = vmatpush1.msra.mxu0 %v7632_v36  ;;  %3831 = vmatpush1.msra.mxu1 %v7600_v48  ;;  %v7649_v32 = vand.u32 4294901760, %v6694_v11  ;;  %v7655_v36 = vand.u32 4294901760, %v7654_v24 }
 0x1fc   : > { %3711 = vmatprep.subr.mxu0 %v7633_v13  ;;  %3833 = vmatprep.subr.mxu1 %v7601_v20  ;;  %v1833_v48 = vpop.f32.mrf.mxu0  ;;  %v7640_v20 = vand.u32 4294901760, %v6607_v45  ;;  %v7644_v45 = vand.u32 4294901760, %v6653_v15  ;;  %v7648_v15 = vand.u32 4294901760, %v7647_v63  ;;  %v7656_v13 = vld [vmem:[#allocation38_spill] sm:$0xff] }
 0x1fd   : > { %3715 = vmatpush1.msra.mxu0 %v7634_v29  ;;  %3835 = vmatpush1.msra.mxu1 %v7603_v42  ;;  %v1695_v42 = vadd.f32 %v1694_v5, %v1462_v51  ;;  %v7653_v51 = vand.u32 4294901760, %v6710_v59  ;;  %v339_v29 = vld [vmem:[%s4682_s28 + $0x20] sm:$0xff] }
 0x1fe   : > { %3719 = vmatprep.subr.mxu0 %v7635_v17  ;;  %3837 = vmatprep.subr.mxu1 %v7604_v35  ;;  %v7643_v35 = vand.u32 4294901760, %v7642_v10  ;;  %v331_v17 = vld [vmem:[%s4674_s11 + $0x20] sm:$0xff]  ;;  %vm347_vm4 = vcmp.ne.f32.partialorder %v339_v29, %v339_v29 }
 0x1ff   : > { %3723 = vmatpush1.msra.mxu0 %v7636_v22  ;;  %3839 = vmatpush1.msra.mxu1 %v7605_v39 }
 0x200   : > { %3727 = vmatprep.subr.mxu0 %v7637_v40  ;;  %3841 = vmatprep.subr.mxu1 %v7606_v52  ;;  %v354_v52 = vsel %vm346_vm3, %v330_v38, %v338_v37 }
 0x201   : > { %3731 = vmatpush1.msra.mxu0 %v7638_v8  ;;  %3843 = vmatpush1.msra.mxu1 %v7607_v12  ;;  %v1697_v12 = vadd.f32 %v1696_v7, %v1464_v44  ;;  %v362_v27 = vsub.f32 %v330_v38, %v354_v52  ;;  %v7657_v44 = vld [vmem:[#allocation40_spill] sm:$0xff] }
 0x202   : > { %3735 = vmatprep.subr.mxu0 %v7639_v2  ;;  %3845 = vmatprep.subr.mxu1 %v7608_v14  ;;  %v2105_v39 = vpop.f32.mrf.mxu0  ;;  %v1832_v14 = vadd.f32 %v1831_v16, %v1695_v42  ;;  %v332_v16 = vld [vmem:[%s4674_s11 + $0x28] sm:$0xff] }
 0x203   : > { %3739 = vmatpush1.msra.mxu0 %v7640_v20  ;;  %3847 = vmatpush1.msra.mxu1 %v7609_v26  ;;  %v361_v26 = vsub.f32 %v329_v9, %v353_v25  ;;  %v370_v11 = vand.u32 2147483647, %v362_v27  ;;  %v333_v27 = vld [vmem:[%s4674_s11 + $0x30] sm:$0xff] }
 0x204   : > { %3743 = vmatprep.subr.mxu0 %v7641_v18  ;;  %3849 = vmatprep.subr.mxu1 %v7610_v56  ;;  %v1834_v56 = vadd.f32 %v1833_v48, %v1697_v12  ;;  %v1938_v6 = vadd.f32 %v1937_v23, %v1832_v14 }
 0x205   : > { %3747 = vmatpush1.msra.mxu0 %v7643_v35  ;;  %3851 = vmatpush1.msra.mxu1 %v7611_v19  ;;  %v7646_v19 = vand.u32 4294901760, %v6680_v4  ;;  %v369_v0 = vand.u32 2147483647, %v361_v26  ;;  %v7651_v4 = vand.u32 4294901760, %v6698_v47 }
 0x206   : > { %3751 = vmatprep.subr.mxu0 %v7644_v45  ;;  %3853 = vmatprep.subr.mxu1 %v7612_v3  ;;  %v2107_v3 = vpop.f32.mrf.mxu0  ;;  %v1940_v1 = vadd.f32 %v1939_v30, %v1834_v56  ;;  %v341_v56 = vld [vmem:[%s4682_s28 + $0x30] sm:$0xff] }
 0x207   : > { %3755 = vmatpush1.msra.mxu0 %v7645_v57  ;;  %3855 = vmatpush1.msra.mxu1 %v7613_v41  ;;  %v2106_v41 = vadd.f32 %v2105_v39, %v1938_v6  ;;  %vm349_vm6 = vcmp.ne.f32.partialorder %v341_v56, %v341_v56 }
 0x208   : > { %3759 = vmatprep.subr.mxu0 %v7646_v19  ;;  %3857 = vmatprep.subr.mxu1 %v7614_v46  ;;  %v342_v19 = vld [vmem:[%s4682_s28 + $0x38] sm:$0xff] }
 0x209   : > { %3763 = vmatpush1.msra.mxu0 %v7648_v15  ;;  %3859 = vmatpush1.msra.mxu1 %v7615_v53  ;;  %v2108_v53 = vadd.f32 %v2107_v3, %v1940_v1  ;;  %v334_v15 = vld [vmem:[%s4674_s11 + $0x38] sm:$0xff]  ;;  %vm350_vm7 = vcmp.ne.f32.partialorder %v342_v19, %v342_v19 }
 0x20a   : > { %3767 = vmatprep.subr.mxu0 %v7649_v32  ;;  %3861 = vmatprep.subr.mxu1 %v7650_v55  ;;  %v357_v32 = vsel %vm349_vm6, %v333_v27, %v341_v56 }
 0x20b   : > { %3771 = vmatpush1.msra.mxu0 %v7651_v4  ;;  %3863 = vmatpush1.msra.mxu1 %v7652_v28  ;;  %v2209_v46 = vpop.f32.mrf.mxu1 }
 0x20c   : > { %3775 = vmatprep.subr.mxu0 %v7653_v51  ;;  %3865 = vmatprep.subr.mxu1 %v6594_v50  ;;  %v2210_v21 = vadd.f32 %v2209_v46, %v2106_v41  ;;  %v365_v46 = vsub.f32 %v333_v27, %v357_v32 }
 0x20d   : > { %3779 = vmatpush1.msra.mxu0 %v7655_v36  ;;  %3812 = vmatprep.mubr.f32.mxu0 %v7297_v34  ;;  %v2211_v47 = vpop.f32.mrf.mxu1 }
 0x20e   : > { %3867 = vmatpush1.msra.mxu1 %v7656_v13  ;;  %3814 = vmatmul.mubr.f32.vlgmr.msra.gmra.mxu0 %v7657_v44  ;;  %v3926_v5 = vmul.f32 %v2210_v21, %v369_v0  ;;  %v2212_v59 = vadd.f32 %v2211_v47, %v2108_v53  ;;  %v358_v0 = vsel %vm350_vm7, %v334_v15, %v342_v19  ;;  %v373_v13 = vand.u32 2147483647, %v365_v46 }
 0x20f   : > { %3869 = vmatprep.subr.mxu1 %v6615_v62  ;;  %3916 = vmatprep.mubr.f32.mxu1 %v7297_v34 }
 0x210   : > { %3871 = vmatpush1.msra.mxu1 %v6618_v54  ;;  %3934 = vst [vmem:[%s6475_s12 + $0x10] sm:$0xff] %v3926_v5  ;;  %v3927_v50 = vmul.f32 %v2212_v59, %v370_v11  ;;  %v366_v11 = vsub.f32 %v334_v15, %v358_v0 }
 0x211   : > { %3873 = vmatprep.subr.mxu1 %v6641_v33  ;;  %v340_v33 = vld [vmem:[%s4682_s28 + $0x28] sm:$0xff] }
 0x212   : > { %3875 = vmatpush1.msra.mxu1 %v6634_v58  ;;  %3935 = vst [vmem:[%s6475_s12 + $0x18] sm:$0xff] %v3927_v50  ;;  %vm348_vm5 = vcmp.ne.f32.partialorder %v340_v33, %v340_v33  ;;  %v374_v50 = vand.u32 2147483647, %v366_v11 }
 0x213   : > { %3877 = vmatprep.subr.mxu1 %v6659_v43  ;;  %v356_v40 = vsel %vm348_vm5, %v332_v16, %v340_v33 }
 0x214   : > { %3879 = vmatpush1.msra.mxu1 %v6669_v61  ;;  %v355_v61 = vsel %vm347_vm4, %v331_v17, %v339_v29  ;;  %v364_v48 = vsub.f32 %v332_v16, %v356_v40 }
 0x215   : > { %3881 = vmatprep.subr.mxu1 %v6676_v49  ;;  %v363_v7 = vsub.f32 %v331_v17, %v355_v61 }
 0x216   : > { %3883 = vmatpush1.msra.mxu1 %v6686_v31  ;;  %v372_v39 = vand.u32 2147483647, %v364_v48 }
 0x217   : > { %3918 = vmatmul.mubr.f32.vlgmr.msra.gmra.mxu1 %v7657_v44  ;;  %v371_v42 = vand.u32 2147483647, %v363_v7 }
 0x225   : > { %v2317_v34 = vpop.f32.mrf.mxu0 }
 0x227   : > { %v2319_v62 = vpop.f32.mrf.mxu0 }
 0x22d   : > { %v2549_v54 = vpop.f32.mrf.mxu1 }
 0x22e   : > { %v2550_v37 = vadd.f32 %v2549_v54, %v2317_v34 }
 0x22f   : > { %v2551_v58 = vpop.f32.mrf.mxu1 }
 0x230   : > { %v2552_v31 = vadd.f32 %v2551_v58, %v2319_v62 }
 0x246   : > { %v2686_v60 = vpop.f32.mrf.mxu0 }
 0x247   : > { %v2687_v9 = vadd.f32 %v2686_v60, %v2550_v37 }
 0x248   : > { %v2688_v43 = vpop.f32.mrf.mxu0 }
 0x249   : > { %v2689_v2 = vadd.f32 %v2688_v43, %v2552_v31 }
 0x24f   : > { %v2792_v22 = vpop.f32.mrf.mxu1 }
 0x250   : > { %v2793_v38 = vadd.f32 %v2792_v22, %v2687_v9 }
 0x251   : > { %v2794_v8 = vpop.f32.mrf.mxu1 }
 0x252   : > { %v2795_v20 = vadd.f32 %v2794_v8, %v2689_v2 }
 0x269   : > { %v2960_v49 = vpop.f32.mrf.mxu0 }
 0x26a   : > { %v2961_v25 = vadd.f32 %v2960_v49, %v2793_v38 }
 0x26b   : > { %v2962_v23 = vpop.f32.mrf.mxu0 }
 0x26c   : > { %v2963_v10 = vadd.f32 %v2962_v23, %v2795_v20 }
 0x271   : > { %v3064_v18 = vpop.f32.mrf.mxu1 }
 0x272   : > { %v3065_v35 = vadd.f32 %v3064_v18, %v2961_v25 }
 0x273   : > { %v3066_v52 = vpop.f32.mrf.mxu1 }
 0x274   : > { %v3928_v12 = vmul.f32 %v3065_v35, %v371_v42  ;;  %v3067_v14 = vadd.f32 %v3066_v52, %v2963_v10 }
 0x276   : > { %3936 = vst [vmem:[%s6475_s12 + $0x20] sm:$0xff] %v3928_v12  ;;  %v3929_v45 = vmul.f32 %v3067_v14, %v372_v39 }
 0x278   : > { %3937 = vst [vmem:[%s6475_s12 + $0x28] sm:$0xff] %v3929_v45 }
 0x28b   : > { %v3172_v26 = vpop.f32.mrf.mxu0 }
 0x28d   : > { %v3174_v30 = vpop.f32.mrf.mxu0 }
 0x293   : > { %v3404_v57 = vpop.f32.mrf.mxu1 }
 0x294   : > { %v3405_v55 = vadd.f32 %v3404_v57, %v3172_v26 }
 0x295   : > { %v3406_v63 = vpop.f32.mrf.mxu1 }
 0x296   : > { %v3407_v4 = vadd.f32 %v3406_v63, %v3174_v30 }
 0x2ac   : > { %v3541_v6 = vpop.f32.mrf.mxu0 }
 0x2ad   : > { %v3542_v28 = vadd.f32 %v3541_v6, %v3405_v55 }
 0x2ae   : > { %v3543_v3 = vpop.f32.mrf.mxu0 }
 0x2af   : > { %v3544_v53 = vadd.f32 %v3543_v3, %v3407_v4 }
 0x2b5   : > { %v3647_v1 = vpop.f32.mrf.mxu1 }
 0x2b6   : > { %v3648_v21 = vadd.f32 %v3647_v1, %v3542_v28 }
 0x2b7   : > { %v3649_v51 = vpop.f32.mrf.mxu1 }
 0x2b8   : > { %v3650_v36 = vadd.f32 %v3649_v51, %v3544_v53 }
 0x2ce   : > { %v3815_v41 = vpop.f32.mrf.mxu0 }
 0x2cf   : > { %v3816_v47 = vadd.f32 %v3815_v41, %v3648_v21 }
 0x2d0   : > { %v3817_v24 = vpop.f32.mrf.mxu0 }
 0x2d1   : > { %v3818_v5 = vadd.f32 %v3817_v24, %v3650_v36 }
 0x2d7   : > { %v3919_v44 = vpop.f32.mrf.mxu1 }
 0x2d8   : > { %v3920_v59 = vadd.f32 %v3919_v44, %v3816_v47 }
 0x2d9   : > { %v3921_v34 = vpop.f32.mrf.mxu1 }
 0x2da   : > { %v3930_v62 = vmul.f32 %v3920_v59, %v373_v13  ;;  %v3922_v54 = vadd.f32 %v3921_v34, %v3818_v5 }
 0x2dc   : > { %3938 = vst [vmem:[%s6475_s12 + $0x30] sm:$0xff] %v3930_v62  ;;  %v3931_v29 = vmul.f32 %v3922_v54, %v374_v50 }
 0x2de   : > { %3939 = vst [vmem:[%s6475_s12 + $0x38] sm:$0xff] %v3931_v29 }
 0x2df   : > { %4357 = shalt.err (!%p4354_p13)
}
 0x2e0   : > { %s4358_s1 = scalar_lea.hbm %s3955_s8, 1024  ;;  %s4362_s29 = scalar_lea.hbm %s6993_s4, 4096 }
 0x2e1   : > { %p4359_p1 = scmp.ne.s32.totalorder %s3955_s8, %s4358_s1  ;;  %p4363_p5 = scmp.lt.s32.totalorder %s3955_s8, %s6993_s4 }
 0x2e2   : > { %p4364_p10 = scmp.lt.s32.totalorder %s4362_s29, %s4358_s1 }
 0x2e3   : > { %p4360_p2 = pnand %p4359_p1, %p7658_p9 }
 0x2e4   : > { %p4365_p12 = por %p4364_p10, %p4363_p5 }
 0x2e5   : > { %p4361_p3 = pneg %p4360_p2 }
 0x2e7   : > { %p4366_p7 = pnand %p4365_p12, %p4361_p3 }
 0x2e9   : > { %4369 = shalt.err (!%p4366_p7)
}
 0x2ea   : > { %4142 = dma.vmem_to_hbm [thread:$0]  (%p7658_p9), %s3958_s7, 1024, %s3955_s8, %s3941_s9  }
 0x2eb PF: > { %s7659_s14 = sld [smem:[#allocation17_spill]] }
 0x2ec   : > { %s7660_s28 = sld [smem:[#allocation15_spill]] }
 0x2ed   : > { %s7661_s13 = sld [smem:[#allocation21_spill]] }
 0x2f1   : > { %p4165_p0 = scmp.ge.s32.totalorder %s7659_s14, 2 }
 0x2f2   : > { %s3969_s26 = sand.u32 1, %s7660_s28  }
 0x2f3   : > { %p7662_p11 = scmp.ne.s32.totalorder %s7661_s13, 0  ;;  %s3970_s12 = scalar_lea.sflag [#allocation4], %s3969_s26 }
 0x2f5   : > { %p4159_p8 = pnand %p4165_p0, %p7662_p11 }
 0x2f7   : > { %p4160_p4 = pneg %p4159_p8 }
 0x2f9   : > { %4415 = dma.done.wait (%p4160_p4), %s3970_s12, 1024  }
 0x2fa   : > { %4417 = vsyncadd (%p4160_p4), %s3970_s12, 4294966272  ;;  %s24_s22 = sadd.s32 1, %s7659_s14   ;;  %s7663_s24 = sld [smem:[#allocation16_spill]] }
 0x2fb   : > { %p21_p6 = scmp.ge.s32.totalorder %s24_s22, 6   ;;  %s7664_s17 = sld [smem:[#allocation20_spill]] }
 0x2fc   : > { %s7665_s10 = sld [smem:[#allocation18_spill]]  ;;  %s7667_s15 = smov %s4424_s16 }
 0x2fd   : > { %s7666_s2 = sld [smem:[#allocation19_spill]]  ;;  %s7669_s18 = smov %s4440_s20 }
 0x2fe   : > { %s7670_s19 = smov %s4444_s21 }
 0x2ff   :  { %23 = sbr.rel (!%p21_p6) target bundleno = 13 (0xd), region = 110 }
 0x300   : > { %s7668_s16 = smov %s7663_s24 }
 0x302   : > { %s7671_s20 = smov %s7665_s10 }
 0x303   : > { %s7672_s21 = smov %s7666_s2 }
 0x304   :  { %3975 = vsyncpa [#allocation3], 1 }
 0x305   :  { %3977 = vsyncpa [#allocation3 + $0x1], 1 }
 0x306   :  { %3978 = vsyncpa [#allocation6], 1 }
 0x307   :  { %3980 = vsyncpa [#allocation6 + $0x1], 1 }
 0x308   :  { %3981 = vsyncpa [#allocation9], 1 }
 0x309   :  { %3983 = vsyncpa [#allocation9 + $0x1], 1 }
 0x30a   :  { %3984 = vsyncpa [#allocation4], 1 }
 0x30b   :  { %3986 = vsyncpa [#allocation4 + $0x1], 1 }

</bundles_post_ra>
